<compile_context>
chip_gen: v5e
topology: v5e:2x2
jax: 0.10.0
libtpu: 0.0.40
codegen_flags: <defaults>
</compile_context>

<pallas_src>
import numpy as np
import jax
import jax.numpy as jnp
from jax.experimental import pallas as pl
from jax.experimental.pallas import tpu as pltpu

_VMEM_LIMIT = 32 * 1024 * 1024  # safe scoped-VMEM cap on v5e / v6e / v7x


# ----------------------------- Pallas kernels ------------------------------

def _conv_stage_kernel(patch_ref, w1_ref, b1_ref, mask_ref, w2_ref, b2_ref, feat_ref):
    """Fused conv1+pool+relu+conv2+pool+relu, intermediates VMEM-resident.

    patch_ref: [TB, 4, 64, 36] bf16  per conv2-window 6x6 input patches; rows = the
               8x8 pooled-output grid, 36 = folded (pool-parity x tap) input window.
    w1_ref   : [36, 512]  bf16  conv1 taps; lanes = pool-parity(4) x plane(4) x 32ch.
    b1_ref   : [1, 128]   f32   conv1 bias tiled over the 4 parity planes.
    mask_ref : [4, 64, 128] f32 zero where a plane position is conv2's zero padding.
    w2_ref   : [4, 4, 128, 64] bf16  conv2 taps folded per (output-parity, window).
    b2_ref   : [1, 64]    f32
    feat_ref : [TB, 64, 64] bf16  8x8(+pad garbage) x 64ch conv2 activation.
    """
    tb = patch_ref.shape[0]
    rows = tb * 64
    w1 = w1_ref[...]
    b1 = b1_ref[...]
    b2 = b2_ref[...]

    accs = None
    for win in range(4):
        # conv1 for this window's 8x8 grid: one K=36 MXU dot; the 2x2 max-pool is a
        # max over the four 128-lane parity groups, landing in conv2's packed layout.
        lhs = patch_ref[:, win].reshape(rows, 36)
        y = jnp.dot(lhs, w1, preferred_element_type=jnp.float32)            # [rows,512]
        m = jnp.maximum(jnp.maximum(y[:, 0:128], y[:, 128:256]),
                        jnp.maximum(y[:, 256:384], y[:, 384:512]))
        a = jnp.maximum(m + b1, 0.0)                                        # [rows,128]
        a = (a.reshape(tb, 64, 128) * mask_ref[win]).reshape(rows, 128)
        xw = a.astype(jnp.bfloat16)                                         # conv2 LHS

        # conv2: 9 taps folded (zero-padded) into one K=128 weight per output parity,
        # so 4 full-width dots here instead of 9 K=32 dots with lane extraction.
        dots = [jnp.dot(xw, w2_ref[par, win], preferred_element_type=jnp.float32)
                for par in range(4)]
        accs = dots if accs is None else [accs[i] + dots[i] for i in range(4)]

    m2 = jnp.maximum(jnp.maximum(accs[0], accs[1]), jnp.maximum(accs[2], accs[3]))
    out = jnp.maximum(m2 + b2, 0.0)                                         # [rows,64]
    feat_ref[...] = out.astype(feat_ref.dtype).reshape(tb, 64, 64)


def _fc_kernel(feat_ref, w1_ref, b1_ref, w2_ref, b2_ref, o_ref):
    """Fused fc1 + relu (+ dropout identity) + fc2 + sigmoid.

    feat_ref: [1, TF, 4096] bf16, w1_ref: [4096,128] bf16, b1_ref: [1,128] f32,
    w2_ref  : [1, 128] f32,       b2_ref: [1,1] f32,       o_ref : [1,TF,1] f32.
    """
    feat = feat_ref[0]                                                      # [TF,4096]
    h = jnp.dot(feat, w1_ref[...], preferred_element_type=jnp.float32)
    h = jnp.maximum(h + b1_ref[...], 0.0)
    # TODO(synk): nn.Dropout(0.5) is training-only; inference-mode identity here.
    z = jnp.sum(h * w2_ref[...], axis=-1, keepdims=True) + b2_ref[...]      # [TF,1]
    p = pl.reciprocal(1.0 + jnp.exp(-z), approx=True)                       # EUP sigmoid
    o_ref[...] = jnp.minimum(p, 1.0).reshape(o_ref.shape)


# ----------------------------- kernel wrappers ------------------------------

def _compiler_params():
    return pltpu.CompilerParams(dimension_semantics=("parallel",),
                                vmem_limit_bytes=_VMEM_LIMIT)


def conv_stage_pallas(patches, prep, tb):
    bp = patches.shape[0]
    grid = bp // tb
    flops = bp * (4 * 2 * 64 * 36 * 512 + 16 * 2 * 64 * 128 * 64)
    bytes_acc = (patches.size * 2 + prep["w1"].size * 2 + prep["mask"].size * 4
                 + prep["w2"].size * 2 + bp * 64 * 64 * 2 + (128 + 64) * 4)
    return pl.pallas_call(
        _conv_stage_kernel,
        out_shape=jax.ShapeDtypeStruct((bp, 64, 64), jnp.bfloat16),
        grid=(grid,),
        in_specs=[
            pl.BlockSpec((tb, 4, 64, 36), lambda b: (b, 0, 0, 0)),
            pl.BlockSpec((36, 512), lambda b: (0, 0)),
            pl.BlockSpec((1, 128), lambda b: (0, 0)),
            pl.BlockSpec((4, 64, 128), lambda b: (0, 0, 0)),
            pl.BlockSpec((4, 4, 128, 64), lambda b: (0, 0, 0, 0)),
            pl.BlockSpec((1, 64), lambda b: (0, 0)),
        ],
        out_specs=pl.BlockSpec((tb, 64, 64), lambda b: (b, 0, 0)),
        compiler_params=_compiler_params(),
        cost_estimate=pl.CostEstimate(flops=int(flops), transcendentals=0,
                                      bytes_accessed=int(bytes_acc)),
    )(patches, prep["w1"], prep["b1"], prep["mask"], prep["w2"], prep["b2"])


def fc_pallas(feat, prep, tf):
    bp = feat.shape[0]
    grid = bp // tf
    feat3 = feat.reshape(grid, tf, 4096)          # free: row-major relabel in HBM
    flops = 2 * bp * 4096 * 128 + 2 * bp * 128
    bytes_acc = bp * 4096 * 2 + 4096 * 128 * 2 + bp * 4 + (128 + 128 + 1) * 4
    out = pl.pallas_call(
        _fc_kernel,
        out_shape=jax.ShapeDtypeStruct((grid, tf, 1), jnp.float32),
        grid=(grid,),
        in_specs=[
            pl.BlockSpec((1, tf, 4096), lambda i: (i, 0, 0)),
            pl.BlockSpec((4096, 128), lambda i: (0, 0)),
            pl.BlockSpec((1, 128), lambda i: (0, 0)),
            pl.BlockSpec((1, 128), lambda i: (0, 0)),
            pl.BlockSpec((1, 1), lambda i: (0, 0)),
        ],
        out_specs=pl.BlockSpec((1, tf, 1), lambda i: (i, 0, 0)),
        compiler_params=_compiler_params(),
        cost_estimate=pl.CostEstimate(flops=int(flops), transcendentals=int(bp),
                                      bytes_accessed=int(bytes_acc)),
    )(feat3, prep["fc1w"], prep["fc1b"], prep["fc2w"], prep["fc2b"])
    return out.reshape(bp, 1)


# ------------------------------- forward pass --------------------------------

def _conv_tiles(batch):
    """Up to 8 images per grid step, but never fewer than 2 steps when batch >= 2
    (v7x has 2 TensorCores; 'parallel' only helps if the grid can be split)."""
    tb = max(1, min(8, (batch + 1) // 2))
    bp = ((batch + tb - 1) // tb) * tb
    return tb, bp


def _fc_tile(bp):
    """Largest divisor of bp that is <= 256 rows and leaves >= 2 grid steps when
    possible (large tiles amortize per-step overhead; >=2 steps feeds both v7x TCs)."""
    min_steps = 2 if bp >= 2 else 1
    best = 1
    for t in range(1, min(bp, 256) + 1):
        if bp % t == 0 and bp // t >= min_steps:
            best = t
    return best


def classical_cnn_forward(prep, x_nchw):
    B = x_nchw.shape[0]
    tb, bp = _conv_tiles(B)

    # Pad the 28x28 input once so every (pool-parity, plane, tap) read below is a plain
    # in-bounds strided slice: the rows needed are x[4*i + u - 3], i in [0,9), u in [0,6).
    x = x_nchw.reshape(B, 28, 28).astype(jnp.bfloat16)
    xbig = jnp.pad(x, ((0, bp - B), (3, 7), (3, 7)))                       # [bp,38,38]

    # 6x6 input patches at every conv2-parity-plane position (9x9 grid), then one
    # shifted 8x8 copy per conv2 window so the kernel never slices/reshapes across an
    # odd (9-row) boundary.  Tiny tensors (<20 KB/image); XLA fuses the slices.
    p9 = jnp.stack([xbig[:, u:u + 33:4, v:v + 33:4]
                    for u in range(6) for v in range(6)], axis=-1)         # [bp,9,9,36]
    patches = jnp.stack([p9[:, i0:i0 + 8, j0:j0 + 8, :].reshape(bp, 64, 36)
                         for i0 in (0, 1) for j0 in (0, 1)], axis=1)       # [bp,4,64,36]

    feat = conv_stage_pallas(patches, prep, tb)                            # [bp,64,64]
    feat = feat.reshape(bp, 64 * 64)          # free HBM relabel -> lane-dense K=4096

    out = fc_pallas(feat, prep, _fc_tile(bp))                              # [bp,1] f32
    return out[:B]


# --------------------------- parameter preparation ---------------------------

def prepare_params(params):
    """One-time weight re-layout (host side, outside the forward pass)."""
    # conv1 taps -> [36, 512]: row = 6x6 window offset u*6+v with u = 2a+p+dy,
    # v = 2c+q+dx; col = pool-parity(p,q)*128 + conv2-plane(a,c)*32 + out-channel.
    w1t = np.asarray(params["conv1_w"], np.float32)[:, 0].transpose(1, 2, 0)  # [dy,dx,ch]
    w1f = np.zeros((6, 6, 4, 4, 32), np.float32)
    for p in (0, 1):
        for q in (0, 1):
            for a in (0, 1):
                for c in (0, 1):
                    for dy in range(3):
                        for dx in range(3):
                            w1f[2 * a + p + dy, 2 * c + q + dx,
                                p * 2 + q, a * 2 + c] = w1t[dy, dx]
    w1f = w1f.reshape(36, 512)

    # conv2 taps folded per (output parity, window) into zero-padded K=128 weights:
    # [par, win, plane*32+cin, cout]; tap (dy,dx) = (2*i0+a-p, 2*j0+c-q) when in range.
    w2t = np.asarray(params["conv2_w"], np.float32).transpose(2, 3, 1, 0)  # [dy,dx,ci,co]
    w2f = np.zeros((4, 4, 4, 32, 64), np.float32)
    for p in (0, 1):
        for q in (0, 1):
            for i0 in (0, 1):
                for j0 in (0, 1):
                    for a in (0, 1):
                        for c in (0, 1):
                            dy, dx = 2 * i0 + a - p, 2 * j0 + c - q
                            if 0 <= dy < 3 and 0 <= dx < 3:
                                w2f[p * 2 + q, i0 * 2 + j0, a * 2 + c] = w2t[dy, dx]
    w2f = w2f.reshape(4, 4, 128, 64)

    # Validity mask: a plane position maps to pooled (2*(u+i0)+a-1, 2*(v+j0)+c-1);
    # outside [0,14) it is conv2's zero padding and must be exactly 0 after relu.
    mask = np.zeros((4, 8, 8, 4, 32), np.float32)
    for i0 in (0, 1):
        for j0 in (0, 1):
            for a in (0, 1):
                for c in (0, 1):
                    ru = np.array([1.0 if 0 <= 2 * (u + i0) + a - 1 <= 13 else 0.0
                                   for u in range(8)], np.float32)
                    rv = np.array([1.0 if 0 <= 2 * (v + j0) + c - 1 <= 13 else 0.0
                                   for v in range(8)], np.float32)
                    mask[i0 * 2 + j0, :, :, a * 2 + c] = \
                        (ru[:, None] * rv[None, :])[:, :, None]
    mask = mask.reshape(4, 64, 128)

    # fc1: permute input columns from the NCHW flatten (c,h,w) of the 7x7x64 activation
    # to the kernel's lane-dense (h,w,c) order over an 8x8 padded grid; the h==7 / w==7
    # rows are exactly zero so the conv kernel's padded-garbage columns cannot leak.
    fc1 = np.asarray(params["fc1_w"], np.float32).reshape(128, 64, 7, 7)
    fc1 = fc1.transpose(2, 3, 1, 0)                                        # [h,w,c,n]
    fc1 = np.pad(fc1, ((0, 1), (0, 1), (0, 0), (0, 0))).reshape(64 * 64, 128)

    return {
        "w1":   jnp.asarray(w1f, jnp.bfloat16),
        "b1":   jnp.tile(params["conv1_b"].reshape(1, 32), (1, 4)).astype(jnp.float32),
        "mask": jnp.asarray(mask, jnp.float32),
        "w2":   jnp.asarray(w2f, jnp.bfloat16),
        "b2":   params["conv2_b"].reshape(1, 64).astype(jnp.float32),
        "fc1w": jnp.asarray(fc1, jnp.bfloat16),
        "fc1b": params["fc1_b"].reshape(1, 128).astype(jnp.float32),
        "fc2w": params["fc2_w"].reshape(1, 128).astype(jnp.float32),
        "fc2b": params["fc2_b"].reshape(1, 1).astype(jnp.float32),
    }


def init_params(key):
    ks = jax.random.split(key, 8)

    def u(k, shape, fan_in):
        bound = 1.0 / jnp.sqrt(jnp.float32(fan_in))
        return jax.random.uniform(k, shape, jnp.float32, -bound, bound)

    return {
        "conv1_w": u(ks[0], (32, 1, 3, 3), 1 * 9),
        "conv1_b": u(ks[1], (32,), 1 * 9),
        "conv2_w": u(ks[2], (64, 32, 3, 3), 32 * 9),
        "conv2_b": u(ks[3], (64,), 32 * 9),
        "fc1_w":   u(ks[4], (128, 64 * 7 * 7), 64 * 7 * 7),
        "fc1_b":   u(ks[5], (128,), 64 * 7 * 7),
        "fc2_w":   u(ks[6], (1, 128), 128),
        "fc2_b":   u(ks[7], (1,), 128),
    }


# ------------------------------ f32 reference --------------------------------

def reference_forward(params, x_nchw):
    """Pure-JAX f32 reference matching the PyTorch module (eval mode)."""
    x = x_nchw.astype(jnp.float32)

    def conv(v, w, b):
        y = jax.lax.conv_general_dilated(v, w, (1, 1), ((1, 1), (1, 1)),
                                         dimension_numbers=("NCHW", "OIHW", "NCHW"))
        return y + b[None, :, None, None]

    def pool(v):
        return jax.lax.reduce_window(v, -jnp.inf, jax.lax.max,
                                     (1, 1, 2, 2), (1, 1, 2, 2), "VALID")

    y = jax.nn.relu(pool(conv(x, params["conv1_w"], params["conv1_b"])))
    y = jax.nn.relu(pool(conv(y, params["conv2_w"], params["conv2_b"])))
    h = jax.nn.relu(y.reshape(y.shape[0], -1) @ params["fc1_w"].T + params["fc1_b"])
    z = h @ params["fc2_w"].T + params["fc2_b"]
    return jax.nn.sigmoid(z)


if __name__ == "__main__":
    key = jax.random.PRNGKey(0)
    pkey, xkey = jax.random.split(key)
    params = init_params(pkey)
    prep = prepare_params(params)

    # batch=2, NCHW 1x28x28 input (so fc1 sees 64*7*7 features, as in the PyTorch module)
    x = jax.random.normal(xkey, (2, 1, 28, 28), dtype=jnp.float32)

    fwd = jax.jit(classical_cnn_forward)
    out = jax.block_until_ready(fwd(prep, x))

    assert out.shape == (2, 1), out.shape
    assert bool(jnp.all(jnp.isfinite(out)))
    assert bool(jnp.all((out >= 0.0) & (out <= 1.0)))

    ref = reference_forward(params, x)
    err = float(jnp.max(jnp.abs(out - ref)))
    assert err < 5e-2, (err, np.asarray(out), np.asarray(ref))
    print("KERNEL_OK")
</pallas_src>

<mosaic_0001>
module attributes {stable_mosaic.version = 11 : i64} {
  func.func @_conv_stage_kernel(%arg0: i32, %arg1: memref<1x4x64x36xbf16, #tpu.memory_space<vmem>>, %arg2: memref<36x512xbf16, #tpu.memory_space<vmem>>, %arg3: memref<1x128xf32, #tpu.memory_space<vmem>>, %arg4: memref<4x64x128xf32, #tpu.memory_space<vmem>>, %arg5: memref<4x4x128x64xbf16, #tpu.memory_space<vmem>>, %arg6: memref<1x64xf32, #tpu.memory_space<vmem>>, %arg7: memref<1x64x64xbf16, #tpu.memory_space<vmem>>) attributes {dimension_semantics = [#tpu.dimension_semantics<parallel>], iteration_bounds = array<i64: 2>, scalar_prefetch = 0 : i64, scratch_operands = 0 : i64, tpu.core_type = #tpu.core_type<tc>, window_params = [{transform_indices = @transform_0, window_bounds = array<i64: 1, 4, 64, 36>}, {pipeline_mode = #tpu.pipeline_mode<synchronous>, transform_indices = @transform_1, window_bounds = array<i64: 36, 512>}, {pipeline_mode = #tpu.pipeline_mode<synchronous>, transform_indices = @transform_2, window_bounds = array<i64: 1, 128>}, {pipeline_mode = #tpu.pipeline_mode<synchronous>, transform_indices = @transform_3, window_bounds = array<i64: 4, 64, 128>}, {pipeline_mode = #tpu.pipeline_mode<synchronous>, transform_indices = @transform_4, window_bounds = array<i64: 4, 4, 128, 64>}, {pipeline_mode = #tpu.pipeline_mode<synchronous>, transform_indices = @transform_5, window_bounds = array<i64: 1, 64>}, {transform_indices = @transform_6, window_bounds = array<i64: 1, 64, 64>}]} {
    %c0 = arith.constant 0 : index
    %c0_0 = arith.constant 0 : index
    %0 = vector.load %arg2[%c0, %c0_0] : memref<36x512xbf16, #tpu.memory_space<vmem>>, vector<36x512xbf16>
    %c0_1 = arith.constant 0 : index
    %c0_2 = arith.constant 0 : index
    %1 = vector.load %arg3[%c0_1, %c0_2] : memref<1x128xf32, #tpu.memory_space<vmem>>, vector<1x128xf32>
    %c0_3 = arith.constant 0 : index
    %c0_4 = arith.constant 0 : index
    %2 = vector.load %arg6[%c0_3, %c0_4] : memref<1x64xf32, #tpu.memory_space<vmem>>, vector<1x64xf32>
    %c0_5 = arith.constant 0 : index
    %c0_6 = arith.constant 0 : index
    %c0_7 = arith.constant 0 : index
    %c0_8 = arith.constant 0 : index
    %3 = vector.load %arg1[%c0_5, %c0_6, %c0_7, %c0_8] : memref<1x4x64x36xbf16, #tpu.memory_space<vmem>>, vector<1x1x64x36xbf16>
    %4 = vector.shape_cast %3 : vector<1x1x64x36xbf16> to vector<1x64x36xbf16>
    %5 = vector.shape_cast %4 : vector<1x64x36xbf16> to vector<64x36xbf16>
    %cst = arith.constant dense<0.000000e+00> : vector<64x512xf32>
    %6 = tpu.matmul %5, %0, %cst {dimension_numbers = #tpu.dot_dimension_numbers<[1], [0], [0], [1], [0, 0, 1, 1], [], []>} : vector<64x36xbf16>, vector<36x512xbf16>, vector<64x512xf32> -> vector<64x512xf32>
    %7 = vector.extract_strided_slice %6 {offsets = [0, 0], sizes = [64, 128], strides = [1, 1]} : vector<64x512xf32> to vector<64x128xf32>
    %8 = vector.extract_strided_slice %6 {offsets = [0, 128], sizes = [64, 128], strides = [1, 1]} : vector<64x512xf32> to vector<64x128xf32>
    %9 = arith.maximumf %7, %8 : vector<64x128xf32>
    %10 = vector.extract_strided_slice %6 {offsets = [0, 256], sizes = [64, 128], strides = [1, 1]} : vector<64x512xf32> to vector<64x128xf32>
    %11 = vector.extract_strided_slice %6 {offsets = [0, 384], sizes = [64, 128], strides = [1, 1]} : vector<64x512xf32> to vector<64x128xf32>
    %12 = arith.maximumf %10, %11 : vector<64x128xf32>
    %13 = arith.maximumf %9, %12 : vector<64x128xf32>
    %14 = vector.broadcast %1 : vector<1x128xf32> to vector<64x128xf32>
    %15 = arith.addf %13, %14 : vector<64x128xf32>
    %cst_9 = arith.constant 0.000000e+00 : f32
    %16 = vector.broadcast %cst_9 : f32 to vector<64x128xf32>
    %17 = arith.maximumf %15, %16 : vector<64x128xf32>
    %18 = vector.shape_cast %17 : vector<64x128xf32> to vector<1x64x128xf32>
    %c0_10 = arith.constant 0 : index
    %c0_11 = arith.constant 0 : index
    %c0_12 = arith.constant 0 : index
    %19 = vector.load %arg4[%c0_10, %c0_11, %c0_12] : memref<4x64x128xf32, #tpu.memory_space<vmem>>, vector<1x64x128xf32>
    %20 = vector.shape_cast %19 : vector<1x64x128xf32> to vector<64x128xf32>
    %21 = vector.shape_cast %20 : vector<64x128xf32> to vector<1x64x128xf32>
    %22 = arith.mulf %18, %21 : vector<1x64x128xf32>
    %23 = vector.shape_cast %22 : vector<1x64x128xf32> to vector<64x128xf32>
    %24 = arith.truncf %23 : vector<64x128xf32> to vector<64x128xbf16>
    %c0_13 = arith.constant 0 : index
    %c0_14 = arith.constant 0 : index
    %c0_15 = arith.constant 0 : index
    %c0_16 = arith.constant 0 : index
    %25 = vector.load %arg5[%c0_13, %c0_14, %c0_15, %c0_16] : memref<4x4x128x64xbf16, #tpu.memory_space<vmem>>, vector<1x1x128x64xbf16>
    %26 = vector.shape_cast %25 : vector<1x1x128x64xbf16> to vector<128x64xbf16>
    %cst_17 = arith.constant dense<0.000000e+00> : vector<64x64xf32>
    %27 = tpu.matmul %24, %26, %cst_17 {dimension_numbers = #tpu.dot_dimension_numbers<[1], [0], [0], [1], [0, 0, 1, 1], [], []>} : vector<64x128xbf16>, vector<128x64xbf16>, vector<64x64xf32> -> vector<64x64xf32>
    %c1 = arith.constant 1 : index
    %c0_18 = arith.constant 0 : index
    %c0_19 = arith.constant 0 : index
    %c0_20 = arith.constant 0 : index
    %28 = vector.load %arg5[%c1, %c0_18, %c0_19, %c0_20] : memref<4x4x128x64xbf16, #tpu.memory_space<vmem>>, vector<1x1x128x64xbf16>
    %29 = vector.shape_cast %28 : vector<1x1x128x64xbf16> to vector<128x64xbf16>
    %cst_21 = arith.constant dense<0.000000e+00> : vector<64x64xf32>
    %30 = tpu.matmul %24, %29, %cst_21 {dimension_numbers = #tpu.dot_dimension_numbers<[1], [0], [0], [1], [0, 0, 1, 1], [], []>} : vector<64x128xbf16>, vector<128x64xbf16>, vector<64x64xf32> -> vector<64x64xf32>
    %c2 = arith.constant 2 : index
    %c0_22 = arith.constant 0 : index
    %c0_23 = arith.constant 0 : index
    %c0_24 = arith.constant 0 : index
    %31 = vector.load %arg5[%c2, %c0_22, %c0_23, %c0_24] : memref<4x4x128x64xbf16, #tpu.memory_space<vmem>>, vector<1x1x128x64xbf16>
    %32 = vector.shape_cast %31 : vector<1x1x128x64xbf16> to vector<128x64xbf16>
    %cst_25 = arith.constant dense<0.000000e+00> : vector<64x64xf32>
    %33 = tpu.matmul %24, %32, %cst_25 {dimension_numbers = #tpu.dot_dimension_numbers<[1], [0], [0], [1], [0, 0, 1, 1], [], []>} : vector<64x128xbf16>, vector<128x64xbf16>, vector<64x64xf32> -> vector<64x64xf32>
    %c3 = arith.constant 3 : index
    %c0_26 = arith.constant 0 : index
    %c0_27 = arith.constant 0 : index
    %c0_28 = arith.constant 0 : index
    %34 = vector.load %arg5[%c3, %c0_26, %c0_27, %c0_28] : memref<4x4x128x64xbf16, #tpu.memory_space<vmem>>, vector<1x1x128x64xbf16>
    %35 = vector.shape_cast %34 : vector<1x1x128x64xbf16> to vector<128x64xbf16>
    %cst_29 = arith.constant dense<0.000000e+00> : vector<64x64xf32>
    %36 = tpu.matmul %24, %35, %cst_29 {dimension_numbers = #tpu.dot_dimension_numbers<[1], [0], [0], [1], [0, 0, 1, 1], [], []>} : vector<64x128xbf16>, vector<128x64xbf16>, vector<64x64xf32> -> vector<64x64xf32>
    %c0_30 = arith.constant 0 : index
    %c1_31 = arith.constant 1 : index
    %c0_32 = arith.constant 0 : index
    %c0_33 = arith.constant 0 : index
    %37 = vector.load %arg1[%c0_30, %c1_31, %c0_32, %c0_33] : memref<1x4x64x36xbf16, #tpu.memory_space<vmem>>, vector<1x1x64x36xbf16>
    %38 = vector.shape_cast %37 : vector<1x1x64x36xbf16> to vector<1x64x36xbf16>
    %39 = vector.shape_cast %38 : vector<1x64x36xbf16> to vector<64x36xbf16>
    %cst_34 = arith.constant dense<0.000000e+00> : vector<64x512xf32>
    %40 = tpu.matmul %39, %0, %cst_34 {dimension_numbers = #tpu.dot_dimension_numbers<[1], [0], [0], [1], [0, 0, 1, 1], [], []>} : vector<64x36xbf16>, vector<36x512xbf16>, vector<64x512xf32> -> vector<64x512xf32>
    %41 = vector.extract_strided_slice %40 {offsets = [0, 0], sizes = [64, 128], strides = [1, 1]} : vector<64x512xf32> to vector<64x128xf32>
    %42 = vector.extract_strided_slice %40 {offsets = [0, 128], sizes = [64, 128], strides = [1, 1]} : vector<64x512xf32> to vector<64x128xf32>
    %43 = arith.maximumf %41, %42 : vector<64x128xf32>
    %44 = vector.extract_strided_slice %40 {offsets = [0, 256], sizes = [64, 128], strides = [1, 1]} : vector<64x512xf32> to vector<64x128xf32>
    %45 = vector.extract_strided_slice %40 {offsets = [0, 384], sizes = [64, 128], strides = [1, 1]} : vector<64x512xf32> to vector<64x128xf32>
    %46 = arith.maximumf %44, %45 : vector<64x128xf32>
    %47 = arith.maximumf %43, %46 : vector<64x128xf32>
    %48 = vector.broadcast %1 : vector<1x128xf32> to vector<64x128xf32>
    %49 = arith.addf %47, %48 : vector<64x128xf32>
    %cst_35 = arith.constant 0.000000e+00 : f32
    %50 = vector.broadcast %cst_35 : f32 to vector<64x128xf32>
    %51 = arith.maximumf %49, %50 : vector<64x128xf32>
    %52 = vector.shape_cast %51 : vector<64x128xf32> to vector<1x64x128xf32>
    %c1_36 = arith.constant 1 : index
    %c0_37 = arith.constant 0 : index
    %c0_38 = arith.constant 0 : index
    %53 = vector.load %arg4[%c1_36, %c0_37, %c0_38] : memref<4x64x128xf32, #tpu.memory_space<vmem>>, vector<1x64x128xf32>
    %54 = vector.shape_cast %53 : vector<1x64x128xf32> to vector<64x128xf32>
    %55 = vector.shape_cast %54 : vector<64x128xf32> to vector<1x64x128xf32>
    %56 = arith.mulf %52, %55 : vector<1x64x128xf32>
    %57 = vector.shape_cast %56 : vector<1x64x128xf32> to vector<64x128xf32>
    %58 = arith.truncf %57 : vector<64x128xf32> to vector<64x128xbf16>
    %c0_39 = arith.constant 0 : index
    %c1_40 = arith.constant 1 : index
    %c0_41 = arith.constant 0 : index
    %c0_42 = arith.constant 0 : index
    %59 = vector.load %arg5[%c0_39, %c1_40, %c0_41, %c0_42] : memref<4x4x128x64xbf16, #tpu.memory_space<vmem>>, vector<1x1x128x64xbf16>
    %60 = vector.shape_cast %59 : vector<1x1x128x64xbf16> to vector<128x64xbf16>
    %cst_43 = arith.constant dense<0.000000e+00> : vector<64x64xf32>
    %61 = tpu.matmul %58, %60, %cst_43 {dimension_numbers = #tpu.dot_dimension_numbers<[1], [0], [0], [1], [0, 0, 1, 1], [], []>} : vector<64x128xbf16>, vector<128x64xbf16>, vector<64x64xf32> -> vector<64x64xf32>
    %c1_44 = arith.constant 1 : index
    %c1_45 = arith.constant 1 : index
    %c0_46 = arith.constant 0 : index
    %c0_47 = arith.constant 0 : index
    %62 = vector.load %arg5[%c1_44, %c1_45, %c0_46, %c0_47] : memref<4x4x128x64xbf16, #tpu.memory_space<vmem>>, vector<1x1x128x64xbf16>
    %63 = vector.shape_cast %62 : vector<1x1x128x64xbf16> to vector<128x64xbf16>
    %cst_48 = arith.constant dense<0.000000e+00> : vector<64x64xf32>
    %64 = tpu.matmul %58, %63, %cst_48 {dimension_numbers = #tpu.dot_dimension_numbers<[1], [0], [0], [1], [0, 0, 1, 1], [], []>} : vector<64x128xbf16>, vector<128x64xbf16>, vector<64x64xf32> -> vector<64x64xf32>
    %c2_49 = arith.constant 2 : index
    %c1_50 = arith.constant 1 : index
    %c0_51 = arith.constant 0 : index
    %c0_52 = arith.constant 0 : index
    %65 = vector.load %arg5[%c2_49, %c1_50, %c0_51, %c0_52] : memref<4x4x128x64xbf16, #tpu.memory_space<vmem>>, vector<1x1x128x64xbf16>
    %66 = vector.shape_cast %65 : vector<1x1x128x64xbf16> to vector<128x64xbf16>
    %cst_53 = arith.constant dense<0.000000e+00> : vector<64x64xf32>
    %67 = tpu.matmul %58, %66, %cst_53 {dimension_numbers = #tpu.dot_dimension_numbers<[1], [0], [0], [1], [0, 0, 1, 1], [], []>} : vector<64x128xbf16>, vector<128x64xbf16>, vector<64x64xf32> -> vector<64x64xf32>
    %c3_54 = arith.constant 3 : index
    %c1_55 = arith.constant 1 : index
    %c0_56 = arith.constant 0 : index
    %c0_57 = arith.constant 0 : index
    %68 = vector.load %arg5[%c3_54, %c1_55, %c0_56, %c0_57] : memref<4x4x128x64xbf16, #tpu.memory_space<vmem>>, vector<1x1x128x64xbf16>
    %69 = vector.shape_cast %68 : vector<1x1x128x64xbf16> to vector<128x64xbf16>
    %cst_58 = arith.constant dense<0.000000e+00> : vector<64x64xf32>
    %70 = tpu.matmul %58, %69, %cst_58 {dimension_numbers = #tpu.dot_dimension_numbers<[1], [0], [0], [1], [0, 0, 1, 1], [], []>} : vector<64x128xbf16>, vector<128x64xbf16>, vector<64x64xf32> -> vector<64x64xf32>
    %71 = arith.addf %27, %61 : vector<64x64xf32>
    %72 = arith.addf %30, %64 : vector<64x64xf32>
    %73 = arith.addf %33, %67 : vector<64x64xf32>
    %74 = arith.addf %36, %70 : vector<64x64xf32>
    %c0_59 = arith.constant 0 : index
    %c2_60 = arith.constant 2 : index
    %c0_61 = arith.constant 0 : index
    %c0_62 = arith.constant 0 : index
    %75 = vector.load %arg1[%c0_59, %c2_60, %c0_61, %c0_62] : memref<1x4x64x36xbf16, #tpu.memory_space<vmem>>, vector<1x1x64x36xbf16>
    %76 = vector.shape_cast %75 : vector<1x1x64x36xbf16> to vector<1x64x36xbf16>
    %77 = vector.shape_cast %76 : vector<1x64x36xbf16> to vector<64x36xbf16>
    %cst_63 = arith.constant dense<0.000000e+00> : vector<64x512xf32>
    %78 = tpu.matmul %77, %0, %cst_63 {dimension_numbers = #tpu.dot_dimension_numbers<[1], [0], [0], [1], [0, 0, 1, 1], [], []>} : vector<64x36xbf16>, vector<36x512xbf16>, vector<64x512xf32> -> vector<64x512xf32>
    %79 = vector.extract_strided_slice %78 {offsets = [0, 0], sizes = [64, 128], strides = [1, 1]} : vector<64x512xf32> to vector<64x128xf32>
    %80 = vector.extract_strided_slice %78 {offsets = [0, 128], sizes = [64, 128], strides = [1, 1]} : vector<64x512xf32> to vector<64x128xf32>
    %81 = arith.maximumf %79, %80 : vector<64x128xf32>
    %82 = vector.extract_strided_slice %78 {offsets = [0, 256], sizes = [64, 128], strides = [1, 1]} : vector<64x512xf32> to vector<64x128xf32>
    %83 = vector.extract_strided_slice %78 {offsets = [0, 384], sizes = [64, 128], strides = [1, 1]} : vector<64x512xf32> to vector<64x128xf32>
    %84 = arith.maximumf %82, %83 : vector<64x128xf32>
    %85 = arith.maximumf %81, %84 : vector<64x128xf32>
    %86 = vector.broadcast %1 : vector<1x128xf32> to vector<64x128xf32>
    %87 = arith.addf %85, %86 : vector<64x128xf32>
    %cst_64 = arith.constant 0.000000e+00 : f32
    %88 = vector.broadcast %cst_64 : f32 to vector<64x128xf32>
    %89 = arith.maximumf %87, %88 : vector<64x128xf32>
    %90 = vector.shape_cast %89 : vector<64x128xf32> to vector<1x64x128xf32>
    %c2_65 = arith.constant 2 : index
    %c0_66 = arith.constant 0 : index
    %c0_67 = arith.constant 0 : index
    %91 = vector.load %arg4[%c2_65, %c0_66, %c0_67] : memref<4x64x128xf32, #tpu.memory_space<vmem>>, vector<1x64x128xf32>
    %92 = vector.shape_cast %91 : vector<1x64x128xf32> to vector<64x128xf32>
    %93 = vector.shape_cast %92 : vector<64x128xf32> to vector<1x64x128xf32>
    %94 = arith.mulf %90, %93 : vector<1x64x128xf32>
    %95 = vector.shape_cast %94 : vector<1x64x128xf32> to vector<64x128xf32>
    %96 = arith.truncf %95 : vector<64x128xf32> to vector<64x128xbf16>
    %c0_68 = arith.constant 0 : index
    %c2_69 = arith.constant 2 : index
    %c0_70 = arith.constant 0 : index
    %c0_71 = arith.constant 0 : index
    %97 = vector.load %arg5[%c0_68, %c2_69, %c0_70, %c0_71] : memref<4x4x128x64xbf16, #tpu.memory_space<vmem>>, vector<1x1x128x64xbf16>
    %98 = vector.shape_cast %97 : vector<1x1x128x64xbf16> to vector<128x64xbf16>
    %cst_72 = arith.constant dense<0.000000e+00> : vector<64x64xf32>
    %99 = tpu.matmul %96, %98, %cst_72 {dimension_numbers = #tpu.dot_dimension_numbers<[1], [0], [0], [1], [0, 0, 1, 1], [], []>} : vector<64x128xbf16>, vector<128x64xbf16>, vector<64x64xf32> -> vector<64x64xf32>
    %c1_73 = arith.constant 1 : index
    %c2_74 = arith.constant 2 : index
    %c0_75 = arith.constant 0 : index
    %c0_76 = arith.constant 0 : index
    %100 = vector.load %arg5[%c1_73, %c2_74, %c0_75, %c0_76] : memref<4x4x128x64xbf16, #tpu.memory_space<vmem>>, vector<1x1x128x64xbf16>
    %101 = vector.shape_cast %100 : vector<1x1x128x64xbf16> to vector<128x64xbf16>
    %cst_77 = arith.constant dense<0.000000e+00> : vector<64x64xf32>
    %102 = tpu.matmul %96, %101, %cst_77 {dimension_numbers = #tpu.dot_dimension_numbers<[1], [0], [0], [1], [0, 0, 1, 1], [], []>} : vector<64x128xbf16>, vector<128x64xbf16>, vector<64x64xf32> -> vector<64x64xf32>
    %c2_78 = arith.constant 2 : index
    %c2_79 = arith.constant 2 : index
    %c0_80 = arith.constant 0 : index
    %c0_81 = arith.constant 0 : index
    %103 = vector.load %arg5[%c2_78, %c2_79, %c0_80, %c0_81] : memref<4x4x128x64xbf16, #tpu.memory_space<vmem>>, vector<1x1x128x64xbf16>
    %104 = vector.shape_cast %103 : vector<1x1x128x64xbf16> to vector<128x64xbf16>
    %cst_82 = arith.constant dense<0.000000e+00> : vector<64x64xf32>
    %105 = tpu.matmul %96, %104, %cst_82 {dimension_numbers = #tpu.dot_dimension_numbers<[1], [0], [0], [1], [0, 0, 1, 1], [], []>} : vector<64x128xbf16>, vector<128x64xbf16>, vector<64x64xf32> -> vector<64x64xf32>
    %c3_83 = arith.constant 3 : index
    %c2_84 = arith.constant 2 : index
    %c0_85 = arith.constant 0 : index
    %c0_86 = arith.constant 0 : index
    %106 = vector.load %arg5[%c3_83, %c2_84, %c0_85, %c0_86] : memref<4x4x128x64xbf16, #tpu.memory_space<vmem>>, vector<1x1x128x64xbf16>
    %107 = vector.shape_cast %106 : vector<1x1x128x64xbf16> to vector<128x64xbf16>
    %cst_87 = arith.constant dense<0.000000e+00> : vector<64x64xf32>
    %108 = tpu.matmul %96, %107, %cst_87 {dimension_numbers = #tpu.dot_dimension_numbers<[1], [0], [0], [1], [0, 0, 1, 1], [], []>} : vector<64x128xbf16>, vector<128x64xbf16>, vector<64x64xf32> -> vector<64x64xf32>
    %109 = arith.addf %71, %99 : vector<64x64xf32>
    %110 = arith.addf %72, %102 : vector<64x64xf32>
    %111 = arith.addf %73, %105 : vector<64x64xf32>
    %112 = arith.addf %74, %108 : vector<64x64xf32>
    %c0_88 = arith.constant 0 : index
    %c3_89 = arith.constant 3 : index
    %c0_90 = arith.constant 0 : index
    %c0_91 = arith.constant 0 : index
    %113 = vector.load %arg1[%c0_88, %c3_89, %c0_90, %c0_91] : memref<1x4x64x36xbf16, #tpu.memory_space<vmem>>, vector<1x1x64x36xbf16>
    %114 = vector.shape_cast %113 : vector<1x1x64x36xbf16> to vector<1x64x36xbf16>
    %115 = vector.shape_cast %114 : vector<1x64x36xbf16> to vector<64x36xbf16>
    %cst_92 = arith.constant dense<0.000000e+00> : vector<64x512xf32>
    %116 = tpu.matmul %115, %0, %cst_92 {dimension_numbers = #tpu.dot_dimension_numbers<[1], [0], [0], [1], [0, 0, 1, 1], [], []>} : vector<64x36xbf16>, vector<36x512xbf16>, vector<64x512xf32> -> vector<64x512xf32>
    %117 = vector.extract_strided_slice %116 {offsets = [0, 0], sizes = [64, 128], strides = [1, 1]} : vector<64x512xf32> to vector<64x128xf32>
    %118 = vector.extract_strided_slice %116 {offsets = [0, 128], sizes = [64, 128], strides = [1, 1]} : vector<64x512xf32> to vector<64x128xf32>
    %119 = arith.maximumf %117, %118 : vector<64x128xf32>
    %120 = vector.extract_strided_slice %116 {offsets = [0, 256], sizes = [64, 128], strides = [1, 1]} : vector<64x512xf32> to vector<64x128xf32>
    %121 = vector.extract_strided_slice %116 {offsets = [0, 384], sizes = [64, 128], strides = [1, 1]} : vector<64x512xf32> to vector<64x128xf32>
    %122 = arith.maximumf %120, %121 : vector<64x128xf32>
    %123 = arith.maximumf %119, %122 : vector<64x128xf32>
    %124 = vector.broadcast %1 : vector<1x128xf32> to vector<64x128xf32>
    %125 = arith.addf %123, %124 : vector<64x128xf32>
    %cst_93 = arith.constant 0.000000e+00 : f32
    %126 = vector.broadcast %cst_93 : f32 to vector<64x128xf32>
    %127 = arith.maximumf %125, %126 : vector<64x128xf32>
    %128 = vector.shape_cast %127 : vector<64x128xf32> to vector<1x64x128xf32>
    %c3_94 = arith.constant 3 : index
    %c0_95 = arith.constant 0 : index
    %c0_96 = arith.constant 0 : index
    %129 = vector.load %arg4[%c3_94, %c0_95, %c0_96] : memref<4x64x128xf32, #tpu.memory_space<vmem>>, vector<1x64x128xf32>
    %130 = vector.shape_cast %129 : vector<1x64x128xf32> to vector<64x128xf32>
    %131 = vector.shape_cast %130 : vector<64x128xf32> to vector<1x64x128xf32>
    %132 = arith.mulf %128, %131 : vector<1x64x128xf32>
    %133 = vector.shape_cast %132 : vector<1x64x128xf32> to vector<64x128xf32>
    %134 = arith.truncf %133 : vector<64x128xf32> to vector<64x128xbf16>
    %c0_97 = arith.constant 0 : index
    %c3_98 = arith.constant 3 : index
    %c0_99 = arith.constant 0 : index
    %c0_100 = arith.constant 0 : index
    %135 = vector.load %arg5[%c0_97, %c3_98, %c0_99, %c0_100] : memref<4x4x128x64xbf16, #tpu.memory_space<vmem>>, vector<1x1x128x64xbf16>
    %136 = vector.shape_cast %135 : vector<1x1x128x64xbf16> to vector<128x64xbf16>
    %cst_101 = arith.constant dense<0.000000e+00> : vector<64x64xf32>
    %137 = tpu.matmul %134, %136, %cst_101 {dimension_numbers = #tpu.dot_dimension_numbers<[1], [0], [0], [1], [0, 0, 1, 1], [], []>} : vector<64x128xbf16>, vector<128x64xbf16>, vector<64x64xf32> -> vector<64x64xf32>
    %c1_102 = arith.constant 1 : index
    %c3_103 = arith.constant 3 : index
    %c0_104 = arith.constant 0 : index
    %c0_105 = arith.constant 0 : index
    %138 = vector.load %arg5[%c1_102, %c3_103, %c0_104, %c0_105] : memref<4x4x128x64xbf16, #tpu.memory_space<vmem>>, vector<1x1x128x64xbf16>
    %139 = vector.shape_cast %138 : vector<1x1x128x64xbf16> to vector<128x64xbf16>
    %cst_106 = arith.constant dense<0.000000e+00> : vector<64x64xf32>
    %140 = tpu.matmul %134, %139, %cst_106 {dimension_numbers = #tpu.dot_dimension_numbers<[1], [0], [0], [1], [0, 0, 1, 1], [], []>} : vector<64x128xbf16>, vector<128x64xbf16>, vector<64x64xf32> -> vector<64x64xf32>
    %c2_107 = arith.constant 2 : index
    %c3_108 = arith.constant 3 : index
    %c0_109 = arith.constant 0 : index
    %c0_110 = arith.constant 0 : index
    %141 = vector.load %arg5[%c2_107, %c3_108, %c0_109, %c0_110] : memref<4x4x128x64xbf16, #tpu.memory_space<vmem>>, vector<1x1x128x64xbf16>
    %142 = vector.shape_cast %141 : vector<1x1x128x64xbf16> to vector<128x64xbf16>
    %cst_111 = arith.constant dense<0.000000e+00> : vector<64x64xf32>
    %143 = tpu.matmul %134, %142, %cst_111 {dimension_numbers = #tpu.dot_dimension_numbers<[1], [0], [0], [1], [0, 0, 1, 1], [], []>} : vector<64x128xbf16>, vector<128x64xbf16>, vector<64x64xf32> -> vector<64x64xf32>
    %c3_112 = arith.constant 3 : index
    %c3_113 = arith.constant 3 : index
    %c0_114 = arith.constant 0 : index
    %c0_115 = arith.constant 0 : index
    %144 = vector.load %arg5[%c3_112, %c3_113, %c0_114, %c0_115] : memref<4x4x128x64xbf16, #tpu.memory_space<vmem>>, vector<1x1x128x64xbf16>
    %145 = vector.shape_cast %144 : vector<1x1x128x64xbf16> to vector<128x64xbf16>
    %cst_116 = arith.constant dense<0.000000e+00> : vector<64x64xf32>
    %146 = tpu.matmul %134, %145, %cst_116 {dimension_numbers = #tpu.dot_dimension_numbers<[1], [0], [0], [1], [0, 0, 1, 1], [], []>} : vector<64x128xbf16>, vector<128x64xbf16>, vector<64x64xf32> -> vector<64x64xf32>
    %147 = arith.addf %109, %137 : vector<64x64xf32>
    %148 = arith.addf %110, %140 : vector<64x64xf32>
    %149 = arith.addf %111, %143 : vector<64x64xf32>
    %150 = arith.addf %112, %146 : vector<64x64xf32>
    %151 = arith.maximumf %147, %148 : vector<64x64xf32>
    %152 = arith.maximumf %149, %150 : vector<64x64xf32>
    %153 = arith.maximumf %151, %152 : vector<64x64xf32>
    %154 = vector.broadcast %2 : vector<1x64xf32> to vector<64x64xf32>
    %155 = arith.addf %153, %154 : vector<64x64xf32>
    %cst_117 = arith.constant 0.000000e+00 : f32
    %156 = vector.broadcast %cst_117 : f32 to vector<64x64xf32>
    %157 = arith.maximumf %155, %156 : vector<64x64xf32>
    %158 = arith.truncf %157 : vector<64x64xf32> to vector<64x64xbf16>
    %159 = vector.shape_cast %158 : vector<64x64xbf16> to vector<1x64x64xbf16>
    %c0_118 = arith.constant 0 : index
    %c0_119 = arith.constant 0 : index
    %c0_120 = arith.constant 0 : index
    %160 = vector.load %arg7[%c0_118, %c0_119, %c0_120] : memref<1x64x64xbf16, #tpu.memory_space<vmem>>, vector<1x64x64xbf16>
    tpu.vector_store %arg7[%c0_118, %c0_119, %c0_120], %159 {strides = array<i32>} : memref<1x64x64xbf16, #tpu.memory_space<vmem>>, vector<1x64x64xbf16>,
    return
  }
  func.func @transform_0(%arg0: i32) -> (i32, i32, i32, i32) {
    %c0_i32 = arith.constant 0 : i32
    %c0_i32_0 = arith.constant 0 : i32
    %c0_i32_1 = arith.constant 0 : i32
    %c0_i32_2 = arith.constant 0 : i32
    return %arg0, %c0_i32, %c0_i32_0, %c0_i32_1 : i32, i32, i32, i32
  }
  func.func @transform_1(%arg0: i32) -> (i32, i32) {
    %c0_i32 = arith.constant 0 : i32
    %c0_i32_0 = arith.constant 0 : i32
    %c0_i32_1 = arith.constant 0 : i32
    return %c0_i32, %c0_i32_0 : i32, i32
  }
  func.func @transform_2(%arg0: i32) -> (i32, i32) {
    %c0_i32 = arith.constant 0 : i32
    %c0_i32_0 = arith.constant 0 : i32
    %c0_i32_1 = arith.constant 0 : i32
    return %c0_i32, %c0_i32_0 : i32, i32
  }
  func.func @transform_3(%arg0: i32) -> (i32, i32, i32) {
    %c0_i32 = arith.constant 0 : i32
    %c0_i32_0 = arith.constant 0 : i32
    %c0_i32_1 = arith.constant 0 : i32
    %c0_i32_2 = arith.constant 0 : i32
    return %c0_i32, %c0_i32_0, %c0_i32_1 : i32, i32, i32
  }
  func.func @transform_4(%arg0: i32) -> (i32, i32, i32, i32) {
    %c0_i32 = arith.constant 0 : i32
    %c0_i32_0 = arith.constant 0 : i32
    %c0_i32_1 = arith.constant 0 : i32
    %c0_i32_2 = arith.constant 0 : i32
    %c0_i32_3 = arith.constant 0 : i32
    return %c0_i32, %c0_i32_0, %c0_i32_1, %c0_i32_2 : i32, i32, i32, i32
  }
  func.func @transform_5(%arg0: i32) -> (i32, i32) {
    %c0_i32 = arith.constant 0 : i32
    %c0_i32_0 = arith.constant 0 : i32
    %c0_i32_1 = arith.constant 0 : i32
    return %c0_i32, %c0_i32_0 : i32, i32
  }
  func.func @transform_6(%arg0: i32) -> (i32, i32, i32) {
    %c0_i32 = arith.constant 0 : i32
    %c0_i32_0 = arith.constant 0 : i32
    %c0_i32_1 = arith.constant 0 : i32
    return %arg0, %c0_i32, %c0_i32_0 : i32, i32, i32
  }
}

module attributes {stable_mosaic.version = 11 : i64} {
  func.func @_fc_kernel(%arg0: i32, %arg1: memref<1x1x4096xbf16, #tpu.memory_space<vmem>>, %arg2: memref<4096x128xbf16, #tpu.memory_space<vmem>>, %arg3: memref<1x128xf32, #tpu.memory_space<vmem>>, %arg4: memref<1x128xf32, #tpu.memory_space<vmem>>, %arg5: memref<1x1xf32, #tpu.memory_space<vmem>>, %arg6: memref<1x1x1xf32, #tpu.memory_space<vmem>>) attributes {dimension_semantics = [#tpu.dimension_semantics<parallel>], iteration_bounds = array<i64: 2>, scalar_prefetch = 0 : i64, scratch_operands = 0 : i64, tpu.core_type = #tpu.core_type<tc>, window_params = [{transform_indices = @transform_0, window_bounds = array<i64: 1, 1, 4096>}, {pipeline_mode = #tpu.pipeline_mode<synchronous>, transform_indices = @transform_1, window_bounds = array<i64: 4096, 128>}, {pipeline_mode = #tpu.pipeline_mode<synchronous>, transform_indices = @transform_2, window_bounds = array<i64: 1, 128>}, {pipeline_mode = #tpu.pipeline_mode<synchronous>, transform_indices = @transform_3, window_bounds = array<i64: 1, 128>}, {pipeline_mode = #tpu.pipeline_mode<synchronous>, transform_indices = @transform_4, window_bounds = array<i64: 1, 1>}, {transform_indices = @transform_5, window_bounds = array<i64: 1, 1, 1>}]} {
    %c0 = arith.constant 0 : index
    %c0_0 = arith.constant 0 : index
    %c0_1 = arith.constant 0 : index
    %0 = vector.load %arg1[%c0, %c0_0, %c0_1] : memref<1x1x4096xbf16, #tpu.memory_space<vmem>>, vector<1x1x4096xbf16>
    %1 = vector.shape_cast %0 : vector<1x1x4096xbf16> to vector<1x4096xbf16>
    %c0_2 = arith.constant 0 : index
    %c0_3 = arith.constant 0 : index
    %2 = vector.load %arg2[%c0_2, %c0_3] : memref<4096x128xbf16, #tpu.memory_space<vmem>>, vector<4096x128xbf16>
    %cst = arith.constant dense<0.000000e+00> : vector<1x128xf32>
    %3 = tpu.matmul %1, %2, %cst {dimension_numbers = #tpu.dot_dimension_numbers<[1], [0], [0], [1], [0, 0, 1, 1], [], []>} : vector<1x4096xbf16>, vector<4096x128xbf16>, vector<1x128xf32> -> vector<1x128xf32>
    %c0_4 = arith.constant 0 : index
    %c0_5 = arith.constant 0 : index
    %4 = vector.load %arg3[%c0_4, %c0_5] : memref<1x128xf32, #tpu.memory_space<vmem>>, vector<1x128xf32>
    %5 = arith.addf %3, %4 : vector<1x128xf32>
    %cst_6 = arith.constant 0.000000e+00 : f32
    %6 = vector.broadcast %cst_6 : f32 to vector<1x128xf32>
    %7 = arith.maximumf %5, %6 : vector<1x128xf32>
    %c0_7 = arith.constant 0 : index
    %c0_8 = arith.constant 0 : index
    %8 = vector.load %arg4[%c0_7, %c0_8] : memref<1x128xf32, #tpu.memory_space<vmem>>, vector<1x128xf32>
    %9 = arith.mulf %7, %8 : vector<1x128xf32>
    %cst_9 = arith.constant dense<0.000000e+00> : vector<1xf32>
    %10 = vector.multi_reduction <add>, %9, %cst_9 [1] : vector<1x128xf32> to vector<1xf32>
    %11 = vector.shape_cast %10 : vector<1xf32> to vector<1x1xf32>
    %c0_10 = arith.constant 0 : index
    %c0_11 = arith.constant 0 : index
    %12 = vector.load %arg5[%c0_10, %c0_11] : memref<1x1xf32, #tpu.memory_space<vmem>>, vector<1x1xf32>
    %13 = arith.addf %11, %12 : vector<1x1xf32>
    %cst_12 = arith.constant 0.000000e+00 : f32
    %14 = vector.broadcast %cst_12 : f32 to vector<1x1xf32>
    %15 = arith.subf %14, %13 : vector<1x1xf32>
    %16 = math.exp %15 : vector<1x1xf32>
    %cst_13 = arith.constant 1.000000e+00 : f32
    %17 = vector.broadcast %cst_13 : f32 to vector<1x1xf32>
    %18 = arith.addf %17, %16 : vector<1x1xf32>
    %19 = tpu.reciprocal %18 {approx = true} : vector<1x1xf32> -> vector<1x1xf32>
    %cst_14 = arith.constant 1.000000e+00 : f32
    %20 = vector.broadcast %cst_14 : f32 to vector<1x1xf32>
    %21 = arith.minimumf %19, %20 : vector<1x1xf32>
    %22 = vector.shape_cast %21 : vector<1x1xf32> to vector<1x1x1xf32>
    %c0_15 = arith.constant 0 : index
    %c0_16 = arith.constant 0 : index
    %c0_17 = arith.constant 0 : index
    %23 = vector.load %arg6[%c0_15, %c0_16, %c0_17] : memref<1x1x1xf32, #tpu.memory_space<vmem>>, vector<1x1x1xf32>
    tpu.vector_store %arg6[%c0_15, %c0_16, %c0_17], %22 {strides = array<i32>} : memref<1x1x1xf32, #tpu.memory_space<vmem>>, vector<1x1x1xf32>,
    return
  }
  func.func @transform_0(%arg0: i32) -> (i32, i32, i32) {
    %c0_i32 = arith.constant 0 : i32
    %c0_i32_0 = arith.constant 0 : i32
    %c0_i32_1 = arith.constant 0 : i32
    return %arg0, %c0_i32, %c0_i32_0 : i32, i32, i32
  }
  func.func @transform_1(%arg0: i32) -> (i32, i32) {
    %c0_i32 = arith.constant 0 : i32
    %c0_i32_0 = arith.constant 0 : i32
    %c0_i32_1 = arith.constant 0 : i32
    return %c0_i32, %c0_i32_0 : i32, i32
  }
  func.func @transform_2(%arg0: i32) -> (i32, i32) {
    %c0_i32 = arith.constant 0 : i32
    %c0_i32_0 = arith.constant 0 : i32
    %c0_i32_1 = arith.constant 0 : i32
    return %c0_i32, %c0_i32_0 : i32, i32
  }
  func.func @transform_3(%arg0: i32) -> (i32, i32) {
    %c0_i32 = arith.constant 0 : i32
    %c0_i32_0 = arith.constant 0 : i32
    %c0_i32_1 = arith.constant 0 : i32
    return %c0_i32, %c0_i32_0 : i32, i32
  }
  func.func @transform_4(%arg0: i32) -> (i32, i32) {
    %c0_i32 = arith.constant 0 : i32
    %c0_i32_0 = arith.constant 0 : i32
    %c0_i32_1 = arith.constant 0 : i32
    return %c0_i32, %c0_i32_0 : i32, i32
  }
  func.func @transform_5(%arg0: i32) -> (i32, i32, i32) {
    %c0_i32 = arith.constant 0 : i32
    %c0_i32_0 = arith.constant 0 : i32
    %c0_i32_1 = arith.constant 0 : i32
    return %arg0, %c0_i32, %c0_i32_0 : i32, i32, i32
  }
}

</mosaic_0001>

<bundles_post_ra>
// kernel: classical_cnn_forward.2
= control target key start
LH: loop header
LB: loop body
LE: loop exit
PB: predicated region body
PF: predicated region fallthrough
CT: control target
= control target key end

     0   :  { %s4063_s21 = smov 0   ;;  %s5201_s0 = inlined_call_operand.vmem [shape: bf16[2,4,64,36], index: 0, kind: input, shape index: {}]   ;;  %s5202_s1 = inlined_call_operand.vmem [shape: bf16[36,512], index: 1, kind: input, shape index: {}]   ;;  %s5203_s2 = inlined_call_operand.vmem [shape: f32[1,128], index: 2, kind: input, shape index: {}]   ;;  %s5204_s3 = inlined_call_operand.vmem [shape: f32[4,64,128], index: 3, kind: input, shape index: {}]   ;;  %s5205_s4 = inlined_call_operand.vmem [shape: bf16[4,4,128,64], index: 4, kind: input, shape index: {}]   ;;  %s5206_s5 = inlined_call_operand.vmem [shape: f32[1,64], index: 5, kind: input, shape index: {}]   ;;  %s5207_s6 = inlined_call_operand.vmem [shape: bf16[2,64,64], index: 6, kind: output, shape index: {}]  }
   0x1 LB: > { %s2884_s22 = sadd.s32 4294967295, %s4026_s21   ;;  %p2888_p0 = scmp.ge.s32.totalorder %s4026_s21, 1  ;;  %s4026_s21 = sphi %s4063_s21, %s16_s21  }
   0x2   : > { %p212_p1 = scmp.lt.s32.totalorder %s4026_s21, 3 }
   0x4   : > { %p213_p2 = pnand %p2888_p0, %p212_p1 }
   0x6   : > { %216 = sbr.rel (%p213_p2) target bundleno = 945 (0x3b1), region = 44 }
   0xb   : > { %v261_v0 = vld [vmem:[%s5202_s1 + $0x40] sm:$0x33]  ;;  %v262_v1 = vld [vmem:[%s5202_s1 + $0x48] sm:$0x33]  ;;  %vm356_vm0 = vcmask 1041408   ;;  %p4085_p3 = scmp.lt.s32.totalorder %s2884_s22, 1 }
   0xc   : > { %v319_v2 = vunpack.c.l.b16 %v261_v0  ;;  %v320_v3 = vunpack.c.h.b16 %v261_v0  ;;  %v321_v4 = vunpack.c.l.b16 %v262_v1  ;;  %v322_v5 = vunpack.c.h.b16 %v262_v1  ;;  %v2927_v6 = vld [vmem:[%s5202_s1 + $0x20] sm:$0xf]  ;;  %v3863_v7 = vld [vmem:[%s5202_s1 + $0x2c] sm:$0xf0]  ;;  %v3861_v12 = vld [vmem:[%s5202_s1 + $0x24] sm:$0xf] }
   0xd   : > { %v2929_v13 = vld [vmem:[%s5202_s1 + $0x30] sm:$0xf0]  ;;  %v2935_v14 = vld [vmem:[%s5202_s1 + $0x28] sm:$0xf]  ;;  %v3864_v15 = vld [vmem:[%s5202_s1 + $0x34] sm:$0xf0]  ;;  %v4127_v24 = vor.u32 %v3863_v7, %v2927_v6 }
   0xe   : > { %v331_v8 = vpack.c.b16 %v319_v2, %v319_v2  ;;  %v332_v9 = vpack.c.b16 %v320_v3, %v320_v3  ;;  %v333_v10 = vpack.c.b16 %v321_v4, %v321_v4  ;;  %v334_v11 = vpack.c.b16 %v322_v5, %v322_v5  ;;  %v3862_v16 = vld [vmem:[%s5202_s1 + $0x2c] sm:$0xf]  ;;  %v2937_v17 = vld [vmem:[%s5202_s1 + $0x38] sm:$0xf0]  ;;  %v2911_v22 = vld [vmem:[%s5202_s1] sm:$0xf] }
   0xf   : > { %v3859_v23 = vld [vmem:[%s5202_s1 + $0xc] sm:$0xf0]  ;;  %v4129_v25 = vor.u32 %v3861_v12, %v2929_v13  ;;  %v3857_v26 = vld [vmem:[%s5202_s1 + $0x4] sm:$0xf]  ;;  %v2913_v27 = vld [vmem:[%s5202_s1 + $0x10] sm:$0xf0]  ;;  %v4142_v29 = vor.u32 %v3864_v15, %v2935_v14  ;;  %v4144_v30 = vor.u32 %v3862_v16, %v2937_v17 }
  0x10   : > { %v4108_v18 = vsel %vm356_vm0, %v331_v8, 0  ;;  %v4111_v19 = vsel %vm356_vm0, %v332_v9, 0  ;;  %v4114_v20 = vsel %vm356_vm0, %v333_v10, 0  ;;  %v4117_v21 = vsel %vm356_vm0, %v334_v11, 0  ;;  %v2919_v28 = vld [vmem:[%s5202_s1 + $0x8] sm:$0xf] }
  0x11   : > { %374 = vmatpush.bf16.msra.mxu0 %v4108_v18  ;;  %403 = vmatpush.bf16.msra.mxu1 %v4111_v19  ;;  %s5258_s22 = smov (!%p4085_p3, %s2884_s22), 1  ;;  %v3860_v31 = vld [vmem:[%s5202_s1 + $0x14] sm:$0xf0]  ;;  %v3858_v32 = vld [vmem:[%s5202_s1 + $0xc] sm:$0xf]  ;;  %v4164_v34 = vor.u32 %v3859_v23, %v2911_v22  ;;  %v4166_v35 = vor.u32 %v3857_v26, %v2913_v27  ;;  %vm343_vm1 = vcmask 293888  }
  0x12   : > { %432 = vmatpush.bf16.msra.mxu2 %v4114_v20  ;;  %461 = vmatpush.bf16.msra.mxu3 %v4117_v21  ;;  %v2921_v33 = vld [vmem:[%s5202_s1 + $0x18] sm:$0xf0]  ;;  %s3855_s15 = sshll.u32 %s5258_s22, 7  ;;  %v4175_v36 = vor.u32 %v3860_v31, %v2919_v28  ;;  %v3927_v58 = vld [vmem:[%s5205_s4 + $0x270] sm:$0xff]  ;;  %v3926_v3 = vld [vmem:[%s5205_s4 + $0x268] sm:$0xff]  ;;  %s3856_s27 = sshll.u32 %s5258_s22, 5 }
  0x13   : > { %s4171_s17 = scalar_lea.vmem %s5201_s0, %s3855_s15  ;;  %v4177_v37 = vor.u32 %v3858_v32, %v2921_v33  ;;  %v3928_v48 = vld [vmem:[%s5205_s4 + $0x278] sm:$0xff]  ;;  %v3935_v59 = vld [vmem:[%s5205_s4 + $0x370] sm:$0xff]  ;;  %v3934_v5 = vld [vmem:[%s5205_s4 + $0x368] sm:$0xff]  ;;  %s5125_s30 = scalar_lea.vmem %s5207_s6, %s3856_s27  ;;  %vm2820_vm2 = vcmask 519168  }
  0x14   : > { %v3865_v38 = vld [vmem:[%s4171_s17] sm:$0xff]  ;;  %v3866_v39 = vld [vmem:[%s4171_s17 + $0x8] sm:$0xff]  ;;  %v3867_v40 = vld [vmem:[%s4171_s17 + $0x10] sm:$0xff] }
  0x15   : > { %375 = vmatpush.bf16.msra.mxu0 %v4127_v24  ;;  %404 = vmatpush.bf16.msra.mxu1 %v4129_v25  ;;  %v3868_v41 = vld [vmem:[%s4171_s17 + $0x18] sm:$0xff]  ;;  %v3901_v42 = vld [vmem:[%s4171_s17 + $0x20] sm:$0xff]  ;;  %v3902_v43 = vld [vmem:[%s4171_s17 + $0x28] sm:$0xff] }
  0x16   : > { %433 = vmatpush.bf16.msra.mxu2 %v4142_v29  ;;  %462 = vmatpush.bf16.msra.mxu3 %v4144_v30  ;;  %v3903_v44 = vld [vmem:[%s4171_s17 + $0x30] sm:$0xff]  ;;  %v3904_v45 = vld [vmem:[%s4171_s17 + $0x38] sm:$0xff]  ;;  %v3910_v11 = vld [vmem:[%s5205_s4 + $0x68] sm:$0xff] }
  0x17   : > { %v3936_v49 = vld [vmem:[%s5205_s4 + $0x378] sm:$0xff]  ;;  %v3911_v1 = vld [vmem:[%s5205_s4 + $0x70] sm:$0xff]  ;;  %v3918_v12 = vld [vmem:[%s5205_s4 + $0x168] sm:$0xff] }
  0x18   : > { %v3912_v56 = vld [vmem:[%s5205_s4 + $0x78] sm:$0xff]  ;;  %v3919_v2 = vld [vmem:[%s5205_s4 + $0x170] sm:$0xff]  ;;  %v3925_v13 = vld [vmem:[%s5205_s4 + $0x260] sm:$0xff] }
  0x19   : > { %376 = vmatpush.bf16.msra.mxu0 %v4164_v34  ;;  %405 = vmatpush.bf16.msra.mxu1 %v4166_v35  ;;  %v3920_v57 = vld [vmem:[%s5205_s4 + $0x178] sm:$0xff]  ;;  %v3933_v14 = vld [vmem:[%s5205_s4 + $0x360] sm:$0xff] }
  0x1a   : > { %434 = vmatpush.bf16.msra.mxu2 %v4175_v36  ;;  %463 = vmatpush.bf16.msra.mxu3 %v4177_v37  ;;  %v3909_v26 = vld [vmem:[%s5205_s4 + $0x60] sm:$0xff]  ;;  %v3924_v28 = vld [vmem:[%s5205_s4 + $0x258] sm:$0xff] }
  0x1b   : > { %v3917_v27 = vld [vmem:[%s5205_s4 + $0x160] sm:$0xff]  ;;  %v3932_v32 = vld [vmem:[%s5205_s4 + $0x358] sm:$0xff] }
  0x1c   : > { %2941 = vmatmul.msk.bf16.vlgmr.msra.gmra.mxu0 %vm343_vm1, %v3865_v38  ;;  %2945 = vmatmul.msk.bf16.vlgmr.msra.gmra.mxu1 %vm343_vm1, %v3865_v38 }
  0x1d   : > { %2949 = vmatmul.msk.bf16.vlgmr.msra.gmra.mxu2 %vm343_vm1, %v3865_v38  ;;  %2953 = vmatmul.msk.bf16.vlgmr.msra.gmra.mxu3 %vm343_vm1, %v3865_v38 }
  0x1e   : > { %719 = vmatpush.bf16.msrb.mxu2 %v4114_v20  ;;  %748 = vmatpush.bf16.msrb.mxu3 %v4117_v21 }
  0x1f   : > { %661 = vmatpush.bf16.msrb.mxu0 %v4108_v18  ;;  %690 = vmatpush.bf16.msrb.mxu1 %v4111_v19 }
  0x22   : > { %720 = vmatpush.bf16.msrb.mxu2 %v4142_v29  ;;  %749 = vmatpush.bf16.msrb.mxu3 %v4144_v30 }
  0x23   : > { %662 = vmatpush.bf16.msrb.mxu0 %v4127_v24  ;;  %691 = vmatpush.bf16.msrb.mxu1 %v4129_v25 }
  0x26   : > { %721 = vmatpush.bf16.msrb.mxu2 %v4175_v36  ;;  %750 = vmatpush.bf16.msrb.mxu3 %v4177_v37 }
  0x27   : > { %663 = vmatpush.bf16.msrb.mxu0 %v4164_v34  ;;  %692 = vmatpush.bf16.msrb.mxu1 %v4166_v35 }
  0x2a   : > { %1086 = vmatpush.bf16.msra.mxu2 %v3928_v48  ;;  %1180 = vmatpush.bf16.msra.mxu3 %v3936_v49  ;;  %v3907_v49 = vld [vmem:[%s5205_s4 + $0x50] sm:$0xff] }
  0x2b   : > { %898 = vmatpush.bf16.msra.mxu0 %v3912_v56  ;;  %992 = vmatpush.bf16.msra.mxu1 %v3920_v57  ;;  %v3930_v56 = vld [vmem:[%s5205_s4 + $0x348] sm:$0xff] }
  0x2c   : > { %2942 = vmatmul.msk.bf16.gmra.mxu0 %vm343_vm1, %v3866_v39  ;;  %2946 = vmatmul.msk.bf16.gmra.mxu1 %vm343_vm1, %v3866_v39 }
  0x2d   : > { %2950 = vmatmul.msk.bf16.gmra.mxu2 %vm343_vm1, %v3866_v39  ;;  %2954 = vmatmul.msk.bf16.gmra.mxu3 %vm343_vm1, %v3866_v39 }
  0x2e   : > { %1087 = vmatpush.bf16.msra.mxu2 %v3927_v58  ;;  %1181 = vmatpush.bf16.msra.mxu3 %v3935_v59  ;;  %v3906_v58 = vld [vmem:[%s5205_s4 + $0x48] sm:$0xff] }
  0x2f   : > { %899 = vmatpush.bf16.msra.mxu0 %v3911_v1  ;;  %993 = vmatpush.bf16.msra.mxu1 %v3919_v2  ;;  %v3914_v59 = vld [vmem:[%s5205_s4 + $0x148] sm:$0xff]  ;;  %v3921_v1 = vld [vmem:[%s5205_s4 + $0x240] sm:$0xff] }
  0x30   : > { %v3929_v2 = vld [vmem:[%s5205_s4 + $0x340] sm:$0xff] }
  0x32   : > { %1088 = vmatpush.bf16.msra.mxu2 %v3926_v3  ;;  %1182 = vmatpush.bf16.msra.mxu3 %v3934_v5  ;;  %v3905_v3 = vld [vmem:[%s5205_s4 + $0x40] sm:$0xff] }
  0x33   : > { %900 = vmatpush.bf16.msra.mxu0 %v3910_v11  ;;  %994 = vmatpush.bf16.msra.mxu1 %v3918_v12 }
  0x36   : > { %1089 = vmatpush.bf16.msra.mxu2 %v3925_v13  ;;  %1183 = vmatpush.bf16.msra.mxu3 %v3933_v14 }
  0x37   : > { %901 = vmatpush.bf16.msra.mxu0 %v3909_v26  ;;  %995 = vmatpush.bf16.msra.mxu1 %v3917_v27 }
  0x3a   : > { %1090 = vmatpush.bf16.msra.mxu2 %v3924_v28  ;;  %1184 = vmatpush.bf16.msra.mxu3 %v3932_v32 }
  0x3c   : > { %2943 = vmatmul.msk.bf16.gmra.mxu0 %vm343_vm1, %v3867_v40  ;;  %2947 = vmatmul.msk.bf16.gmra.mxu1 %vm343_vm1, %v3867_v40 }
  0x3d   : > { %2951 = vmatmul.msk.bf16.gmra.mxu2 %vm343_vm1, %v3867_v40  ;;  %2955 = vmatmul.msk.bf16.gmra.mxu3 %vm343_vm1, %v3867_v40 }
  0x4c   : > { %2944 = vmatmul.msk.bf16.gmra.mxu0 %vm343_vm1, %v3868_v41  ;;  %2948 = vmatmul.msk.bf16.gmra.mxu1 %vm343_vm1, %v3868_v41 }
  0x4d   : > { %2952 = vmatmul.msk.bf16.gmra.mxu2 %vm343_vm1, %v3868_v41  ;;  %2956 = vmatmul.msk.bf16.gmra.mxu3 %vm343_vm1, %v3868_v41 }
  0x5c   : > { %3029 = vmatmul.msk.bf16.vlgmr.msrb.gmra.mxu0 %vm343_vm1, %v3901_v42  ;;  %3033 = vmatmul.msk.bf16.vlgmr.msrb.gmra.mxu1 %vm343_vm1, %v3901_v42 }
  0x5d   : > { %3037 = vmatmul.msk.bf16.vlgmr.msrb.gmra.mxu2 %vm343_vm1, %v3901_v42  ;;  %3041 = vmatmul.msk.bf16.vlgmr.msrb.gmra.mxu3 %vm343_vm1, %v3901_v42  ;;  %v3908_v42 = vld [vmem:[%s5205_s4 + $0x58] sm:$0xff] }
  0x5e   : > { %902 = vmatpush.bf16.msra.mxu0 %v3908_v42  ;;  %v3891_v42 = vld [vmem:[%s5205_s4 + $0x230] sm:$0xff] }
  0x62   : > { %903 = vmatpush.bf16.msra.mxu0 %v3907_v49 }
  0x66   : > { %904 = vmatpush.bf16.msra.mxu0 %v3906_v58  ;;  %v3875_v58 = vld [vmem:[%s5205_s4 + $0x30] sm:$0xff] }
  0x6a   : > { %905 = vmatpush.bf16.msra.mxu0 %v3905_v3 }
  0x6c   : > { %3030 = vmatmul.msk.bf16.gmra.mxu0 %vm343_vm1, %v3902_v43  ;;  %3034 = vmatmul.msk.bf16.gmra.mxu1 %vm343_vm1, %v3902_v43 }
  0x6d   : > { %3038 = vmatmul.msk.bf16.gmra.mxu2 %vm343_vm1, %v3902_v43  ;;  %3042 = vmatmul.msk.bf16.gmra.mxu3 %vm343_vm1, %v3902_v43  ;;  %v3916_v43 = vld [vmem:[%s5205_s4 + $0x158] sm:$0xff] }
  0x6e   : > { %996 = vmatpush.bf16.msra.mxu1 %v3916_v43  ;;  %v3899_v43 = vld [vmem:[%s5205_s4 + $0x330] sm:$0xff] }
  0x7c   : > { %3031 = vmatmul.msk.bf16.gmra.mxu0 %vm343_vm1, %v3903_v44  ;;  %3035 = vmatmul.msk.bf16.gmra.mxu1 %vm343_vm1, %v3903_v44 }
  0x7d   : > { %3039 = vmatmul.msk.bf16.gmra.mxu2 %vm343_vm1, %v3903_v44  ;;  %3043 = vmatmul.msk.bf16.gmra.mxu3 %vm343_vm1, %v3903_v44  ;;  %v3923_v44 = vld [vmem:[%s5205_s4 + $0x250] sm:$0xff] }
  0x7e   : > { %1091 = vmatpush.bf16.msra.mxu2 %v3923_v44 }
  0x8c   : > { %3032 = vmatmul.msk.bf16.gmra.mxu0 %vm343_vm1, %v3904_v45  ;;  %3036 = vmatmul.msk.bf16.gmra.mxu1 %vm343_vm1, %v3904_v45 }
  0x8d   : > { %3040 = vmatmul.msk.bf16.gmra.mxu2 %vm343_vm1, %v3904_v45  ;;  %3044 = vmatmul.msk.bf16.gmra.mxu3 %vm343_vm1, %v3904_v45  ;;  %v3931_v45 = vld [vmem:[%s5205_s4 + $0x350] sm:$0xff] }
  0x8e   : > { %1185 = vmatpush.bf16.msra.mxu3 %v3931_v45  ;;  %v4392_v45 = vld [vmem:[%s5203_s2] ss:$0 sm:$0xff] }
  0x92   : > { %1186 = vmatpush.bf16.msra.mxu3 %v3930_v56 }
  0x96   : > { %1187 = vmatpush.bf16.msra.mxu3 %v3929_v2 }
  0x99   : > { %v378_v46 = vpop.f32.mrf.mxu0  ;;  %v407_v47 = vpop.f32.mrf.mxu1 }
  0x9a   : > { %v485_v50 = vmax.f32 %v378_v46, %v407_v47 }
  0xa0   : > { %v436_v51 = vpop.f32.mrf.mxu2  ;;  %v465_v52 = vpop.f32.mrf.mxu3 }
  0xa1   : > { %v493_v53 = vmax.f32 %v436_v51, %v465_v52  ;;  %v4241_v54 = vpop.f32.mrf.mxu0  ;;  %v4243_v55 = vpop.f32.mrf.mxu1 }
  0xa3   : > { %v4257_v60 = vmax.f32 %v485_v50, %v493_v53  ;;  %v3915_v50 = vld [vmem:[%s5205_s4 + $0x150] sm:$0xff]  ;;  %v3922_v53 = vld [vmem:[%s5205_s4 + $0x248] sm:$0xff] }
  0xa4   : > { %997 = vmatpush.bf16.msra.mxu1 %v3915_v50  ;;  %1092 = vmatpush.bf16.msra.mxu2 %v3922_v53 }
  0xa8   : > { %v4259_v61 = vpop.f32.mrf.mxu2  ;;  %v4261_v62 = vpop.f32.mrf.mxu3  ;;  %998 = vmatpush.bf16.msra.mxu1 %v3914_v59  ;;  %1093 = vmatpush.bf16.msra.mxu2 %v3921_v1  ;;  %v3883_v59 = vld [vmem:[%s5205_s4 + $0x130] sm:$0xff] }
  0xa9   : > { %v383_v63 = vpop.f32.mrf.mxu0  ;;  %v412_v0 = vpop.f32.mrf.mxu1 }
  0xaa   : > { %v487_v4 = vmax.f32 %v383_v63, %v412_v0 }
  0xb0   : > { %v441_v6 = vpop.f32.mrf.mxu2  ;;  %v470_v7 = vpop.f32.mrf.mxu3 }
  0xb1   : > { %v495_v8 = vmax.f32 %v441_v6, %v470_v7  ;;  %v4275_v9 = vpop.f32.mrf.mxu0  ;;  %v4277_v10 = vpop.f32.mrf.mxu1  ;;  %v3913_v7 = vld [vmem:[%s5205_s4 + $0x140] sm:$0xff] }
  0xb2   : > { %999 = vmatpush.bf16.msra.mxu1 %v3913_v7  ;;  %v3046_v7 = vld [vmem:[%s5204_s3 + $0x48] sm:$0xff] }
  0xb3   : > { %v4291_v15 = vmax.f32 %v487_v4, %v495_v8 }
  0xb8   : > { %v4293_v16 = vpop.f32.mrf.mxu2  ;;  %v4295_v17 = vpop.f32.mrf.mxu3 }
  0xb9   : > { %v388_v22 = vpop.f32.mrf.mxu0  ;;  %v417_v23 = vpop.f32.mrf.mxu1 }
  0xba   : > { %v489_v31 = vmax.f32 %v388_v22, %v417_v23  ;;  %v3892_v22 = vld [vmem:[%s5205_s4 + $0x238] sm:$0xff] }
  0xbb   : > { %v3900_v23 = vld [vmem:[%s5205_s4 + $0x338] sm:$0xff]  ;;  %1411 = vmatpush.bf16.msrb.mxu2 %v3892_v22 }
  0xbc   : > { %1488 = vmatpush.bf16.msrb.mxu3 %v3900_v23 }
  0xbf   : > { %1412 = vmatpush.bf16.msrb.mxu2 %v3891_v42  ;;  %v3897_v42 = vld [vmem:[%s5205_s4 + $0x320] sm:$0xff] }
  0xc0   : > { %v446_v33 = vpop.f32.mrf.mxu2  ;;  %v475_v38 = vpop.f32.mrf.mxu3  ;;  %1489 = vmatpush.bf16.msrb.mxu3 %v3899_v43 }
  0xc1   : > { %v497_v39 = vmax.f32 %v446_v33, %v475_v38  ;;  %v4309_v40 = vpop.f32.mrf.mxu0  ;;  %v4311_v41 = vpop.f32.mrf.mxu1  ;;  %v3876_v38 = vld [vmem:[%s5205_s4 + $0x38] sm:$0xff] }
  0xc2   : > { %1257 = vmatpush.bf16.msrb.mxu0 %v3876_v38  ;;  %v3882_v38 = vld [vmem:[%s5205_s4 + $0x128] sm:$0xff] }
  0xc3   : > { %v4325_v46 = vmax.f32 %v489_v31, %v497_v39  ;;  %v3884_v39 = vld [vmem:[%s5205_s4 + $0x138] sm:$0xff] }
  0xc4   : > { %1334 = vmatpush.bf16.msrb.mxu1 %v3884_v39  ;;  %v3889_v39 = vld [vmem:[%s5205_s4 + $0x220] sm:$0xff] }
  0xc6   : > { %1258 = vmatpush.bf16.msrb.mxu0 %v3875_v58  ;;  %v3873_v58 = vld [vmem:[%s5205_s4 + $0x20] sm:$0xff] }
  0xc8   : > { %v4327_v47 = vpop.f32.mrf.mxu2  ;;  %v4329_v48 = vpop.f32.mrf.mxu3  ;;  %1335 = vmatpush.bf16.msrb.mxu1 %v3883_v59  ;;  %v3881_v59 = vld [vmem:[%s5205_s4 + $0x120] sm:$0xff] }
  0xc9   : > { %v393_v51 = vpop.f32.mrf.mxu0  ;;  %v422_v52 = vpop.f32.mrf.mxu1 }
  0xca   : > { %v491_v57 = vmax.f32 %v393_v51, %v422_v52 }
  0xcc   : > { %1336 = vmatpush.bf16.msrb.mxu1 %v3882_v38 }
  0xd0   : > { %v451_v63 = vpop.f32.mrf.mxu2  ;;  %v480_v0 = vpop.f32.mrf.mxu3  ;;  %1337 = vmatpush.bf16.msrb.mxu1 %v3881_v59 }
  0xd1   : > { %v499_v4 = vmax.f32 %v451_v63, %v480_v0  ;;  %v4358_v5 = vpop.f32.mrf.mxu0  ;;  %v4360_v6 = vpop.f32.mrf.mxu1  ;;  %v3890_v63 = vld [vmem:[%s5205_s4 + $0x228] sm:$0xff] }
  0xd2   : > { %v3898_v0 = vld [vmem:[%s5205_s4 + $0x328] sm:$0xff]  ;;  %1413 = vmatpush.bf16.msrb.mxu2 %v3890_v63  ;;  %v3888_v63 = vld [vmem:[%s5205_s4 + $0x218] sm:$0xff] }
  0xd3   : > { %v4365_v8 = vmax.f32 %v491_v57, %v499_v4  ;;  %1490 = vmatpush.bf16.msrb.mxu3 %v3898_v0  ;;  %v3045_v4 = vld [vmem:[%s5204_s3 + $0x40] sm:$0xff]  ;;  %v3896_v0 = vld [vmem:[%s5205_s4 + $0x318] sm:$0xff] }
  0xd6   : > { %1414 = vmatpush.bf16.msrb.mxu2 %v3889_v39 }
  0xd7   : > { %1491 = vmatpush.bf16.msrb.mxu3 %v3897_v42  ;;  %v3895_v42 = vld [vmem:[%s5205_s4 + $0x310] sm:$0xff] }
  0xd8   : > { %v4367_v11 = vpop.f32.mrf.mxu2  ;;  %v4369_v12 = vpop.f32.mrf.mxu3 }
  0xd9   : > { %v665_v13 = vpop.f32.mrf.mxu0  ;;  %v694_v14 = vpop.f32.mrf.mxu1 }
  0xda   : > { %v772_v28 = vmax.f32 %v665_v13, %v694_v14  ;;  %1415 = vmatpush.bf16.msrb.mxu2 %v3888_v63  ;;  %v3885_v63 = vld [vmem:[%s5205_s4 + $0x200] sm:$0xff] }
  0xdb   : > { %1492 = vmatpush.bf16.msrb.mxu3 %v3896_v0  ;;  %v3893_v0 = vld [vmem:[%s5205_s4 + $0x300] sm:$0xff] }
  0xdf   : > { %1493 = vmatpush.bf16.msrb.mxu3 %v3895_v42 }
  0xe0   : > { %v723_v26 = vpop.f32.mrf.mxu2  ;;  %v752_v27 = vpop.f32.mrf.mxu3 }
  0xe1   : > { %v780_v31 = vmax.f32 %v723_v26, %v752_v27  ;;  %v667_v32 = vpop.f32.mrf.mxu0  ;;  %v696_v33 = vpop.f32.mrf.mxu1 }
  0xe2   : > { %v773_v52 = vmax.f32 %v667_v32, %v696_v33  ;;  %v3874_v33 = vld [vmem:[%s5205_s4 + $0x28] sm:$0xff] }
  0xe3   : > { %v788_v44 = vmax.f32 %v772_v28, %v780_v31  ;;  %1259 = vmatpush.bf16.msrb.mxu0 %v3874_v33  ;;  %v3887_v33 = vld [vmem:[%s5205_s4 + $0x210] sm:$0xff] }
  0xe4   : > { %1416 = vmatpush.bf16.msrb.mxu2 %v3887_v33 }
  0xe5   : > { %v796_v51 = vadd.f32 %v4392_v45, %v788_v44 }
  0xe7   : > { %v804_v2 = vmax.f32 %v796_v51, 0.0  ;;  %1260 = vmatpush.bf16.msrb.mxu0 %v3873_v58 }
  0xe8   : > { %v725_v49 = vpop.f32.mrf.mxu2  ;;  %v754_v50 = vpop.f32.mrf.mxu3 }
  0xe9   : > { %v781_v53 = vmax.f32 %v725_v49, %v754_v50  ;;  %v670_v56 = vpop.f32.mrf.mxu0  ;;  %v699_v57 = vpop.f32.mrf.mxu1  ;;  %v821_v23 = vmul.f32 %v3045_v4, %v804_v2  ;;  %v3047_v4 = vld [vmem:[%s5204_s3 + $0x50] sm:$0xff] }
  0xea   : > { %v774_v27 = vmax.f32 %v670_v56, %v699_v57 }
  0xeb   : > { %v789_v1 = vmax.f32 %v773_v52, %v781_v53 }
  0xed   : > { %v797_v3 = vadd.f32 %v4392_v45, %v789_v1 }
  0xef   : > { %v805_v13 = vmax.f32 %v797_v3, 0.0 }
  0xf0   : > { %v728_v14 = vpop.f32.mrf.mxu2  ;;  %v757_v22 = vpop.f32.mrf.mxu3 }
  0xf1   : > { %v822_v26 = vmul.f32 %v3046_v7, %v805_v13  ;;  %v782_v28 = vmax.f32 %v728_v14, %v757_v22  ;;  %v672_v31 = vpop.f32.mrf.mxu0  ;;  %v701_v32 = vpop.f32.mrf.mxu1  ;;  %v3048_v7 = vld [vmem:[%s5204_s3 + $0x58] sm:$0xff] }
  0xf2   : > { %v775_v52 = vmax.f32 %v672_v31, %v701_v32  ;;  %v3872_v31 = vld [vmem:[%s5205_s4 + $0x18] sm:$0xff] }
  0xf3   : > { %v829_v43 = vpack.c.bf16 %v822_v26, %v821_v23  ;;  %v790_v44 = vmax.f32 %v774_v27, %v782_v28  ;;  %v3880_v32 = vld [vmem:[%s5205_s4 + $0x118] sm:$0xff]  ;;  %1261 = vmatpush.bf16.msrb.mxu0 %v3872_v31 }
  0xf4   : > { %1338 = vmatpush.bf16.msrb.mxu1 %v3880_v32 }
  0xf5   : > { %906 = vmatmul.bf16.vlgmr.msra.gmra.mxu0 %v829_v43  ;;  %1000 = vmatmul.bf16.vlgmr.msra.gmra.mxu1 %v829_v43  ;;  %v798_v51 = vadd.f32 %v4392_v45, %v790_v44  ;;  %v3871_v44 = vld [vmem:[%s5205_s4 + $0x10] sm:$0xff] }
  0xf6   : > { %1094 = vmatmul.bf16.vlgmr.msra.gmra.mxu2 %v829_v43  ;;  %1188 = vmatmul.bf16.vlgmr.msra.gmra.mxu3 %v829_v43 }
  0xf7   : > { %v806_v2 = vmax.f32 %v798_v51, 0.0  ;;  %v3886_v51 = vld [vmem:[%s5205_s4 + $0x208] sm:$0xff]  ;;  %1262 = vmatpush.bf16.msrb.mxu0 %v3871_v44 }
  0xf8   : > { %v730_v49 = vpop.f32.mrf.mxu2  ;;  %v759_v50 = vpop.f32.mrf.mxu3  ;;  %1417 = vmatpush.bf16.msrb.mxu2 %v3886_v51 }
  0xf9   : > { %v783_v53 = vmax.f32 %v730_v49, %v759_v50  ;;  %v675_v56 = vpop.f32.mrf.mxu0  ;;  %v704_v57 = vpop.f32.mrf.mxu1  ;;  %v823_v26 = vmul.f32 %v3047_v4, %v806_v2  ;;  %v3879_v49 = vld [vmem:[%s5205_s4 + $0x110] sm:$0xff]  ;;  %v3869_v4 = vld [vmem:[%s5205_s4] sm:$0xff] }
  0xfa   : > { %v776_v14 = vmax.f32 %v675_v56, %v704_v57  ;;  %1339 = vmatpush.bf16.msrb.mxu1 %v3879_v49  ;;  %v3878_v56 = vld [vmem:[%s5205_s4 + $0x108] sm:$0xff] }
  0xfb   : > { %v791_v1 = vmax.f32 %v775_v52, %v783_v53  ;;  %v3894_v52 = vld [vmem:[%s5205_s4 + $0x308] sm:$0xff] }
  0xfc   : > { %v3870_v53 = vld [vmem:[%s5205_s4 + $0x8] sm:$0xff]  ;;  %1494 = vmatpush.bf16.msrb.mxu3 %v3894_v52  ;;  %1418 = vmatpush.bf16.msrb.mxu2 %v3885_v63 }
  0xfd   : > { %v799_v3 = vadd.f32 %v4392_v45, %v791_v1  ;;  %1263 = vmatpush.bf16.msrb.mxu0 %v3870_v53 }
  0xfe   : > { %1340 = vmatpush.bf16.msrb.mxu1 %v3878_v56 }
  0xff   : > { %v807_v13 = vmax.f32 %v799_v3, 0.0 }
 0x100   : > { %v733_v22 = vpop.f32.mrf.mxu2  ;;  %v762_v23 = vpop.f32.mrf.mxu3  ;;  %1495 = vmatpush.bf16.msrb.mxu3 %v3893_v0  ;;  %1621 = vmatpush.bf16.msra.mxu2 %v4114_v20  ;;  %v3051_v0 = vld [vmem:[%s5204_s3 + $0x70] sm:$0xff] }
 0x101   : > { %v824_v27 = vmul.f32 %v3048_v7, %v807_v13  ;;  %v784_v28 = vmax.f32 %v733_v22, %v762_v23  ;;  %v677_v38 = vpop.f32.mrf.mxu0  ;;  %v706_v39 = vpop.f32.mrf.mxu1  ;;  %v3877_v7 = vld [vmem:[%s5205_s4 + $0x100] sm:$0xff]  ;;  %1264 = vmatpush.bf16.msrb.mxu0 %v3869_v4  ;;  %v486_v4 = vmax.f32 %v4241_v54, %v4243_v55 }
 0x102   : > { %v777_v1 = vmax.f32 %v677_v38, %v706_v39  ;;  %v3049_v23 = vld [vmem:[%s5204_s3 + $0x60] sm:$0xff]  ;;  %1341 = vmatpush.bf16.msrb.mxu1 %v3877_v7 }
 0x103   : > { %v830_v43 = vpack.c.bf16 %v824_v27, %v823_v26  ;;  %v792_v50 = vmax.f32 %v776_v14, %v784_v28  ;;  %v3050_v27 = vld [vmem:[%s5204_s3 + $0x68] sm:$0xff]  ;;  %v528_v54 = vld [vmem:[%s5204_s3] sm:$0xff] }
 0x104   : > { %1650 = vmatpush.bf16.msra.mxu3 %v4117_v21  ;;  %1622 = vmatpush.bf16.msra.mxu2 %v4142_v29 }
 0x105   : > { %911 = vmatmul.bf16.gmra.mxu0 %v830_v43  ;;  %1005 = vmatmul.bf16.gmra.mxu1 %v830_v43  ;;  %v800_v57 = vadd.f32 %v4392_v45, %v792_v50 }
 0x106   : > { %1099 = vmatmul.bf16.gmra.mxu2 %v830_v43  ;;  %1193 = vmatmul.bf16.gmra.mxu3 %v830_v43 }
 0x107   : > { %v808_v13 = vmax.f32 %v800_v57, 0.0  ;;  %1563 = vmatpush.bf16.msra.mxu0 %v4108_v18  ;;  %1592 = vmatpush.bf16.msra.mxu1 %v4111_v19 }
 0x108   : > { %v735_v58 = vpop.f32.mrf.mxu2  ;;  %v764_v59 = vpop.f32.mrf.mxu3  ;;  %1651 = vmatpush.bf16.msra.mxu3 %v4144_v30  ;;  %1623 = vmatpush.bf16.msra.mxu2 %v4175_v36 }
 0x109   : > { %v785_v2 = vmax.f32 %v735_v58, %v764_v59  ;;  %v680_v14 = vpop.f32.mrf.mxu0  ;;  %v709_v22 = vpop.f32.mrf.mxu1  ;;  %v825_v31 = vmul.f32 %v3049_v23, %v808_v13 }
 0x10a   : > { %v778_v39 = vmax.f32 %v680_v14, %v709_v22 }
 0x10b   : > { %v793_v3 = vmax.f32 %v777_v1, %v785_v2  ;;  %1564 = vmatpush.bf16.msra.mxu0 %v4127_v24  ;;  %1593 = vmatpush.bf16.msra.mxu1 %v4129_v25  ;;  %v3052_v1 = vld [vmem:[%s5204_s3 + $0x78] sm:$0xff]  ;;  %v494_v2 = vmax.f32 %v4259_v61, %v4261_v62  ;;  %v529_v61 = vld [vmem:[%s5204_s3 + $0x8] sm:$0xff] }
 0x10c   : > { %1652 = vmatpush.bf16.msra.mxu3 %v4177_v37 }
 0x10d   : > { %v801_v26 = vadd.f32 %v4392_v45, %v793_v3  ;;  %v502_v14 = vmax.f32 %v486_v4, %v494_v2  ;;  %v3937_v4 = vld [vmem:[%s4171_s17 + $0x40] sm:$0xff] }
 0x10f   : > { %v809_v28 = vmax.f32 %v801_v26, 0.0  ;;  %1565 = vmatpush.bf16.msra.mxu0 %v4164_v34  ;;  %1594 = vmatpush.bf16.msra.mxu1 %v4166_v35  ;;  %v513_v23 = vadd.f32 %v4392_v45, %v502_v14  ;;  %v512_v26 = vadd.f32 %v4392_v45, %v4257_v60 }
 0x110   : > { %v738_v32 = vpop.f32.mrf.mxu2  ;;  %v767_v33 = vpop.f32.mrf.mxu3 }
 0x111   : > { %v826_v38 = vmul.f32 %v3050_v27, %v809_v28  ;;  %v786_v42 = vmax.f32 %v738_v32, %v767_v33  ;;  %v682_v49 = vpop.f32.mrf.mxu0  ;;  %v711_v50 = vpop.f32.mrf.mxu1  ;;  %v521_v27 = vmax.f32 %v513_v23, 0.0  ;;  %v520_v62 = vmax.f32 %v512_v26, 0.0 }
 0x112   : > { %v779_v56 = vmax.f32 %v682_v49, %v711_v50  ;;  %v496_v28 = vmax.f32 %v4293_v16, %v4295_v17  ;;  %v488_v32 = vmax.f32 %v4275_v9, %v4277_v10  ;;  %v531_v16 = vld [vmem:[%s5204_s3 + $0x18] sm:$0xff]  ;;  %v530_v9 = vld [vmem:[%s5204_s3 + $0x10] sm:$0xff]  ;;  %v490_v49 = vmax.f32 %v4309_v40, %v4311_v41  ;;  %v532_v40 = vld [vmem:[%s5204_s3 + $0x20] sm:$0xff] }
 0x113   : > { %v831_v43 = vpack.c.bf16 %v826_v38, %v825_v31  ;;  %v794_v44 = vmax.f32 %v778_v39, %v786_v42  ;;  %v537_v55 = vmul.f32 %v529_v61, %v521_v27  ;;  %v536_v31 = vmul.f32 %v528_v54, %v520_v62  ;;  %v3938_v61 = vld [vmem:[%s4171_s17 + $0x48] sm:$0xff] }
 0x114   : > { %v504_v60 = vmax.f32 %v488_v32, %v496_v28  ;;  %v514_v39 = vadd.f32 %v4392_v45, %v4291_v15 }
 0x115   : > { %916 = vmatmul.bf16.gmra.mxu0 %v831_v43  ;;  %1010 = vmatmul.bf16.gmra.mxu1 %v831_v43  ;;  %v802_v53 = vadd.f32 %v4392_v45, %v794_v44  ;;  %v544_v33 = vpack.c.bf16 %v537_v55, %v536_v31 }
 0x116   : > { %1104 = vmatmul.bf16.gmra.mxu2 %v831_v43  ;;  %1198 = vmatmul.bf16.gmra.mxu3 %v831_v43  ;;  %v515_v38 = vadd.f32 %v4392_v45, %v504_v60  ;;  %v522_v17 = vmax.f32 %v514_v39, 0.0  ;;  %v498_v43 = vmax.f32 %v4327_v47, %v4329_v48  ;;  %v533_v47 = vld [vmem:[%s5204_s3 + $0x28] sm:$0xff] }
 0x117   : > { %v810_v59 = vmax.f32 %v802_v53, 0.0 }
 0x118   : > { %v740_v51 = vpop.f32.mrf.mxu2  ;;  %v769_v52 = vpop.f32.mrf.mxu3  ;;  %v523_v42 = vmax.f32 %v515_v38, 0.0  ;;  %v538_v44 = vmul.f32 %v530_v9, %v522_v17  ;;  %v506_v50 = vmax.f32 %v490_v49, %v498_v43  ;;  %v3939_v38 = vld [vmem:[%s4171_s17 + $0x50] sm:$0xff]  ;;  %v3940_v49 = vld [vmem:[%s4171_s17 + $0x58] sm:$0xff] }
 0x119   : > { %v787_v57 = vmax.f32 %v740_v51, %v769_v52  ;;  %v827_v7 = vmul.f32 %v3051_v0, %v810_v59  ;;  %v516_v52 = vadd.f32 %v4392_v45, %v4325_v46  ;;  %v518_v0 = vadd.f32 %v4392_v45, %v4365_v8 }
 0x11a   : > { %v539_v10 = vmul.f32 %v531_v16, %v523_v42  ;;  %v517_v51 = vadd.f32 %v4392_v45, %v506_v50 }
 0x11b   : > { %v795_v58 = vmax.f32 %v779_v56, %v787_v57  ;;  %v524_v48 = vmax.f32 %v516_v52, 0.0  ;;  %v500_v56 = vmax.f32 %v4367_v11, %v4369_v12  ;;  %v535_v11 = vld [vmem:[%s5204_s3 + $0x38] sm:$0xff]  ;;  %v526_v12 = vmax.f32 %v518_v0, 0.0 }
 0x11c   : > { %v545_v15 = vpack.c.bf16 %v539_v10, %v538_v44  ;;  %v525_v53 = vmax.f32 %v517_v51, 0.0  ;;  %v3956_v0 = vld [vmem:[%s5205_s4 + $0x1b8] sm:$0xff] }
 0x11d   : > { %v803_v63 = vadd.f32 %v4392_v45, %v795_v58  ;;  %v540_v57 = vmul.f32 %v532_v40, %v524_v48  ;;  %v492_v58 = vmax.f32 %v4358_v5, %v4360_v6  ;;  %v534_v5 = vld [vmem:[%s5204_s3 + $0x30] sm:$0xff]  ;;  %v3964_v48 = vld [vmem:[%s5205_s4 + $0x2b8] sm:$0xff] }
 0x11e   : > { %v541_v41 = vmul.f32 %v533_v47, %v525_v53  ;;  %v542_v2 = vmul.f32 %v534_v5, %v526_v12  ;;  %v3972_v40 = vld [vmem:[%s5205_s4 + $0x3b8] sm:$0xff] }
 0x11f   : > { %v811_v3 = vmax.f32 %v803_v63, 0.0  ;;  %v508_v59 = vmax.f32 %v492_v58, %v500_v56 }
 0x120   : > { %v546_v46 = vpack.c.bf16 %v541_v41, %v540_v57 }
 0x121   : > { %v828_v13 = vmul.f32 %v3052_v1, %v811_v3  ;;  %v519_v63 = vadd.f32 %v4392_v45, %v508_v59 }
 0x123   : > { %v832_v22 = vpack.c.bf16 %v828_v13, %v827_v7  ;;  %v527_v1 = vmax.f32 %v519_v63, 0.0  ;;  %v3948_v63 = vld [vmem:[%s5205_s4 + $0xb8] sm:$0xff] }
 0x125   : > { %921 = vmatmul.bf16.gmra.mxu0 %v832_v22  ;;  %1015 = vmatmul.bf16.gmra.mxu1 %v832_v22  ;;  %v543_v6 = vmul.f32 %v535_v11, %v527_v1  ;;  %v3963_v1 = vld [vmem:[%s5205_s4 + $0x2b0] sm:$0xff] }
 0x126   : > { %1109 = vmatmul.bf16.gmra.mxu2 %v832_v22  ;;  %1203 = vmatmul.bf16.gmra.mxu3 %v832_v22  ;;  %v3971_v11 = vld [vmem:[%s5205_s4 + $0x3b0] sm:$0xff] }
 0x127   : > { %v547_v3 = vpack.c.bf16 %v543_v6, %v542_v2 }
 0x135   : > { %1265 = vmatmul.bf16.vlgmr.msrb.gmra.mxu0 %v544_v33  ;;  %1342 = vmatmul.bf16.vlgmr.msrb.gmra.mxu1 %v544_v33 }
 0x136   : > { %1419 = vmatmul.bf16.vlgmr.msrb.gmra.mxu2 %v544_v33  ;;  %1496 = vmatmul.bf16.vlgmr.msrb.gmra.mxu3 %v544_v33 }
 0x137   : > { %1988 = vmatpush.bf16.msrb.mxu2 %v3964_v48  ;;  %2082 = vmatpush.bf16.msrb.mxu3 %v3972_v40 }
 0x138   : > { %1800 = vmatpush.bf16.msrb.mxu0 %v3948_v63  ;;  %1894 = vmatpush.bf16.msrb.mxu1 %v3956_v0  ;;  %v3954_v63 = vld [vmem:[%s5205_s4 + $0x1a8] sm:$0xff]  ;;  %v3961_v0 = vld [vmem:[%s5205_s4 + $0x2a0] sm:$0xff] }
 0x13b   : > { %1989 = vmatpush.bf16.msrb.mxu2 %v3963_v1  ;;  %2083 = vmatpush.bf16.msrb.mxu3 %v3971_v11 }
 0x145   : > { %1270 = vmatmul.bf16.gmra.mxu0 %v545_v15  ;;  %1347 = vmatmul.bf16.gmra.mxu1 %v545_v15 }
 0x146   : > { %1424 = vmatmul.bf16.gmra.mxu2 %v545_v15  ;;  %1501 = vmatmul.bf16.gmra.mxu3 %v545_v15 }
 0x155   : > { %1275 = vmatmul.bf16.gmra.mxu0 %v546_v46  ;;  %1352 = vmatmul.bf16.gmra.mxu1 %v546_v46 }
 0x156   : > { %1429 = vmatmul.bf16.gmra.mxu2 %v546_v46  ;;  %1506 = vmatmul.bf16.gmra.mxu3 %v546_v46 }
 0x165   : > { %1280 = vmatmul.bf16.gmra.mxu0 %v547_v3  ;;  %1357 = vmatmul.bf16.gmra.mxu1 %v547_v3 }
 0x166   : > { %1434 = vmatmul.bf16.gmra.mxu2 %v547_v3  ;;  %1511 = vmatmul.bf16.gmra.mxu3 %v547_v3 }
 0x172   : > { %v907_v8 = vpop.f32.mrf.mxu0  ;;  %v1001_v7 = vpop.f32.mrf.mxu1 }
 0x175   : > { %3397 = vmatmul.msk.bf16.vlgmr.msra.gmra.mxu0 %vm343_vm1, %v3937_v4  ;;  %3401 = vmatmul.msk.bf16.vlgmr.msra.gmra.mxu1 %vm343_vm1, %v3937_v4 }
 0x176   : > { %3405 = vmatmul.msk.bf16.vlgmr.msra.gmra.mxu2 %vm343_vm1, %v3937_v4  ;;  %3409 = vmatmul.msk.bf16.vlgmr.msra.gmra.mxu3 %vm343_vm1, %v3937_v4 }
 0x179   : > { %v4573_v13 = vpop.f32.mrf.mxu2  ;;  %v4575_v14 = vpop.f32.mrf.mxu3 }
 0x17a   : > { %v4577_v22 = vpop.f32.mrf.mxu0  ;;  %v4579_v23 = vpop.f32.mrf.mxu1 }
 0x181   : > { %v4581_v26 = vpop.f32.mrf.mxu2  ;;  %v4583_v27 = vpop.f32.mrf.mxu3 }
 0x182   : > { %v4586_v62 = vpop.f32.mrf.mxu0  ;;  %v4588_v54 = vpop.f32.mrf.mxu1 }
 0x185   : > { %3398 = vmatmul.msk.bf16.gmra.mxu0 %vm343_vm1, %v3938_v61  ;;  %3402 = vmatmul.msk.bf16.gmra.mxu1 %vm343_vm1, %v3938_v61 }
 0x186   : > { %3406 = vmatmul.msk.bf16.gmra.mxu2 %vm343_vm1, %v3938_v61  ;;  %3410 = vmatmul.msk.bf16.gmra.mxu3 %vm343_vm1, %v3938_v61 }
 0x189   : > { %v4594_v55 = vpop.f32.mrf.mxu2  ;;  %v4596_v28 = vpop.f32.mrf.mxu3 }
 0x18a   : > { %v4598_v31 = vpop.f32.mrf.mxu0  ;;  %v4600_v32 = vpop.f32.mrf.mxu1 }
 0x191   : > { %v4602_v33 = vpop.f32.mrf.mxu2  ;;  %v4604_v60 = vpop.f32.mrf.mxu3 }
 0x192   : > { %v4607_v39 = vpop.f32.mrf.mxu0  ;;  %v4609_v42 = vpop.f32.mrf.mxu1 }
 0x195   : > { %3399 = vmatmul.msk.bf16.gmra.mxu0 %vm343_vm1, %v3939_v38  ;;  %3403 = vmatmul.msk.bf16.gmra.mxu1 %vm343_vm1, %v3939_v38 }
 0x196   : > { %3407 = vmatmul.msk.bf16.gmra.mxu2 %vm343_vm1, %v3939_v38  ;;  %3411 = vmatmul.msk.bf16.gmra.mxu3 %vm343_vm1, %v3939_v38 }
 0x199   : > { %v4615_v16 = vpop.f32.mrf.mxu2  ;;  %v4617_v17 = vpop.f32.mrf.mxu3 }
 0x19a   : > { %v4619_v9 = vpop.f32.mrf.mxu0  ;;  %v4621_v10 = vpop.f32.mrf.mxu1 }
 0x1a1   : > { %v4623_v43 = vpop.f32.mrf.mxu2  ;;  %v4625_v44 = vpop.f32.mrf.mxu3 }
 0x1a2   : > { %5209 = vst [vmem:[#allocation2_spill] sm:$0xff] %v4623_v43  ;;  %v4628_v50 = vpop.f32.mrf.mxu0  ;;  %v4630_v15 = vpop.f32.mrf.mxu1 }
 0x1a3   : > { %5210 = vst [vmem:[#allocation3_spill] sm:$0xff] %v4625_v44 }
 0x1a5   : > { %3400 = vmatmul.msk.bf16.gmra.mxu0 %vm343_vm1, %v3940_v49  ;;  %3404 = vmatmul.msk.bf16.gmra.mxu1 %vm343_vm1, %v3940_v49 }
 0x1a6   : > { %3408 = vmatmul.msk.bf16.gmra.mxu2 %vm343_vm1, %v3940_v49  ;;  %3412 = vmatmul.msk.bf16.gmra.mxu3 %vm343_vm1, %v3940_v49 }
 0x1a9   : > { %v4636_v51 = vpop.f32.mrf.mxu2  ;;  %v4638_v52 = vpop.f32.mrf.mxu3 }
 0x1aa   : > { %v4640_v53 = vpop.f32.mrf.mxu0  ;;  %v4642_v47 = vpop.f32.mrf.mxu1 }
 0x1ab   : > { %5211 = vst [vmem:[#allocation4_spill] sm:$0xff] %v4640_v53 }
 0x1ac   : > { %5212 = vst [vmem:[#allocation5_spill] sm:$0xff] %v4642_v47  ;;  %v3950_v47 = vld [vmem:[%s5205_s4 + $0x188] sm:$0xff] }
 0x1b1   : > { %v4650_v41 = vpop.f32.mrf.mxu2  ;;  %v4652_v56 = vpop.f32.mrf.mxu3 }
 0x1b2   : > { %5213 = vst [vmem:[#allocation6_spill] sm:$0xff] %v4650_v41  ;;  %v1266_v57 = vpop.f32.mrf.mxu0  ;;  %v1343_v58 = vpop.f32.mrf.mxu1  ;;  %v3942_v41 = vld [vmem:[%s5205_s4 + $0x88] sm:$0xff] }
 0x1b3   : > { %5214 = vst [vmem:[#allocation7_spill] sm:$0xff] %v4652_v56  ;;  %v4654_v59 = vadd.f32 %v1266_v57, %v907_v8  ;;  %v4656_v46 = vadd.f32 %v1343_v58, %v1001_v7  ;;  %v3947_v8 = vld [vmem:[%s5205_s4 + $0xb0] sm:$0xff]  ;;  %v3946_v58 = vld [vmem:[%s5205_s4 + $0xa8] sm:$0xff] }
 0x1b4   : > { %v3955_v7 = vld [vmem:[%s5205_s4 + $0x1b0] sm:$0xff]  ;;  %1801 = vmatpush.bf16.msrb.mxu0 %v3947_v8 }
 0x1b5   : > { %1895 = vmatpush.bf16.msrb.mxu1 %v3955_v7  ;;  %v3945_v7 = vld [vmem:[%s5205_s4 + $0xa0] sm:$0xff] }
 0x1b8   : > { %1802 = vmatpush.bf16.msrb.mxu0 %v3946_v58 }
 0x1b9   : > { %v1420_v12 = vpop.f32.mrf.mxu2  ;;  %v1497_v5 = vpop.f32.mrf.mxu3  ;;  %1896 = vmatpush.bf16.msrb.mxu1 %v3954_v63 }
 0x1ba   : > { %v4671_v6 = vadd.f32 %v1420_v12, %v4573_v13  ;;  %v4674_v2 = vadd.f32 %v1497_v5, %v4575_v14  ;;  %v4676_v3 = vpop.f32.mrf.mxu0  ;;  %v4678_v4 = vpop.f32.mrf.mxu1  ;;  %v3962_v13 = vld [vmem:[%s5205_s4 + $0x2a8] sm:$0xff] }
 0x1bb   : > { %v3970_v14 = vld [vmem:[%s5205_s4 + $0x3a8] sm:$0xff]  ;;  %1990 = vmatpush.bf16.msrb.mxu2 %v3962_v13  ;;  %v3953_v13 = vld [vmem:[%s5205_s4 + $0x1a0] sm:$0xff] }
 0x1bc   : > { %2084 = vmatpush.bf16.msrb.mxu3 %v3970_v14  ;;  %1803 = vmatpush.bf16.msrb.mxu0 %v3945_v7 }
 0x1bd   : > { %1897 = vmatpush.bf16.msrb.mxu1 %v3953_v13 }
 0x1bf   : > { %1991 = vmatpush.bf16.msrb.mxu2 %v3961_v0 }
 0x1c1   : > { %v4692_v61 = vpop.f32.mrf.mxu2  ;;  %v4694_v38 = vpop.f32.mrf.mxu3 }
 0x1c2   : > { %v1271_v49 = vpop.f32.mrf.mxu0  ;;  %v1348_v48 = vpop.f32.mrf.mxu1 }
 0x1c3   : > { %v4697_v40 = vadd.f32 %v1271_v49, %v4586_v62  ;;  %v4700_v57 = vadd.f32 %v1348_v48, %v4588_v54  ;;  %v3969_v62 = vld [vmem:[%s5205_s4 + $0x3a0] sm:$0xff] }
 0x1c4   : > { %2085 = vmatpush.bf16.msrb.mxu3 %v3969_v62  ;;  %v3944_v62 = vld [vmem:[%s5205_s4 + $0x98] sm:$0xff] }
 0x1c5   : > { %1804 = vmatpush.bf16.msrb.mxu0 %v3944_v62  ;;  %v3943_v62 = vld [vmem:[%s5205_s4 + $0x90] sm:$0xff] }
 0x1c9   : > { %v1425_v54 = vpop.f32.mrf.mxu2  ;;  %v1502_v1 = vpop.f32.mrf.mxu3  ;;  %1805 = vmatpush.bf16.msrb.mxu0 %v3943_v62  ;;  %v3965_v62 = vld [vmem:[%s5205_s4 + $0x380] sm:$0xff] }
 0x1ca   : > { %v4715_v11 = vadd.f32 %v1425_v54, %v4594_v55  ;;  %v4718_v12 = vadd.f32 %v1502_v1, %v4596_v28  ;;  %v4720_v5 = vpop.f32.mrf.mxu0  ;;  %v4722_v8 = vpop.f32.mrf.mxu1  ;;  %v3960_v55 = vld [vmem:[%s5205_s4 + $0x298] sm:$0xff]  ;;  %v3959_v1 = vld [vmem:[%s5205_s4 + $0x290] sm:$0xff] }
 0x1cb   : > { %v3968_v28 = vld [vmem:[%s5205_s4 + $0x398] sm:$0xff]  ;;  %1992 = vmatpush.bf16.msrb.mxu2 %v3960_v55 }
 0x1cc   : > { %2086 = vmatpush.bf16.msrb.mxu3 %v3968_v28  ;;  %v3952_v54 = vld [vmem:[%s5205_s4 + $0x198] sm:$0xff] }
 0x1cd   : > { %1898 = vmatpush.bf16.msrb.mxu1 %v3952_v54  ;;  %1806 = vmatpush.bf16.msrb.mxu0 %v3942_v41 }
 0x1cf   : > { %1993 = vmatpush.bf16.msrb.mxu2 %v3959_v1 }
 0x1d1   : > { %v4736_v14 = vpop.f32.mrf.mxu2  ;;  %v4738_v49 = vpop.f32.mrf.mxu3 }
 0x1d2   : > { %v1276_v48 = vpop.f32.mrf.mxu0  ;;  %v1353_v58 = vpop.f32.mrf.mxu1 }
 0x1d3   : > { %v4741_v63 = vadd.f32 %v1276_v48, %v4607_v39  ;;  %v4744_v0 = vadd.f32 %v1353_v58, %v4609_v42  ;;  %v3967_v39 = vld [vmem:[%s5205_s4 + $0x390] sm:$0xff] }
 0x1d4   : > { %2087 = vmatpush.bf16.msrb.mxu3 %v3967_v39  ;;  %v3966_v39 = vld [vmem:[%s5205_s4 + $0x388] sm:$0xff] }
 0x1d8   : > { %2088 = vmatpush.bf16.msrb.mxu3 %v3966_v39 }
 0x1d9   : > { %v1430_v42 = vpop.f32.mrf.mxu2  ;;  %v1507_v7 = vpop.f32.mrf.mxu3 }
 0x1da   : > { %v4759_v13 = vadd.f32 %v1430_v42, %v4615_v16  ;;  %v4762_v55 = vadd.f32 %v1507_v7, %v4617_v17  ;;  %v4764_v28 = vpop.f32.mrf.mxu0  ;;  %v4766_v48 = vpop.f32.mrf.mxu1  ;;  %v3951_v16 = vld [vmem:[%s5205_s4 + $0x190] sm:$0xff]  ;;  %v3958_v17 = vld [vmem:[%s5205_s4 + $0x288] sm:$0xff] }
 0x1db   : > { %1899 = vmatpush.bf16.msrb.mxu1 %v3951_v16  ;;  %1994 = vmatpush.bf16.msrb.mxu2 %v3958_v17  ;;  %v3941_v16 = vld [vmem:[%s5205_s4 + $0x80] sm:$0xff] }
 0x1dc   : > { %v3949_v17 = vld [vmem:[%s5205_s4 + $0x180] sm:$0xff]  ;;  %2089 = vmatpush.bf16.msrb.mxu3 %v3965_v62  ;;  %1807 = vmatpush.bf16.msrb.mxu0 %v3941_v16 }
 0x1df   : > { %1900 = vmatpush.bf16.msrb.mxu1 %v3950_v47 }
 0x1e0   : > { %2276 = vmatpush.bf16.msra.mxu3 %v4117_v21  ;;  %2189 = vmatpush.bf16.msra.mxu0 %v4108_v18 }
 0x1e1   : > { %v4768_v58 = vpop.f32.mrf.mxu2  ;;  %v4770_v56 = vpop.f32.mrf.mxu3 }
 0x1e2   : > { %5215 = vst [vmem:[#allocation8_spill] sm:$0xff] %v4768_v58  ;;  %v1281_v54 = vpop.f32.mrf.mxu0  ;;  %v1358_v1 = vpop.f32.mrf.mxu1 }
 0x1e3   : > { %5216 = vst [vmem:[#allocation9_spill] sm:$0xff] %v4770_v56  ;;  %v4785_v42 = vadd.f32 %v1281_v54, %v4628_v50  ;;  %v4788_v7 = vadd.f32 %v1358_v1, %v4630_v15  ;;  %v3957_v15 = vld [vmem:[%s5205_s4 + $0x280] sm:$0xff]  ;;  %1901 = vmatpush.bf16.msrb.mxu1 %v3949_v17 }
 0x1e4   : > { %1995 = vmatpush.bf16.msrb.mxu2 %v3957_v15  ;;  %2277 = vmatpush.bf16.msra.mxu3 %v4144_v30 }
 0x1e5   : > { %2190 = vmatpush.bf16.msra.mxu0 %v4127_v24 }
 0x1e7   : > { %2218 = vmatpush.bf16.msra.mxu1 %v4111_v19 }
 0x1e8   : > { %2247 = vmatpush.bf16.msra.mxu2 %v4114_v20  ;;  %2278 = vmatpush.bf16.msra.mxu3 %v4177_v37 }
 0x1e9   : > { %v1435_v53 = vpop.f32.mrf.mxu2  ;;  %v1512_v50 = vpop.f32.mrf.mxu3  ;;  %2191 = vmatpush.bf16.msra.mxu0 %v4164_v34 }
 0x1ea   : > { %v4806_v54 = vadd.f32 %v1435_v53, %v4636_v51  ;;  %v4809_v41 = vadd.f32 %v1512_v50, %v4638_v52  ;;  %v4811_v47 = vpop.f32.mrf.mxu0  ;;  %v4813_v1 = vpop.f32.mrf.mxu1 }
 0x1eb   : > { %5217 = vst [vmem:[#allocation10_spill] sm:$0xff] %v4811_v47  ;;  %2219 = vmatpush.bf16.msra.mxu1 %v4129_v25 }
 0x1ec   : > { %5218 = vst [vmem:[#allocation11_spill] sm:$0xff] %v4813_v1  ;;  %2248 = vmatpush.bf16.msra.mxu2 %v4142_v29 }
 0x1ef   : > { %2220 = vmatpush.bf16.msra.mxu1 %v4166_v35  ;;  %v3413_v35 = vld [vmem:[%s5204_s3 + $0x80] sm:$0xff] }
 0x1f0   : > { %2249 = vmatpush.bf16.msra.mxu2 %v4175_v36 }
 0x1f1   : > { %v4822_v51 = vpop.f32.mrf.mxu2  ;;  %v4824_v52 = vpop.f32.mrf.mxu3 }
 0x1f2   : > { %5219 = vst [vmem:[#allocation12_spill] sm:$0xff] %v4822_v51  ;;  %v1567_v53 = vpop.f32.mrf.mxu0  ;;  %v1596_v39 = vpop.f32.mrf.mxu1 }
 0x1f3   : > { %5220 = vst [vmem:[#allocation13_spill] sm:$0xff] %v4824_v52  ;;  %v1674_v20 = vmax.f32 %v1567_v53, %v1596_v39  ;;  %v3414_v53 = vld [vmem:[%s5204_s3 + $0x88] sm:$0xff] }
 0x1f9   : > { %v1625_v18 = vpop.f32.mrf.mxu2  ;;  %v1654_v19 = vpop.f32.mrf.mxu3 }
 0x1fa   : > { %v1682_v21 = vmax.f32 %v1625_v18, %v1654_v19  ;;  %v1569_v29 = vpop.f32.mrf.mxu0  ;;  %v1598_v30 = vpop.f32.mrf.mxu1 }
 0x1fb   : > { %v1675_v25 = vmax.f32 %v1569_v29, %v1598_v30 }
 0x1fc   : > { %v1690_v50 = vmax.f32 %v1674_v20, %v1682_v21 }
 0x1fe   : > { %v1698_v24 = vadd.f32 %v4392_v45, %v1690_v50 }
 0x200   : > { %v1706_v52 = vmax.f32 %v1698_v24, 0.0 }
 0x201   : > { %v1627_v15 = vpop.f32.mrf.mxu2  ;;  %v1656_v62 = vpop.f32.mrf.mxu3 }
 0x202   : > { %v1683_v16 = vmax.f32 %v1627_v15, %v1656_v62  ;;  %v1572_v36 = vpop.f32.mrf.mxu0  ;;  %v1601_v17 = vpop.f32.mrf.mxu1  ;;  %v1723_v20 = vmul.f32 %v3413_v35, %v1706_v52 }
 0x203   : > { %v1676_v29 = vmax.f32 %v1572_v36, %v1601_v17  ;;  %v3415_v17 = vld [vmem:[%s5204_s3 + $0x90] sm:$0xff] }
 0x204   : > { %v1691_v37 = vmax.f32 %v1675_v25, %v1683_v16 }
 0x206   : > { %v1699_v34 = vadd.f32 %v4392_v45, %v1691_v37 }
 0x208   : > { %v1707_v39 = vmax.f32 %v1699_v34, 0.0 }
 0x209   : > { %v1630_v18 = vpop.f32.mrf.mxu2  ;;  %v1659_v19 = vpop.f32.mrf.mxu3 }
 0x20a   : > { %v1724_v21 = vmul.f32 %v3414_v53, %v1707_v39  ;;  %v1684_v30 = vmax.f32 %v1630_v18, %v1659_v19  ;;  %v1574_v50 = vpop.f32.mrf.mxu0  ;;  %v1603_v15 = vpop.f32.mrf.mxu1  ;;  %v3416_v53 = vld [vmem:[%s5204_s3 + $0x98] sm:$0xff] }
 0x20b   : > { %v1677_v51 = vmax.f32 %v1574_v50, %v1603_v15 }
 0x20c   : > { %v1731_v62 = vpack.c.bf16 %v1724_v21, %v1723_v20  ;;  %v1692_v24 = vmax.f32 %v1676_v29, %v1684_v30 }
 0x20e   : > { %1808 = vmatmul.bf16.vlgmr.msrb.gmra.mxu0 %v1731_v62  ;;  %1902 = vmatmul.bf16.vlgmr.msrb.gmra.mxu1 %v1731_v62  ;;  %v1700_v37 = vadd.f32 %v4392_v45, %v1692_v24 }
 0x20f   : > { %1996 = vmatmul.bf16.vlgmr.msrb.gmra.mxu2 %v1731_v62  ;;  %2090 = vmatmul.bf16.vlgmr.msrb.gmra.mxu3 %v1731_v62 }
 0x210   : > { %v1708_v35 = vmax.f32 %v1700_v37, 0.0 }
 0x211   : > { %v1632_v25 = vpop.f32.mrf.mxu2  ;;  %v1661_v16 = vpop.f32.mrf.mxu3 }
 0x212   : > { %v1685_v34 = vmax.f32 %v1632_v25, %v1661_v16  ;;  %v1577_v1 = vpop.f32.mrf.mxu0  ;;  %v1606_v47 = vpop.f32.mrf.mxu1  ;;  %v1725_v20 = vmul.f32 %v3415_v17, %v1708_v35 }
 0x213   : > { %v1678_v29 = vmax.f32 %v1577_v1, %v1606_v47  ;;  %v3417_v1 = vld [vmem:[%s5204_s3 + $0xa0] sm:$0xff] }
 0x214   : > { %v1693_v52 = vmax.f32 %v1677_v51, %v1685_v34 }
 0x216   : > { %v1701_v36 = vadd.f32 %v4392_v45, %v1693_v52 }
 0x218   : > { %v1709_v39 = vmax.f32 %v1701_v36, 0.0 }
 0x219   : > { %v1635_v18 = vpop.f32.mrf.mxu2  ;;  %v1664_v19 = vpop.f32.mrf.mxu3 }
 0x21a   : > { %v1726_v21 = vmul.f32 %v3416_v53, %v1709_v39  ;;  %v1686_v30 = vmax.f32 %v1635_v18, %v1664_v19  ;;  %v1579_v50 = vpop.f32.mrf.mxu0  ;;  %v1608_v51 = vpop.f32.mrf.mxu1  ;;  %v3418_v53 = vld [vmem:[%s5204_s3 + $0xa8] sm:$0xff] }
 0x21b   : > { %v1679_v37 = vmax.f32 %v1579_v50, %v1608_v51 }
 0x21c   : > { %v1732_v15 = vpack.c.bf16 %v1726_v21, %v1725_v20  ;;  %v1694_v62 = vmax.f32 %v1678_v29, %v1686_v30 }
 0x21e   : > { %1813 = vmatmul.bf16.gmra.mxu0 %v1732_v15  ;;  %1907 = vmatmul.bf16.gmra.mxu1 %v1732_v15  ;;  %v1702_v16 = vadd.f32 %v4392_v45, %v1694_v62 }
 0x21f   : > { %2001 = vmatmul.bf16.gmra.mxu2 %v1732_v15  ;;  %2095 = vmatmul.bf16.gmra.mxu3 %v1732_v15 }
 0x220   : > { %v1710_v17 = vmax.f32 %v1702_v16, 0.0 }
 0x221   : > { %v1637_v24 = vpop.f32.mrf.mxu2  ;;  %v1666_v25 = vpop.f32.mrf.mxu3 }
 0x222   : > { %v1687_v34 = vmax.f32 %v1637_v24, %v1666_v25  ;;  %v1582_v36 = vpop.f32.mrf.mxu0  ;;  %v1611_v35 = vpop.f32.mrf.mxu1  ;;  %v1727_v20 = vmul.f32 %v3417_v1, %v1710_v17 }
 0x223   : > { %v1680_v29 = vmax.f32 %v1582_v36, %v1611_v35  ;;  %v3419_v35 = vld [vmem:[%s5204_s3 + $0xb0] sm:$0xff] }
 0x224   : > { %v1695_v52 = vmax.f32 %v1679_v37, %v1687_v34 }
 0x226   : > { %v1703_v47 = vadd.f32 %v4392_v45, %v1695_v52 }
 0x228   : > { %v1711_v39 = vmax.f32 %v1703_v47, 0.0  ;;  %v3420_v47 = vld [vmem:[%s5204_s3 + $0xb8] sm:$0xff] }
 0x229   : > { %v1640_v18 = vpop.f32.mrf.mxu2  ;;  %v1669_v19 = vpop.f32.mrf.mxu3 }
 0x22a   : > { %v1728_v21 = vmul.f32 %v3418_v53, %v1711_v39  ;;  %v1688_v30 = vmax.f32 %v1640_v18, %v1669_v19  ;;  %v1584_v15 = vpop.f32.mrf.mxu0  ;;  %v1613_v62 = vpop.f32.mrf.mxu1  ;;  %v3974_v19 = vld [vmem:[%s4171_s17 + $0x68] sm:$0xff] }
 0x22b   : > { %v1681_v37 = vmax.f32 %v1584_v15, %v1613_v62 }
 0x22c   : > { %v1733_v50 = vpack.c.bf16 %v1728_v21, %v1727_v20  ;;  %v1696_v51 = vmax.f32 %v1680_v29, %v1688_v30  ;;  %v3975_v20 = vld [vmem:[%s4171_s17 + $0x70] sm:$0xff]  ;;  %v3976_v21 = vld [vmem:[%s4171_s17 + $0x78] sm:$0xff] }
 0x22d   : > { %v4000_v29 = vld [vmem:[%s5205_s4 + $0x2f8] sm:$0xff] }
 0x22e   : > { %1818 = vmatmul.bf16.gmra.mxu0 %v1733_v50  ;;  %1912 = vmatmul.bf16.gmra.mxu1 %v1733_v50  ;;  %v1704_v16 = vadd.f32 %v4392_v45, %v1696_v51  ;;  %v4008_v30 = vld [vmem:[%s5205_s4 + $0x3f8] sm:$0xff] }
 0x22f   : > { %2006 = vmatmul.bf16.gmra.mxu2 %v1733_v50  ;;  %2100 = vmatmul.bf16.gmra.mxu3 %v1733_v50 }
 0x230   : > { %v1712_v17 = vmax.f32 %v1704_v16, 0.0  ;;  %2614 = vmatpush.bf16.msrb.mxu2 %v4000_v29  ;;  %2708 = vmatpush.bf16.msrb.mxu3 %v4008_v30  ;;  %v3999_v16 = vld [vmem:[%s5205_s4 + $0x2f0] sm:$0xff]  ;;  %v3997_v29 = vld [vmem:[%s5205_s4 + $0x2e0] sm:$0xff] }
 0x231   : > { %v1642_v24 = vpop.f32.mrf.mxu2  ;;  %v1671_v25 = vpop.f32.mrf.mxu3 }
 0x232   : > { %v1689_v34 = vmax.f32 %v1642_v24, %v1671_v25  ;;  %v1729_v53 = vmul.f32 %v3419_v35, %v1712_v17  ;;  %v3984_v24 = vld [vmem:[%s5205_s4 + $0xf8] sm:$0xff]  ;;  %v3983_v35 = vld [vmem:[%s5205_s4 + $0xf0] sm:$0xff] }
 0x233   : > { %v3992_v25 = vld [vmem:[%s5205_s4 + $0x1f8] sm:$0xff]  ;;  %2426 = vmatpush.bf16.msrb.mxu0 %v3984_v24 }
 0x234   : > { %v1697_v52 = vmax.f32 %v1681_v37, %v1689_v34  ;;  %2520 = vmatpush.bf16.msrb.mxu1 %v3992_v25  ;;  %2615 = vmatpush.bf16.msrb.mxu2 %v3999_v16  ;;  %v3981_v16 = vld [vmem:[%s5205_s4 + $0xe0] sm:$0xff] }
 0x236   : > { %v1705_v36 = vadd.f32 %v4392_v45, %v1697_v52  ;;  %v3973_v45 = vld [vmem:[%s4171_s17 + $0x60] sm:$0xff] }
 0x237   : > { %2427 = vmatpush.bf16.msrb.mxu0 %v3983_v35 }
 0x238   : > { %v1713_v1 = vmax.f32 %v1705_v36, 0.0 }
 0x23a   : > { %v1730_v39 = vmul.f32 %v3420_v47, %v1713_v1  ;;  %v3991_v47 = vld [vmem:[%s5205_s4 + $0x1f0] sm:$0xff] }
 0x23b   : > { %2521 = vmatpush.bf16.msrb.mxu1 %v3991_v47 }
 0x23c   : > { %v1734_v18 = vpack.c.bf16 %v1730_v39, %v1729_v53 }
 0x23e   : > { %1823 = vmatmul.bf16.gmra.mxu0 %v1734_v18  ;;  %1917 = vmatmul.bf16.gmra.mxu1 %v1734_v18 }
 0x23f   : > { %2011 = vmatmul.bf16.gmra.mxu2 %v1734_v18  ;;  %2105 = vmatmul.bf16.gmra.mxu3 %v1734_v18 }
 0x24e   : > { %3637 = vmatmul.msk.bf16.vlgmr.msra.gmra.mxu0 %vm343_vm1, %v3973_v45  ;;  %3641 = vmatmul.msk.bf16.vlgmr.msra.gmra.mxu1 %vm343_vm1, %v3973_v45 }
 0x24f   : > { %3645 = vmatmul.msk.bf16.vlgmr.msra.gmra.mxu2 %vm343_vm1, %v3973_v45  ;;  %3649 = vmatmul.msk.bf16.vlgmr.msra.gmra.mxu3 %vm343_vm1, %v3973_v45 }
 0x25e   : > { %3638 = vmatmul.msk.bf16.gmra.mxu0 %vm343_vm1, %v3974_v19  ;;  %3642 = vmatmul.msk.bf16.gmra.mxu1 %vm343_vm1, %v3974_v19 }
 0x25f   : > { %3646 = vmatmul.msk.bf16.gmra.mxu2 %vm343_vm1, %v3974_v19  ;;  %3650 = vmatmul.msk.bf16.gmra.mxu3 %vm343_vm1, %v3974_v19 }
 0x26e   : > { %3639 = vmatmul.msk.bf16.gmra.mxu0 %vm343_vm1, %v3975_v20  ;;  %3643 = vmatmul.msk.bf16.gmra.mxu1 %vm343_vm1, %v3975_v20 }
 0x26f   : > { %3647 = vmatmul.msk.bf16.gmra.mxu2 %vm343_vm1, %v3975_v20  ;;  %3651 = vmatmul.msk.bf16.gmra.mxu3 %vm343_vm1, %v3975_v20  ;;  %v3982_v20 = vld [vmem:[%s5205_s4 + $0xe8] sm:$0xff] }
 0x270   : > { %2428 = vmatpush.bf16.msrb.mxu0 %v3982_v20  ;;  %v3995_v20 = vld [vmem:[%s5205_s4 + $0x2d0] sm:$0xff] }
 0x274   : > { %2429 = vmatpush.bf16.msrb.mxu0 %v3981_v16 }
 0x27e   : > { %3640 = vmatmul.msk.bf16.gmra.mxu0 %vm343_vm1, %v3976_v21  ;;  %3644 = vmatmul.msk.bf16.gmra.mxu1 %vm343_vm1, %v3976_v21 }
 0x27f   : > { %3648 = vmatmul.msk.bf16.gmra.mxu2 %vm343_vm1, %v3976_v21  ;;  %3652 = vmatmul.msk.bf16.gmra.mxu3 %vm343_vm1, %v3976_v21  ;;  %v3990_v21 = vld [vmem:[%s5205_s4 + $0x1e8] sm:$0xff] }
 0x280   : > { %2522 = vmatpush.bf16.msrb.mxu1 %v3990_v21 }
 0x28b   : > { %v1809_v50 = vpop.f32.mrf.mxu0  ;;  %v1903_v51 = vpop.f32.mrf.mxu1 }
 0x28c   : > { %v4893_v15 = vadd.f32 %v1809_v50, %v4654_v59  ;;  %v4896_v62 = vadd.f32 %v1903_v51, %v4656_v46  ;;  %v4007_v59 = vld [vmem:[%s5205_s4 + $0x3f0] sm:$0xff] }
 0x28d   : > { %2709 = vmatpush.bf16.msrb.mxu3 %v4007_v59  ;;  %v3989_v59 = vld [vmem:[%s5205_s4 + $0x1e0] sm:$0xff] }
 0x28e   : > { %2523 = vmatpush.bf16.msrb.mxu1 %v3989_v59 }
 0x292   : > { %v1997_v46 = vpop.f32.mrf.mxu2  ;;  %v2091_v37 = vpop.f32.mrf.mxu3 }
 0x293   : > { %v4911_v34 = vadd.f32 %v1997_v46, %v4671_v6  ;;  %v4914_v52 = vadd.f32 %v2091_v37, %v4674_v2  ;;  %v4916_v17 = vpop.f32.mrf.mxu0  ;;  %v4918_v36 = vpop.f32.mrf.mxu1  ;;  %v3998_v6 = vld [vmem:[%s5205_s4 + $0x2e8] sm:$0xff] }
 0x294   : > { %v4006_v2 = vld [vmem:[%s5205_s4 + $0x3e8] sm:$0xff]  ;;  %2616 = vmatpush.bf16.msrb.mxu2 %v3998_v6 }
 0x295   : > { %2710 = vmatpush.bf16.msrb.mxu3 %v4006_v2 }
 0x298   : > { %2617 = vmatpush.bf16.msrb.mxu2 %v3997_v29 }
 0x29a   : > { %v4932_v1 = vpop.f32.mrf.mxu2  ;;  %v4934_v53 = vpop.f32.mrf.mxu3 }
 0x29b   : > { %v1814_v39 = vpop.f32.mrf.mxu0  ;;  %v1908_v18 = vpop.f32.mrf.mxu1 }
 0x29c   : > { %v4937_v45 = vadd.f32 %v1814_v39, %v4697_v40  ;;  %v4940_v19 = vadd.f32 %v1908_v18, %v4700_v57  ;;  %v4005_v40 = vld [vmem:[%s5205_s4 + $0x3e0] sm:$0xff]  ;;  %v3980_v39 = vld [vmem:[%s5205_s4 + $0xd8] sm:$0xff] }
 0x29d   : > { %2711 = vmatpush.bf16.msrb.mxu3 %v4005_v40  ;;  %v3988_v18 = vld [vmem:[%s5205_s4 + $0x1d8] sm:$0xff]  ;;  %2430 = vmatpush.bf16.msrb.mxu0 %v3980_v39 }
 0x29e   : > { %2524 = vmatpush.bf16.msrb.mxu1 %v3988_v18 }
 0x2a2   : > { %v2002_v57 = vpop.f32.mrf.mxu2  ;;  %v2096_v30 = vpop.f32.mrf.mxu3 }
 0x2a3   : > { %v4955_v50 = vadd.f32 %v2002_v57, %v4715_v11  ;;  %v4958_v51 = vadd.f32 %v2096_v30, %v4718_v12  ;;  %v4960_v24 = vpop.f32.mrf.mxu0  ;;  %v4962_v25 = vpop.f32.mrf.mxu1  ;;  %v3996_v11 = vld [vmem:[%s5205_s4 + $0x2d8] sm:$0xff] }
 0x2a4   : > { %v4004_v12 = vld [vmem:[%s5205_s4 + $0x3d8] sm:$0xff]  ;;  %2618 = vmatpush.bf16.msrb.mxu2 %v3996_v11  ;;  %v3979_v11 = vld [vmem:[%s5205_s4 + $0xd0] sm:$0xff] }
 0x2a5   : > { %2712 = vmatpush.bf16.msrb.mxu3 %v4004_v12  ;;  %2431 = vmatpush.bf16.msrb.mxu0 %v3979_v11  ;;  %v3977_v11 = vld [vmem:[%s5205_s4 + $0xc0] sm:$0xff] }
 0x2a8   : > { %2619 = vmatpush.bf16.msrb.mxu2 %v3995_v20  ;;  %v3978_v20 = vld [vmem:[%s5205_s4 + $0xc8] sm:$0xff] }
 0x2a9   : > { %2432 = vmatpush.bf16.msrb.mxu0 %v3978_v20 }
 0x2aa   : > { %v4976_v46 = vpop.f32.mrf.mxu2  ;;  %v4978_v37 = vpop.f32.mrf.mxu3 }
 0x2ab   : > { %v1819_v35 = vpop.f32.mrf.mxu0  ;;  %v1913_v47 = vpop.f32.mrf.mxu1 }
 0x2ac   : > { %v4981_v6 = vadd.f32 %v1819_v35, %v4741_v63  ;;  %v4984_v2 = vadd.f32 %v1913_v47, %v4744_v0  ;;  %v4003_v63 = vld [vmem:[%s5205_s4 + $0x3d0] sm:$0xff]  ;;  %v4002_v47 = vld [vmem:[%s5205_s4 + $0x3c8] sm:$0xff] }
 0x2ad   : > { %2713 = vmatpush.bf16.msrb.mxu3 %v4003_v63  ;;  %v3986_v63 = vld [vmem:[%s5205_s4 + $0x1c8] sm:$0xff]  ;;  %2433 = vmatpush.bf16.msrb.mxu0 %v3977_v11 }
 0x2b1   : > { %2714 = vmatpush.bf16.msrb.mxu3 %v4002_v47  ;;  %v3985_v47 = vld [vmem:[%s5205_s4 + $0x1c0] sm:$0xff] }
 0x2b2   : > { %v2007_v0 = vpop.f32.mrf.mxu2  ;;  %v2101_v21 = vpop.f32.mrf.mxu3 }
 0x2b3   : > { %v4999_v29 = vadd.f32 %v2007_v0, %v4759_v13  ;;  %v5002_v40 = vadd.f32 %v2101_v21, %v4762_v55  ;;  %v5004_v57 = vpop.f32.mrf.mxu0  ;;  %v5006_v30 = vpop.f32.mrf.mxu1  ;;  %v3987_v13 = vld [vmem:[%s5205_s4 + $0x1d0] sm:$0xff]  ;;  %v3994_v55 = vld [vmem:[%s5205_s4 + $0x2c8] sm:$0xff]  ;;  %v4001_v21 = vld [vmem:[%s5205_s4 + $0x3c0] sm:$0xff] }
 0x2b4   : > { %2525 = vmatpush.bf16.msrb.mxu1 %v3987_v13  ;;  %2620 = vmatpush.bf16.msrb.mxu2 %v3994_v55 }
 0x2b5   : > { %5221 = vst [vmem:[#allocation14_spill] sm:$0xff] %v4999_v29  ;;  %2715 = vmatpush.bf16.msrb.mxu3 %v4001_v21 }
 0x2b6   : > { %5222 = vst [vmem:[#allocation15_spill] sm:$0xff] %v5002_v40 }
 0x2b8   : > { %2526 = vmatpush.bf16.msrb.mxu1 %v3986_v63 }
 0x2ba   : > { %v5008_v16 = vpop.f32.mrf.mxu2  ;;  %v5010_v59 = vpop.f32.mrf.mxu3 }
 0x2bb   : > { %5223 = vst [vmem:[#allocation16_spill] sm:$0xff] %v5008_v16  ;;  %v1824_v12 = vpop.f32.mrf.mxu0  ;;  %v1918_v35 = vpop.f32.mrf.mxu1 }
 0x2bc   : > { %5224 = vst [vmem:[#allocation17_spill] sm:$0xff] %v5010_v59  ;;  %v5025_v39 = vadd.f32 %v1824_v12, %v4785_v42  ;;  %v5028_v18 = vadd.f32 %v1918_v35, %v4788_v7  ;;  %v3993_v7 = vld [vmem:[%s5205_s4 + $0x2c0] sm:$0xff]  ;;  %2527 = vmatpush.bf16.msrb.mxu1 %v3985_v47 }
 0x2bd   : > { %2621 = vmatpush.bf16.msrb.mxu2 %v3993_v7  ;;  %v5065_v7 = vld [vmem:[%s5203_s2] ss:$0 sm:$0xff] }
 0x2be   : > { %5225 = vst [vmem:[#allocation18_spill] sm:$0xff] %v5025_v39 }
 0x2bf   : > { %5226 = vst [vmem:[#allocation19_spill] sm:$0xff] %v5028_v18 }
 0x2c2   : > { %v2012_v0 = vpop.f32.mrf.mxu2  ;;  %v2106_v42 = vpop.f32.mrf.mxu3 }
 0x2c3   : > { %v5046_v13 = vadd.f32 %v2012_v0, %v4806_v54  ;;  %v5049_v12 = vadd.f32 %v2106_v42, %v4809_v41  ;;  %v5051_v35 = vpop.f32.mrf.mxu0  ;;  %v5053_v55 = vpop.f32.mrf.mxu1 }
 0x2c4   : > { %5229 = vst [vmem:[#allocation22_spill] sm:$0xff] %v5051_v35 }
 0x2c5   : > { %5227 = vst [vmem:[#allocation20_spill] sm:$0xff] %v5046_v13 }
 0x2c6   : > { %5228 = vst [vmem:[#allocation21_spill] sm:$0xff] %v5049_v12 }
 0x2c7   : > { %5230 = vst [vmem:[#allocation23_spill] sm:$0xff] %v5053_v55 }
 0x2ca   : > { %v5058_v20 = vpop.f32.mrf.mxu2  ;;  %v5060_v63 = vpop.f32.mrf.mxu3 }
 0x2cb   : > { %5231 = vst [vmem:[#allocation24_spill] sm:$0xff] %v5058_v20  ;;  %v2193_v54 = vpop.f32.mrf.mxu0  ;;  %v2222_v0 = vpop.f32.mrf.mxu1 }
 0x2cc   : > { %5232 = vst [vmem:[#allocation25_spill] sm:$0xff] %v5060_v63  ;;  %v2300_v12 = vmax.f32 %v2193_v54, %v2222_v0 }
 0x2d2   : > { %v2251_v41 = vpop.f32.mrf.mxu2  ;;  %v2280_v42 = vpop.f32.mrf.mxu3 }
 0x2d3   : > { %v2308_v13 = vmax.f32 %v2251_v41, %v2280_v42  ;;  %v2195_v35 = vpop.f32.mrf.mxu0  ;;  %v2224_v55 = vpop.f32.mrf.mxu1 }
 0x2d4   : > { %v2301_v11 = vmax.f32 %v2195_v35, %v2224_v55 }
 0x2d5   : > { %v2316_v18 = vmax.f32 %v2300_v12, %v2308_v13  ;;  %v3653_v13 = vld [vmem:[%s5204_s3 + $0xc0] sm:$0xff]  ;;  %v3654_v12 = vld [vmem:[%s5204_s3 + $0xc8] sm:$0xff] }
 0x2d7   : > { %v2324_v21 = vadd.f32 %v5065_v7, %v2316_v18 }
 0x2d9   : > { %v2332_v56 = vmax.f32 %v2324_v21, 0.0 }
 0x2da   : > { %v2253_v39 = vpop.f32.mrf.mxu2  ;;  %v2282_v59 = vpop.f32.mrf.mxu3 }
 0x2db   : > { %v2309_v47 = vmax.f32 %v2253_v39, %v2282_v59  ;;  %v2198_v63 = vpop.f32.mrf.mxu0  ;;  %v2227_v20 = vpop.f32.mrf.mxu1  ;;  %v2349_v18 = vmul.f32 %v3653_v13, %v2332_v56 }
 0x2dc   : > { %v2302_v59 = vmax.f32 %v2198_v63, %v2227_v20  ;;  %v3655_v63 = vld [vmem:[%s5204_s3 + $0xd0] sm:$0xff] }
 0x2dd   : > { %v2317_v16 = vmax.f32 %v2301_v11, %v2309_v47 }
 0x2df   : > { %v2325_v54 = vadd.f32 %v5065_v7, %v2317_v16 }
 0x2e1   : > { %v2333_v0 = vmax.f32 %v2325_v54, 0.0 }
 0x2e2   : > { %v2256_v41 = vpop.f32.mrf.mxu2  ;;  %v2285_v42 = vpop.f32.mrf.mxu3 }
 0x2e3   : > { %v2350_v35 = vmul.f32 %v3654_v12, %v2333_v0  ;;  %v2310_v39 = vmax.f32 %v2256_v41, %v2285_v42  ;;  %v2200_v55 = vpop.f32.mrf.mxu0  ;;  %v2229_v11 = vpop.f32.mrf.mxu1  ;;  %v3656_v12 = vld [vmem:[%s5204_s3 + $0xd8] sm:$0xff] }
 0x2e4   : > { %v2303_v43 = vmax.f32 %v2200_v55, %v2229_v11 }
 0x2e5   : > { %v2357_v21 = vpack.c.bf16 %v2350_v35, %v2349_v18  ;;  %v2318_v47 = vmax.f32 %v2302_v59, %v2310_v39 }
 0x2e7   : > { %2434 = vmatmul.bf16.vlgmr.msrb.gmra.mxu0 %v2357_v21  ;;  %2528 = vmatmul.bf16.vlgmr.msrb.gmra.mxu1 %v2357_v21  ;;  %v2326_v58 = vadd.f32 %v5065_v7, %v2318_v47 }
 0x2e8   : > { %2622 = vmatmul.bf16.vlgmr.msrb.gmra.mxu2 %v2357_v21  ;;  %2716 = vmatmul.bf16.vlgmr.msrb.gmra.mxu3 %v2357_v21 }
 0x2e9   : > { %v2334_v13 = vmax.f32 %v2326_v58, 0.0 }
 0x2ea   : > { %v2258_v16 = vpop.f32.mrf.mxu2  ;;  %v2287_v44 = vpop.f32.mrf.mxu3 }
 0x2eb   : > { %v2311_v54 = vmax.f32 %v2258_v16, %v2287_v44  ;;  %v2203_v40 = vpop.f32.mrf.mxu0  ;;  %v2232_v29 = vpop.f32.mrf.mxu1  ;;  %v2351_v18 = vmul.f32 %v3655_v63, %v2334_v13 }
 0x2ec   : > { %v2304_v44 = vmax.f32 %v2203_v40, %v2232_v29  ;;  %v3657_v40 = vld [vmem:[%s5204_s3 + $0xe0] sm:$0xff] }
 0x2ed   : > { %v2319_v56 = vmax.f32 %v2303_v43, %v2311_v54 }
 0x2ef   : > { %v2327_v20 = vadd.f32 %v5065_v7, %v2319_v56 }
 0x2f1   : > { %v2335_v0 = vmax.f32 %v2327_v20, 0.0 }
 0x2f2   : > { %v2261_v41 = vpop.f32.mrf.mxu2  ;;  %v2290_v42 = vpop.f32.mrf.mxu3 }
 0x2f3   : > { %v2352_v35 = vmul.f32 %v3656_v12, %v2335_v0  ;;  %v2312_v59 = vmax.f32 %v2261_v41, %v2290_v42  ;;  %v2205_v39 = vpop.f32.mrf.mxu0  ;;  %v2234_v43 = vpop.f32.mrf.mxu1  ;;  %v3658_v12 = vld [vmem:[%s5204_s3 + $0xe8] sm:$0xff] }
 0x2f4   : > { %v2305_v16 = vmax.f32 %v2205_v39, %v2234_v43 }
 0x2f5   : > { %v2358_v58 = vpack.c.bf16 %v2352_v35, %v2351_v18  ;;  %v2320_v55 = vmax.f32 %v2304_v44, %v2312_v59 }
 0x2f7   : > { %2439 = vmatmul.bf16.gmra.mxu0 %v2358_v58  ;;  %2533 = vmatmul.bf16.gmra.mxu1 %v2358_v58  ;;  %v2328_v47 = vadd.f32 %v5065_v7, %v2320_v55 }
 0x2f8   : > { %2627 = vmatmul.bf16.gmra.mxu2 %v2358_v58  ;;  %2721 = vmatmul.bf16.gmra.mxu3 %v2358_v58 }
 0x2f9   : > { %v2336_v63 = vmax.f32 %v2328_v47, 0.0 }
 0x2fa   : > { %v2263_v11 = vpop.f32.mrf.mxu2  ;;  %v2292_v21 = vpop.f32.mrf.mxu3 }
 0x2fb   : > { %v2313_v54 = vmax.f32 %v2263_v11, %v2292_v21  ;;  %v2208_v20 = vpop.f32.mrf.mxu0  ;;  %v2237_v13 = vpop.f32.mrf.mxu1  ;;  %v2353_v18 = vmul.f32 %v3657_v40, %v2336_v63 }
 0x2fc   : > { %v2306_v44 = vmax.f32 %v2208_v20, %v2237_v13  ;;  %v3659_v20 = vld [vmem:[%s5204_s3 + $0xf0] sm:$0xff]  ;;  %v3660_v13 = vld [vmem:[%s5204_s3 + $0xf8] sm:$0xff] }
 0x2fd   : > { %v2321_v56 = vmax.f32 %v2305_v16, %v2313_v54 }
 0x2ff   : > { %v2329_v29 = vadd.f32 %v5065_v7, %v2321_v56 }
 0x301   : > { %v2337_v0 = vmax.f32 %v2329_v29, 0.0 }
 0x302   : > { %v2266_v41 = vpop.f32.mrf.mxu2  ;;  %v2295_v42 = vpop.f32.mrf.mxu3 }
 0x303   : > { %v2354_v35 = vmul.f32 %v3658_v12, %v2337_v0  ;;  %v2314_v59 = vmax.f32 %v2266_v41, %v2295_v42  ;;  %v2210_v58 = vpop.f32.mrf.mxu0  ;;  %v2239_v55 = vpop.f32.mrf.mxu1 }
 0x304   : > { %v2307_v16 = vmax.f32 %v2210_v58, %v2239_v55 }
 0x305   : > { %v2359_v39 = vpack.c.bf16 %v2354_v35, %v2353_v18  ;;  %v2322_v43 = vmax.f32 %v2306_v44, %v2314_v59  ;;  %v1269_v59 = vadd.f32 %v4676_v3, %v4577_v22  ;;  %v5112_v22 = vld [vmem:[%s5206_s5] ss:$0 sm:$0xff]  ;;  %v1423_v3 = vadd.f32 %v4692_v61, %v4581_v26 }
 0x307   : > { %2444 = vmatmul.bf16.gmra.mxu0 %v2359_v39  ;;  %2538 = vmatmul.bf16.gmra.mxu1 %v2359_v39  ;;  %v2330_v47 = vadd.f32 %v5065_v7, %v2322_v43  ;;  %v2112_v43 = vadd.f32 %v4916_v17, %v1269_v59 }
 0x308   : > { %2632 = vmatmul.bf16.gmra.mxu2 %v2359_v39  ;;  %2726 = vmatmul.bf16.gmra.mxu3 %v2359_v39  ;;  %v1346_v39 = vadd.f32 %v4678_v4, %v4579_v23  ;;  %v1500_v4 = vadd.f32 %v4694_v38, %v4583_v27 }
 0x309   : > { %v2338_v29 = vmax.f32 %v2330_v47, 0.0 }
 0x30a   : > { %v2268_v11 = vpop.f32.mrf.mxu2  ;;  %v2297_v21 = vpop.f32.mrf.mxu3  ;;  %v2120_v58 = vadd.f32 %v4918_v36, %v1346_v39  ;;  %v2136_v17 = vadd.f32 %v4934_v53, %v1500_v4  ;;  %v1356_v4 = vadd.f32 %v4766_v48, %v4621_v10 }
 0x30b   : > { %v2315_v54 = vmax.f32 %v2268_v11, %v2297_v21  ;;  %v2355_v12 = vmul.f32 %v3659_v20, %v2338_v29 }
 0x30d   : > { %v2323_v56 = vmax.f32 %v2307_v16, %v2315_v54 }
 0x30f   : > { %v2331_v63 = vadd.f32 %v5065_v7, %v2323_v56 }
 0x311   : > { %v2339_v40 = vmax.f32 %v2331_v63, 0.0 }
 0x313   : > { %v2356_v0 = vmul.f32 %v3660_v13, %v2339_v40 }
 0x315   : > { %v2360_v41 = vpack.c.bf16 %v2356_v0, %v2355_v12 }
 0x317   : > { %2449 = vmatmul.bf16.gmra.mxu0 %v2360_v41  ;;  %2543 = vmatmul.bf16.gmra.mxu1 %v2360_v41 }
 0x318   : > { %2637 = vmatmul.bf16.gmra.mxu2 %v2360_v41  ;;  %2731 = vmatmul.bf16.gmra.mxu3 %v2360_v41  ;;  %v1274_v41 = vadd.f32 %v4720_v5, %v4598_v31 }
 0x364   : > { %v2435_v42 = vpop.f32.mrf.mxu0  ;;  %v2529_v18 = vpop.f32.mrf.mxu1 }
 0x365   : > { %v2737_v7 = vadd.f32 %v2435_v42, %v4893_v15  ;;  %v2745_v35 = vadd.f32 %v2529_v18, %v4896_v62  ;;  %v1351_v42 = vadd.f32 %v4722_v8, %v4600_v32 }
 0x367   : > { %v2769_v44 = vmax.f32 %v2737_v7, %v2745_v35  ;;  %v2114_v7 = vadd.f32 %v4960_v24, %v1274_v41  ;;  %v1428_v24 = vadd.f32 %v4736_v14, %v4602_v33 }
 0x36b   : > { %v2623_v55 = vpop.f32.mrf.mxu2  ;;  %v2717_v11 = vpop.f32.mrf.mxu3 }
 0x36c   : > { %v2753_v21 = vadd.f32 %v2623_v55, %v4911_v34  ;;  %v2761_v15 = vadd.f32 %v2717_v11, %v4914_v52  ;;  %v2437_v47 = vpop.f32.mrf.mxu0  ;;  %v2531_v62 = vpop.f32.mrf.mxu1  ;;  %v2128_v52 = vadd.f32 %v4932_v1, %v1423_v3 }
 0x36d   : > { %v2738_v16 = vadd.f32 %v2437_v47, %v2112_v43  ;;  %v2746_v54 = vadd.f32 %v2531_v62, %v2120_v58 }
 0x36e   : > { %v2777_v56 = vmax.f32 %v2753_v21, %v2761_v15 }
 0x36f   : > { %v2770_v23 = vmax.f32 %v2738_v16, %v2746_v54 }
 0x370   : > { %v2785_v34 = vmax.f32 %v2769_v44, %v2777_v56 }
 0x372   : > { %v2796_v36 = vadd.f32 %v5112_v22, %v2785_v34 }
 0x373   : > { %v2625_v29 = vpop.f32.mrf.mxu2  ;;  %v2719_v63 = vpop.f32.mrf.mxu3 }
 0x374   : > { %v2804_v20 = vmax.f32 %v2796_v36, 0.0  ;;  %v2754_v13 = vadd.f32 %v2625_v29, %v2128_v52  ;;  %v2762_v40 = vadd.f32 %v2719_v63, %v2136_v17  ;;  %v2440_v12 = vpop.f32.mrf.mxu0  ;;  %v2534_v0 = vpop.f32.mrf.mxu1  ;;  %v5233_v29 = vld [vmem:[#allocation14_spill] sm:$0xff] }
 0x375   : > { %v2739_v26 = vadd.f32 %v2440_v12, %v4937_v45  ;;  %v2747_v27 = vadd.f32 %v2534_v0, %v4940_v19  ;;  %v2122_v45 = vadd.f32 %v4962_v25, %v1351_v42  ;;  %v1505_v25 = vadd.f32 %v4738_v49, %v4604_v60  ;;  %v5240_v42 = vld [vmem:[#allocation17_spill] sm:$0xff] }
 0x376   : > { %v2812_v61 = vpack.c.bf16 %v2804_v20, %v2804_v20  ;;  %v2778_v38 = vmax.f32 %v2754_v13, %v2762_v40  ;;  %v5234_v20 = vld [vmem:[#allocation15_spill] sm:$0xff] }
 0x377   : > { %v2771_v1 = vmax.f32 %v2739_v26, %v2747_v27  ;;  %v5235_v26 = vld [vmem:[#allocation2_spill] sm:$0xff]  ;;  %v5236_v27 = vld [vmem:[#allocation8_spill] sm:$0xff] }
 0x378   : > { %2821 = vst.msk [vmem:[%s5125_s30] sm:$0xf] %vm2820_vm2, %v2812_v61  ;;  %v2786_v53 = vmax.f32 %v2770_v23, %v2778_v38  ;;  %v5237_v61 = vld [vmem:[#allocation3_spill] sm:$0xff]  ;;  %v5238_v38 = vld [vmem:[#allocation9_spill] sm:$0xff] }
 0x37a   : > { %v2797_v18 = vadd.f32 %v5112_v22, %v2786_v53  ;;  %v5239_v53 = vld [vmem:[#allocation16_spill] sm:$0xff] }
 0x37b   : > { %v2628_v19 = vpop.f32.mrf.mxu2  ;;  %v2722_v35 = vpop.f32.mrf.mxu3 }
 0x37c   : > { %v2805_v44 = vmax.f32 %v2797_v18, 0.0  ;;  %v2755_v59 = vadd.f32 %v2628_v19, %v4955_v50  ;;  %v2763_v39 = vadd.f32 %v2722_v35, %v4958_v51  ;;  %v2442_v43 = vpop.f32.mrf.mxu0  ;;  %v2536_v58 = vpop.f32.mrf.mxu1  ;;  %v2130_v50 = vadd.f32 %v4976_v46, %v1428_v24 }
 0x37d   : > { %v2740_v31 = vadd.f32 %v2442_v43, %v2114_v7  ;;  %v2748_v5 = vadd.f32 %v2536_v58, %v2122_v45  ;;  %v2138_v51 = vadd.f32 %v4978_v37, %v1505_v25  ;;  %v1279_v37 = vadd.f32 %v4764_v28, %v4619_v9  ;;  %v5241_v58 = vld [vmem:[#allocation18_spill] sm:$0xff] }
 0x37e   : > { %v2813_v55 = vpack.c.bf16 %v2805_v44, %v2805_v44  ;;  %v2779_v32 = vmax.f32 %v2755_v59, %v2763_v39 }
 0x37f   : > { %v2772_v8 = vmax.f32 %v2740_v31, %v2748_v5  ;;  %v2116_v52 = vadd.f32 %v5004_v57, %v1279_v37  ;;  %v1433_v57 = vadd.f32 %v5236_v27, %v5235_v26  ;;  %v5242_v5 = vld [vmem:[#allocation19_spill] sm:$0xff] }
 0x380   : > { %2822 = vst.msk [vmem:[%s5125_s30 + $0x4] sm:$0xf] %vm2820_vm2, %v2813_v55  ;;  %v2787_v11 = vmax.f32 %v2771_v1, %v2779_v32 }
 0x381   : > { %v2132_v41 = vadd.f32 %v5239_v53, %v1433_v57 }
 0x382   : > { %v2798_v21 = vadd.f32 %v5112_v22, %v2787_v11  ;;  %v5243_v11 = vld [vmem:[#allocation4_spill] sm:$0xff] }
 0x383   : > { %v2630_v15 = vpop.f32.mrf.mxu2  ;;  %v2724_v47 = vpop.f32.mrf.mxu3 }
 0x384   : > { %v2806_v62 = vmax.f32 %v2798_v21, 0.0  ;;  %v2756_v16 = vadd.f32 %v2630_v15, %v2130_v50  ;;  %v2764_v54 = vadd.f32 %v2724_v47, %v2138_v51  ;;  %v2445_v56 = vpop.f32.mrf.mxu0  ;;  %v2539_v33 = vpop.f32.mrf.mxu1  ;;  %v5244_v50 = vld [vmem:[#allocation10_spill] sm:$0xff]  ;;  %v5245_v21 = vld [vmem:[#allocation5_spill] sm:$0xff]  ;;  %v5246_v15 = vld [vmem:[#allocation11_spill] sm:$0xff] }
 0x385   : > { %v2741_v14 = vadd.f32 %v2445_v56, %v4981_v6  ;;  %v2749_v60 = vadd.f32 %v2539_v33, %v4984_v2  ;;  %v2124_v6 = vadd.f32 %v5006_v30, %v1356_v4  ;;  %v1510_v30 = vadd.f32 %v5238_v38, %v5237_v61  ;;  %v5248_v56 = vld [vmem:[#allocation23_spill] sm:$0xff] }
 0x386   : > { %v2814_v49 = vpack.c.bf16 %v2806_v62, %v2806_v62  ;;  %v2780_v23 = vmax.f32 %v2756_v16, %v2764_v54  ;;  %v1284_v51 = vadd.f32 %v5244_v50, %v5243_v11  ;;  %v1361_v47 = vadd.f32 %v5246_v15, %v5245_v21  ;;  %v5247_v16 = vld [vmem:[#allocation22_spill] sm:$0xff] }
 0x387   : > { %v2773_v3 = vmax.f32 %v2741_v14, %v2749_v60  ;;  %v2140_v18 = vadd.f32 %v5240_v42, %v1510_v30 }
 0x388   : > { %2823 = vst.msk [vmem:[%s5125_s30 + $0x8] sm:$0xf] %vm2820_vm2, %v2814_v49  ;;  %v2788_v46 = vmax.f32 %v2772_v8, %v2780_v23  ;;  %v2118_v54 = vadd.f32 %v5247_v16, %v1284_v51  ;;  %v2126_v33 = vadd.f32 %v5248_v56, %v1361_v47  ;;  %v5249_v23 = vld [vmem:[#allocation20_spill] sm:$0xff] }
 0x38a   : > { %v2799_v34 = vadd.f32 %v5112_v22, %v2788_v46  ;;  %v5250_v46 = vld [vmem:[#allocation21_spill] sm:$0xff] }
 0x38b   : > { %v2633_v2 = vpop.f32.mrf.mxu2  ;;  %v2727_v17 = vpop.f32.mrf.mxu3 }
 0x38c   : > { %v2807_v36 = vmax.f32 %v2799_v34, 0.0  ;;  %v2757_v63 = vadd.f32 %v2633_v2, %v5233_v29  ;;  %v2765_v13 = vadd.f32 %v2727_v17, %v5234_v20  ;;  %v2447_v40 = vpop.f32.mrf.mxu0  ;;  %v2541_v12 = vpop.f32.mrf.mxu1  ;;  %v5251_v29 = vld [vmem:[#allocation6_spill] sm:$0xff] }
 0x38d   : > { %v2742_v9 = vadd.f32 %v2447_v40, %v2116_v52  ;;  %v2750_v28 = vadd.f32 %v2541_v12, %v2124_v6  ;;  %v5254_v40 = vld [vmem:[#allocation13_spill] sm:$0xff] }
 0x38e   : > { %v2815_v0 = vpack.c.bf16 %v2807_v36, %v2807_v36  ;;  %v2781_v10 = vmax.f32 %v2757_v63, %v2765_v13  ;;  %v5252_v63 = vld [vmem:[#allocation12_spill] sm:$0xff]  ;;  %v5253_v13 = vld [vmem:[#allocation7_spill] sm:$0xff] }
 0x38f   : > { %v2774_v48 = vmax.f32 %v2742_v9, %v2750_v28  ;;  %v1438_v20 = vadd.f32 %v5252_v63, %v5251_v29  ;;  %v1515_v12 = vadd.f32 %v5254_v40, %v5253_v13  ;;  %v5255_v28 = vld [vmem:[#allocation24_spill] sm:$0xff] }
 0x390   : > { %2824 = vst.msk [vmem:[%s5125_s30 + $0xc] sm:$0xf] %vm2820_vm2, %v2815_v0  ;;  %v2789_v1 = vmax.f32 %v2773_v3, %v2781_v10  ;;  %v5256_v10 = vld [vmem:[#allocation25_spill] sm:$0xff] }
 0x391   : > { %v2134_v0 = vadd.f32 %v5255_v28, %v1438_v20 }
 0x392   : > { %v2800_v7 = vadd.f32 %v5112_v22, %v2789_v1 }
 0x393   : > { %v2635_v45 = vpop.f32.mrf.mxu2  ;;  %v2729_v19 = vpop.f32.mrf.mxu3 }
 0x394   : > { %v2808_v35 = vmax.f32 %v2800_v7, 0.0  ;;  %v2758_v44 = vadd.f32 %v2635_v45, %v2132_v41  ;;  %v2766_v59 = vadd.f32 %v2729_v19, %v2140_v18  ;;  %v2450_v39 = vpop.f32.mrf.mxu0  ;;  %v2544_v43 = vpop.f32.mrf.mxu1 }
 0x395   : > { %v2743_v31 = vadd.f32 %v2450_v39, %v5241_v58  ;;  %v2751_v55 = vadd.f32 %v2544_v43, %v5242_v5 }
 0x396   : > { %v2816_v32 = vpack.c.bf16 %v2808_v35, %v2808_v35  ;;  %v2782_v8 = vmax.f32 %v2758_v44, %v2766_v59 }
 0x397   : > { %v2775_v24 = vmax.f32 %v2743_v31, %v2751_v55 }
 0x398   : > { %2825 = vst.msk [vmem:[%s5125_s30 + $0x10] sm:$0xf] %vm2820_vm2, %v2816_v32  ;;  %v2790_v25 = vmax.f32 %v2774_v48, %v2782_v8  ;;  %v2142_v48 = vadd.f32 %v5256_v10, %v1515_v12 }
 0x39a   : > { %v2801_v62 = vadd.f32 %v5112_v22, %v2790_v25 }
 0x39b   : > { %v2638_v14 = vpop.f32.mrf.mxu2  ;;  %v2732_v60 = vpop.f32.mrf.mxu3 }
 0x39c   : > { %v2809_v49 = vmax.f32 %v2801_v62, 0.0  ;;  %v2759_v3 = vadd.f32 %v2638_v14, %v5249_v23  ;;  %v2767_v37 = vadd.f32 %v2732_v60, %v5250_v46  ;;  %v2452_v4 = vpop.f32.mrf.mxu0  ;;  %v2546_v34 = vpop.f32.mrf.mxu1 }
 0x39d   : > { %v2744_v52 = vadd.f32 %v2452_v4, %v2118_v54  ;;  %v2752_v6 = vadd.f32 %v2546_v34, %v2126_v33 }
 0x39e   : > { %v2817_v2 = vpack.c.bf16 %v2809_v49, %v2809_v49  ;;  %v2783_v17 = vmax.f32 %v2759_v3, %v2767_v37 }
 0x39f   : > { %v2776_v36 = vmax.f32 %v2744_v52, %v2752_v6 }
 0x3a0   : > { %2826 = vst.msk [vmem:[%s5125_s30 + $0x14] sm:$0xf] %vm2820_vm2, %v2817_v2  ;;  %v2791_v9 = vmax.f32 %v2775_v24, %v2783_v17 }
 0x3a2   : > { %v2802_v26 = vadd.f32 %v5112_v22, %v2791_v9 }
 0x3a3   : > { %v2640_v27 = vpop.f32.mrf.mxu2  ;;  %v2734_v57 = vpop.f32.mrf.mxu3 }
 0x3a4   : > { %v2810_v61 = vmax.f32 %v2802_v26, 0.0  ;;  %v2760_v38 = vadd.f32 %v2640_v27, %v2134_v0  ;;  %v2768_v30 = vadd.f32 %v2734_v57, %v2142_v48 }
 0x3a6   : > { %v2818_v1 = vpack.c.bf16 %v2810_v61, %v2810_v61  ;;  %v2784_v53 = vmax.f32 %v2760_v38, %v2768_v30 }
 0x3a8   : > { %2827 = vst.msk [vmem:[%s5125_s30 + $0x18] sm:$0xf] %vm2820_vm2, %v2818_v1  ;;  %v2792_v41 = vmax.f32 %v2776_v36, %v2784_v53 }
 0x3aa   : > { %v2803_v42 = vadd.f32 %v5112_v22, %v2792_v41 }
 0x3ac   : > { %v2811_v18 = vmax.f32 %v2803_v42, 0.0 }
 0x3ae   : > { %v2819_v7 = vpack.c.bf16 %v2811_v18, %v2811_v18 }
 0x3b0   : > { %2828 = vst.msk [vmem:[%s5125_s30 + $0x1c] sm:$0xf] %vm2820_vm2, %v2819_v7 }
 0x3b1 PF: > { %s16_s21 = sadd.s32 1, %s4026_s21  }
 0x3b2   : > { %p13_p4 = scmp.ge.s32.totalorder %s16_s21, 4  }
 0x3b4   :  { %15 = sbr.rel (!%p13_p4) target bundleno = 1 (0x1), region = 95 }

// kernel: classical_cnn_forward.3
= control target key start
LH: loop header
LB: loop body
LE: loop exit
PB: predicated region body
PF: predicated region fallthrough
CT: control target
= control target key end

     0   :  { %s4166_s20 = smov 0   ;;  %s4991_s0 = inlined_call_operand.vmem [shape: bf16[2,1,4096], index: 0, kind: input, shape index: {}]   ;;  %s4992_s1 = inlined_call_operand.vmem [shape: bf16[4096,128], index: 1, kind: input, shape index: {}]   ;;  %s4993_s2 = inlined_call_operand.vmem [shape: f32[1,128], index: 2, kind: input, shape index: {}]   ;;  %s4994_s3 = inlined_call_operand.vmem [shape: f32[1,128], index: 3, kind: input, shape index: {}]   ;;  %s4995_s4 = inlined_call_operand.<no memory space> [shape: f32[1,1], index: 4, kind: input, shape index: {}]   ;;  %s4996_s5 = inlined_call_operand.vmem [shape: f32[2,1,1], index: 5, kind: output, shape index: {}]  }
   0x1   :  { %v10_v0 = vstv %s4995_s4 }
   0x2   :  { %11 = vst [vmem:[#allocation2] sm:$0x1] %v10_v0 }
   0x3 LB: > { %s2825_s21 = sadd.s32 4294967295, %s4131_s20   ;;  %p2829_p0 = scmp.ge.s32.totalorder %s4131_s20, 1  ;;  %s4131_s20 = sphi %s4166_s20, %s17_s20  }
   0x4   : > { %p188_p1 = scmp.lt.s32.totalorder %s4131_s20, 3 }
   0x6   : > { %p189_p2 = pnand %p2829_p0, %p188_p1 }
   0x7   : > { %p213_p3 = scmp.lt.s32.totalorder (!%p189_p2), %s2825_s21, 1 }
   0x8   : > { %192 = sbr.rel (%p189_p2) target bundleno = 553 (0x229), region = 40 }
   0xd   : > { %v3864_v1 = vld [vmem:[%s4992_s1 + $0x38] sm:$0xff]  ;;  %v3863_v5 = vld [vmem:[%s4992_s1 + $0x30] sm:$0xff]  ;;  %v3862_v9 = vld [vmem:[%s4992_s1 + $0x28] sm:$0xff]  ;;  %s4998_s21 = smov (!%p213_p3, %s2825_s21), 1  ;;  %vm2764_vm0 = vcmask 1040384   ;;  %vm2776_vm1 = vcmask 0  }
   0xe   : > { %v3872_v2 = vld [vmem:[%s4992_s1 + $0x78] sm:$0xff]  ;;  %2345 = vmatpush.bf16.msra.mxu0 %v3864_v1  ;;  %v3871_v6 = vld [vmem:[%s4992_s1 + $0x70] sm:$0xff]  ;;  %v3870_v10 = vld [vmem:[%s4992_s1 + $0x68] sm:$0xff]  ;;  %s2830_s29 = sshll.u32 %s4998_s21, 5  ;;  %s219_s27 = scalar_lea.vmem %s4996_s5, %s4998_s21 }
   0xf   : > { %v3880_v3 = vld [vmem:[%s4992_s1 + $0xb8] sm:$0xff]  ;;  %2358 = vmatpush.bf16.msra.mxu1 %v3872_v2  ;;  %v3879_v7 = vld [vmem:[%s4992_s1 + $0xb0] sm:$0xff]  ;;  %v3878_v11 = vld [vmem:[%s4992_s1 + $0xa8] sm:$0xff]  ;;  %s4234_s11 = scalar_lea.vmem %s4991_s0, %s2830_s29 }
  0x10   : > { %v3888_v4 = vld [vmem:[%s4992_s1 + $0xf8] sm:$0xff]  ;;  %2371 = vmatpush.bf16.msra.mxu2 %v3880_v3  ;;  %v3887_v8 = vld [vmem:[%s4992_s1 + $0xf0] sm:$0xff]  ;;  %v3886_v12 = vld [vmem:[%s4992_s1 + $0xe8] sm:$0xff] }
  0x11   : > { %2384 = vmatpush.bf16.msra.mxu3 %v3888_v4  ;;  %v3861_v13 = vld [vmem:[%s4992_s1 + $0x20] sm:$0xff]  ;;  %v3860_v17 = vld [vmem:[%s4992_s1 + $0x18] sm:$0xff]  ;;  %v3859_v22 = vld [vmem:[%s4992_s1 + $0x10] sm:$0xff] }
  0x12   : > { %2346 = vmatpush.bf16.msra.mxu0 %v3863_v5  ;;  %v3869_v14 = vld [vmem:[%s4992_s1 + $0x60] sm:$0xff]  ;;  %v3868_v18 = vld [vmem:[%s4992_s1 + $0x58] sm:$0xff]  ;;  %v3867_v23 = vld [vmem:[%s4992_s1 + $0x50] sm:$0xff] }
  0x13   : > { %2359 = vmatpush.bf16.msra.mxu1 %v3871_v6  ;;  %v3877_v15 = vld [vmem:[%s4992_s1 + $0xa0] sm:$0xff]  ;;  %v3876_v19 = vld [vmem:[%s4992_s1 + $0x98] sm:$0xff]  ;;  %v3875_v24 = vld [vmem:[%s4992_s1 + $0x90] sm:$0xff] }
  0x14   : > { %2372 = vmatpush.bf16.msra.mxu2 %v3879_v7  ;;  %v3885_v16 = vld [vmem:[%s4992_s1 + $0xe0] sm:$0xff]  ;;  %v3884_v20 = vld [vmem:[%s4992_s1 + $0xd8] sm:$0xff]  ;;  %v3883_v25 = vld [vmem:[%s4992_s1 + $0xd0] sm:$0xff] }
  0x15   : > { %2385 = vmatpush.bf16.msra.mxu3 %v3887_v8  ;;  %v220_v21 = vld [vmem:[%s4234_s11] sm:$0xff]  ;;  %v3858_v26 = vld [vmem:[%s4992_s1 + $0x8] sm:$0xff]  ;;  %v3896_v34 = vld [vmem:[%s4992_s1 + $0x138] sm:$0xff] }
  0x16   : > { %2347 = vmatpush.bf16.msra.mxu0 %v3862_v9  ;;  %738 = vst [vmem:[#allocation1] ss:$9 sm:$0xff] %v220_v21  ;;  %v3866_v27 = vld [vmem:[%s4992_s1 + $0x48] sm:$0xff]  ;;  %v3857_v30 = vld [vmem:[%s4992_s1] sm:$0xff]  ;;  %v3904_v35 = vld [vmem:[%s4992_s1 + $0x178] sm:$0xff] }
  0x17   : > { %2360 = vmatpush.bf16.msra.mxu1 %v3870_v10  ;;  %v3874_v28 = vld [vmem:[%s4992_s1 + $0x88] sm:$0xff]  ;;  %v3865_v31 = vld [vmem:[%s4992_s1 + $0x40] sm:$0xff]  ;;  %v3912_v36 = vld [vmem:[%s4992_s1 + $0x1b8] sm:$0xff] }
  0x18   : > { %2373 = vmatpush.bf16.msra.mxu2 %v3878_v11  ;;  %v3882_v29 = vld [vmem:[%s4992_s1 + $0xc8] sm:$0xff]  ;;  %v3873_v32 = vld [vmem:[%s4992_s1 + $0x80] sm:$0xff]  ;;  %v3920_v37 = vld [vmem:[%s4992_s1 + $0x1f8] sm:$0xff] }
  0x19   : > { %2386 = vmatpush.bf16.msra.mxu3 %v3886_v12  ;;  %v3881_v33 = vld [vmem:[%s4992_s1 + $0xc0] sm:$0xff]  ;;  %v3895_v38 = vld [vmem:[%s4992_s1 + $0x130] sm:$0xff]  ;;  %v3894_v46 = vld [vmem:[%s4992_s1 + $0x128] sm:$0xff] }
  0x1a   : > { %2348 = vmatpush.bf16.msra.mxu0 %v3861_v13  ;;  %v3903_v41 = vld [vmem:[%s4992_s1 + $0x170] sm:$0xff]  ;;  %v3902_v47 = vld [vmem:[%s4992_s1 + $0x168] sm:$0xff]  ;;  %v3893_v55 = vld [vmem:[%s4992_s1 + $0x120] sm:$0xff] }
  0x1b   : > { %2361 = vmatpush.bf16.msra.mxu1 %v3869_v14  ;;  %v3911_v44 = vld [vmem:[%s4992_s1 + $0x1b0] sm:$0xff]  ;;  %v3910_v48 = vld [vmem:[%s4992_s1 + $0x1a8] sm:$0xff]  ;;  %v3901_v56 = vld [vmem:[%s4992_s1 + $0x160] sm:$0xff] }
  0x1c   : > { %2374 = vmatpush.bf16.msra.mxu2 %v3877_v15  ;;  %v3919_v45 = vld [vmem:[%s4992_s1 + $0x1f0] sm:$0xff]  ;;  %v3918_v49 = vld [vmem:[%s4992_s1 + $0x1e8] sm:$0xff]  ;;  %v3909_v57 = vld [vmem:[%s4992_s1 + $0x1a0] sm:$0xff] }
  0x1d   : > { %2387 = vmatpush.bf16.msra.mxu3 %v3885_v16  ;;  %v741_v39 = vld [vmem:[#allocation1 + $0x12] sm:$0xff]  ;;  %v739_v40 = vld [vmem:[#allocation1] sm:$0xff]  ;;  %v740_v43 = vld [vmem:[#allocation1 + $0x9] sm:$0xff] }
  0x1e   : > { %2349 = vmatpush.bf16.msra.mxu0 %v3860_v17  ;;  %v742_v42 = vld [vmem:[#allocation1 + $0x1b] sm:$0xff]  ;;  %v221_v50 = vld [vmem:[%s4234_s11 + $0x8] sm:$0xff]  ;;  %v3891_v63 = vld [vmem:[%s4992_s1 + $0x110] sm:$0xff] }
  0x1f   : > { %2362 = vmatpush.bf16.msra.mxu1 %v3868_v18  ;;  %v745_v51 = vld [vmem:[#allocation1 + $0x36] sm:$0xff]  ;;  %v743_v52 = vld [vmem:[#allocation1 + $0x24] sm:$0xff]  ;;  %v744_v54 = vld [vmem:[#allocation1 + $0x2d] sm:$0xff] }
  0x20   : > { %2375 = vmatpush.bf16.msra.mxu2 %v3876_v19  ;;  %v746_v53 = vld [vmem:[#allocation1 + $0x3f] sm:$0xff]  ;;  %v3899_v0 = vld [vmem:[%s4992_s1 + $0x150] sm:$0xff]  ;;  %v3890_v3 = vld [vmem:[%s4992_s1 + $0x108] sm:$0xff] }
  0x21   : > { %2388 = vmatpush.bf16.msra.mxu3 %v3884_v20  ;;  %748 = vst [vmem:[#allocation1] ss:$9 sm:$0xff] %v221_v50  ;;  %v3917_v58 = vld [vmem:[%s4992_s1 + $0x1e0] sm:$0xff]  ;;  %v3892_v59 = vld [vmem:[%s4992_s1 + $0x118] sm:$0xff]  ;;  %v3907_v1 = vld [vmem:[%s4992_s1 + $0x190] sm:$0xff] }
  0x22   : > { %2350 = vmatpush.bf16.msra.mxu0 %v3859_v22  ;;  %v3900_v60 = vld [vmem:[%s4992_s1 + $0x158] sm:$0xff]  ;;  %v3915_v2 = vld [vmem:[%s4992_s1 + $0x1d0] sm:$0xff]  ;;  %v3898_v4 = vld [vmem:[%s4992_s1 + $0x148] sm:$0xff] }
  0x23   : > { %2363 = vmatpush.bf16.msra.mxu1 %v3867_v23  ;;  %v3908_v61 = vld [vmem:[%s4992_s1 + $0x198] sm:$0xff]  ;;  %v3906_v5 = vld [vmem:[%s4992_s1 + $0x188] sm:$0xff]  ;;  %v3889_v7 = vld [vmem:[%s4992_s1 + $0x100] sm:$0xff] }
  0x24   : > { %2376 = vmatpush.bf16.msra.mxu2 %v3875_v24  ;;  %v3916_v62 = vld [vmem:[%s4992_s1 + $0x1d8] sm:$0xff]  ;;  %v3914_v6 = vld [vmem:[%s4992_s1 + $0x1c8] sm:$0xff]  ;;  %v3897_v8 = vld [vmem:[%s4992_s1 + $0x140] sm:$0xff] }
  0x25   : > { %2389 = vmatpush.bf16.msra.mxu3 %v3883_v25  ;;  %v3905_v9 = vld [vmem:[%s4992_s1 + $0x180] sm:$0xff]  ;;  %v3928_v11 = vld [vmem:[%s4992_s1 + $0x238] sm:$0xff]  ;;  %v3927_v15 = vld [vmem:[%s4992_s1 + $0x230] sm:$0xff] }
  0x26   : > { %2351 = vmatpush.bf16.msra.mxu0 %v3858_v26  ;;  %v3913_v10 = vld [vmem:[%s4992_s1 + $0x1c0] sm:$0xff]  ;;  %v3936_v12 = vld [vmem:[%s4992_s1 + $0x278] sm:$0xff]  ;;  %v3935_v16 = vld [vmem:[%s4992_s1 + $0x270] sm:$0xff] }
  0x27   : > { %2364 = vmatpush.bf16.msra.mxu1 %v3866_v27  ;;  %v3944_v13 = vld [vmem:[%s4992_s1 + $0x2b8] sm:$0xff]  ;;  %v3943_v17 = vld [vmem:[%s4992_s1 + $0x2b0] sm:$0xff]  ;;  %v3926_v19 = vld [vmem:[%s4992_s1 + $0x228] sm:$0xff] }
  0x28   : > { %2377 = vmatpush.bf16.msra.mxu2 %v3874_v28  ;;  %v3952_v14 = vld [vmem:[%s4992_s1 + $0x2f8] sm:$0xff]  ;;  %v3951_v18 = vld [vmem:[%s4992_s1 + $0x2f0] sm:$0xff]  ;;  %v3934_v20 = vld [vmem:[%s4992_s1 + $0x268] sm:$0xff] }
  0x29   : > { %2390 = vmatpush.bf16.msra.mxu3 %v3882_v29  ;;  %v3942_v21 = vld [vmem:[%s4992_s1 + $0x2a8] sm:$0xff]  ;;  %v3925_v23 = vld [vmem:[%s4992_s1 + $0x220] sm:$0xff]  ;;  %v3924_v27 = vld [vmem:[%s4992_s1 + $0x218] sm:$0xff] }
  0x2a   : > { %2352 = vmatpush.bf16.msra.mxu0 %v3857_v30  ;;  %v3950_v22 = vld [vmem:[%s4992_s1 + $0x2e8] sm:$0xff]  ;;  %v3933_v24 = vld [vmem:[%s4992_s1 + $0x260] sm:$0xff]  ;;  %v3932_v28 = vld [vmem:[%s4992_s1 + $0x258] sm:$0xff] }
  0x2b   : > { %2365 = vmatpush.bf16.msra.mxu1 %v3865_v31  ;;  %v3941_v25 = vld [vmem:[%s4992_s1 + $0x2a0] sm:$0xff]  ;;  %v3940_v29 = vld [vmem:[%s4992_s1 + $0x298] sm:$0xff]  ;;  %v3923_v31 = vld [vmem:[%s4992_s1 + $0x210] sm:$0xff] }
  0x2c   : > { %2378 = vmatpush.bf16.msra.mxu2 %v3873_v32  ;;  %v3949_v26 = vld [vmem:[%s4992_s1 + $0x2e0] sm:$0xff]  ;;  %v3948_v30 = vld [vmem:[%s4992_s1 + $0x2d8] sm:$0xff]  ;;  %v3931_v32 = vld [vmem:[%s4992_s1 + $0x250] sm:$0xff] }
  0x2d   : > { %2391 = vmatpush.bf16.msra.mxu3 %v3881_v33  ;;  %2353 = vmatmul.bf16.vlgmr.msra.gmra.mxu0 %v739_v40  ;;  %v3939_v33 = vld [vmem:[%s4992_s1 + $0x290] sm:$0xff]  ;;  %v3929_v40 = vld [vmem:[%s4992_s1 + $0x240] sm:$0xff] }
  0x2e   : > { %2397 = vmatpush.bf16.msrb.mxu0 %v3896_v34  ;;  %2366 = vmatmul.bf16.vlgmr.msra.gmra.mxu1 %v740_v43  ;;  %v3947_v34 = vld [vmem:[%s4992_s1 + $0x2d0] sm:$0xff]  ;;  %v3960_v43 = vld [vmem:[%s4992_s1 + $0x338] sm:$0xff] }
  0x2f   : > { %2410 = vmatpush.bf16.msrb.mxu1 %v3904_v35  ;;  %2379 = vmatmul.bf16.vlgmr.msra.gmra.mxu2 %v741_v39  ;;  %v3922_v35 = vld [vmem:[%s4992_s1 + $0x208] sm:$0xff]  ;;  %v3921_v39 = vld [vmem:[%s4992_s1 + $0x200] sm:$0xff] }
  0x30   : > { %2423 = vmatpush.bf16.msrb.mxu2 %v3912_v36  ;;  %2392 = vmatmul.bf16.vlgmr.msra.gmra.mxu3 %v742_v42  ;;  %v3930_v36 = vld [vmem:[%s4992_s1 + $0x248] sm:$0xff]  ;;  %v3945_v42 = vld [vmem:[%s4992_s1 + $0x2c0] sm:$0xff] }
  0x31   : > { %2436 = vmatpush.bf16.msrb.mxu3 %v3920_v37  ;;  %v3938_v37 = vld [vmem:[%s4992_s1 + $0x288] sm:$0xff] }
  0x32   : > { %2398 = vmatpush.bf16.msrb.mxu0 %v3895_v38  ;;  %v3946_v38 = vld [vmem:[%s4992_s1 + $0x2c8] sm:$0xff] }
  0x33   : > { %2411 = vmatpush.bf16.msrb.mxu1 %v3903_v41  ;;  %v3937_v41 = vld [vmem:[%s4992_s1 + $0x280] sm:$0xff]  ;;  %v750_v50 = vld [vmem:[#allocation1 + $0x9] sm:$0xff] }
  0x34   : > { %2424 = vmatpush.bf16.msrb.mxu2 %v3911_v44  ;;  %v3968_v44 = vld [vmem:[%s4992_s1 + $0x378] sm:$0xff] }
  0x35   : > { %2437 = vmatpush.bf16.msrb.mxu3 %v3919_v45  ;;  %v222_v45 = vld [vmem:[%s4234_s11 + $0x10] sm:$0xff] }
  0x36   : > { %2399 = vmatpush.bf16.msrb.mxu0 %v3894_v46  ;;  %v3976_v46 = vld [vmem:[%s4992_s1 + $0x3b8] sm:$0xff] }
  0x37   : > { %2412 = vmatpush.bf16.msrb.mxu1 %v3902_v47  ;;  %v3984_v47 = vld [vmem:[%s4992_s1 + $0x3f8] sm:$0xff] }
  0x38   : > { %2425 = vmatpush.bf16.msrb.mxu2 %v3910_v48  ;;  %v749_v48 = vld [vmem:[#allocation1] sm:$0xff] }
  0x39   : > { %2438 = vmatpush.bf16.msrb.mxu3 %v3918_v49  ;;  %v751_v49 = vld [vmem:[#allocation1 + $0x12] sm:$0xff] }
  0x3a   : > { %2400 = vmatpush.bf16.msrb.mxu0 %v3893_v55  ;;  %v3983_v55 = vld [vmem:[%s4992_s1 + $0x3f0] sm:$0xff] }
  0x3b   : > { %2413 = vmatpush.bf16.msrb.mxu1 %v3901_v56  ;;  %v4497_v56 = vld [vmem:[#allocation1 + $0x24] sm:$0xff] }
  0x3c   : > { %2426 = vmatpush.bf16.msrb.mxu2 %v3909_v57  ;;  %v4499_v57 = vld [vmem:[#allocation1 + $0x36] sm:$0xff] }
  0x3d   : > { %2439 = vmatpush.bf16.msrb.mxu3 %v3917_v58  ;;  %v4501_v58 = vld [vmem:[#allocation1 + $0x2d] sm:$0xff] }
  0x3e   : > { %2401 = vmatpush.bf16.msrb.mxu0 %v3892_v59  ;;  %v4503_v59 = vld [vmem:[#allocation1 + $0x3f] sm:$0xff] }
  0x3f   : > { %2414 = vmatpush.bf16.msrb.mxu1 %v3900_v60  ;;  %v3958_v60 = vld [vmem:[%s4992_s1 + $0x328] sm:$0xff] }
  0x40   : > { %2427 = vmatpush.bf16.msrb.mxu2 %v3908_v61  ;;  %v3966_v61 = vld [vmem:[%s4992_s1 + $0x368] sm:$0xff] }
  0x41   : > { %2440 = vmatpush.bf16.msrb.mxu3 %v3916_v62  ;;  %v3974_v62 = vld [vmem:[%s4992_s1 + $0x3a8] sm:$0xff] }
  0x42   : > { %2402 = vmatpush.bf16.msrb.mxu0 %v3891_v63  ;;  %v3982_v63 = vld [vmem:[%s4992_s1 + $0x3e8] sm:$0xff] }
  0x43   : > { %2415 = vmatpush.bf16.msrb.mxu1 %v3899_v0  ;;  %v3957_v0 = vld [vmem:[%s4992_s1 + $0x320] sm:$0xff] }
  0x44   : > { %2428 = vmatpush.bf16.msrb.mxu2 %v3907_v1  ;;  %v3965_v1 = vld [vmem:[%s4992_s1 + $0x360] sm:$0xff] }
  0x45   : > { %2441 = vmatpush.bf16.msrb.mxu3 %v3915_v2  ;;  %v3973_v2 = vld [vmem:[%s4992_s1 + $0x3a0] sm:$0xff] }
  0x46   : > { %2403 = vmatpush.bf16.msrb.mxu0 %v3890_v3  ;;  %v3981_v3 = vld [vmem:[%s4992_s1 + $0x3e0] sm:$0xff] }
  0x47   : > { %2416 = vmatpush.bf16.msrb.mxu1 %v3898_v4  ;;  %v3956_v4 = vld [vmem:[%s4992_s1 + $0x318] sm:$0xff] }
  0x48   : > { %2429 = vmatpush.bf16.msrb.mxu2 %v3906_v5  ;;  %v3964_v5 = vld [vmem:[%s4992_s1 + $0x358] sm:$0xff] }
  0x49   : > { %2442 = vmatpush.bf16.msrb.mxu3 %v3914_v6  ;;  %v3972_v6 = vld [vmem:[%s4992_s1 + $0x398] sm:$0xff] }
  0x4a   : > { %2404 = vmatpush.bf16.msrb.mxu0 %v3889_v7  ;;  %v3980_v7 = vld [vmem:[%s4992_s1 + $0x3d8] sm:$0xff] }
  0x4b   : > { %2417 = vmatpush.bf16.msrb.mxu1 %v3897_v8  ;;  %v3955_v8 = vld [vmem:[%s4992_s1 + $0x310] sm:$0xff] }
  0x4c   : > { %2430 = vmatpush.bf16.msrb.mxu2 %v3905_v9  ;;  %v3963_v9 = vld [vmem:[%s4992_s1 + $0x350] sm:$0xff] }
  0x4d   : > { %2443 = vmatpush.bf16.msrb.mxu3 %v3913_v10  ;;  %2405 = vmatmul.bf16.vlgmr.msrb.gmra.mxu0 %v743_v52  ;;  %v3959_v52 = vld [vmem:[%s4992_s1 + $0x330] sm:$0xff] }
  0x4e   : > { %2449 = vmatpush.bf16.msra.mxu0 %v3928_v11  ;;  %2418 = vmatmul.bf16.vlgmr.msrb.gmra.mxu1 %v744_v54  ;;  %v3975_v54 = vld [vmem:[%s4992_s1 + $0x3b0] sm:$0xff] }
  0x4f   : > { %2462 = vmatpush.bf16.msra.mxu1 %v3936_v12  ;;  %2431 = vmatmul.bf16.vlgmr.msrb.gmra.mxu2 %v745_v51  ;;  %v752_v51 = vld [vmem:[#allocation1 + $0x1b] sm:$0xff]  ;;  %v3971_v10 = vld [vmem:[%s4992_s1 + $0x390] sm:$0xff]  ;;  %v3954_v12 = vld [vmem:[%s4992_s1 + $0x308] sm:$0xff] }
  0x50   : > { %2475 = vmatpush.bf16.msra.mxu2 %v3944_v13  ;;  %2444 = vmatmul.bf16.vlgmr.msrb.gmra.mxu3 %v746_v53  ;;  %v3967_v53 = vld [vmem:[%s4992_s1 + $0x370] sm:$0xff]  ;;  %758 = vst [vmem:[#allocation1] ss:$9 sm:$0xff] %v222_v45  ;;  %v3962_v13 = vld [vmem:[%s4992_s1 + $0x348] sm:$0xff] }
  0x51   : > { %2488 = vmatpush.bf16.msra.mxu3 %v3952_v14  ;;  %v3979_v11 = vld [vmem:[%s4992_s1 + $0x3d0] sm:$0xff]  ;;  %v3970_v14 = vld [vmem:[%s4992_s1 + $0x388] sm:$0xff] }
  0x52   : > { %2450 = vmatpush.bf16.msra.mxu0 %v3927_v15  ;;  %v3978_v15 = vld [vmem:[%s4992_s1 + $0x3c8] sm:$0xff] }
  0x53   : > { %2463 = vmatpush.bf16.msra.mxu1 %v3935_v16  ;;  %v3953_v16 = vld [vmem:[%s4992_s1 + $0x300] sm:$0xff]  ;;  %v3994_v45 = vld [vmem:[%s4992_s1 + $0x448] sm:$0xff] }
  0x54   : > { %2476 = vmatpush.bf16.msra.mxu2 %v3943_v17  ;;  %v3961_v17 = vld [vmem:[%s4992_s1 + $0x340] sm:$0xff] }
  0x55   : > { %2489 = vmatpush.bf16.msra.mxu3 %v3951_v18  ;;  %v3969_v18 = vld [vmem:[%s4992_s1 + $0x380] sm:$0xff] }
  0x56   : > { %2451 = vmatpush.bf16.msra.mxu0 %v3926_v19  ;;  %v3977_v19 = vld [vmem:[%s4992_s1 + $0x3c0] sm:$0xff] }
  0x57   : > { %2464 = vmatpush.bf16.msra.mxu1 %v3934_v20  ;;  %v3992_v20 = vld [vmem:[%s4992_s1 + $0x438] sm:$0xff] }
  0x58   : > { %2477 = vmatpush.bf16.msra.mxu2 %v3942_v21  ;;  %v4000_v21 = vld [vmem:[%s4992_s1 + $0x478] sm:$0xff] }
  0x59   : > { %2490 = vmatpush.bf16.msra.mxu3 %v3950_v22  ;;  %v4008_v22 = vld [vmem:[%s4992_s1 + $0x4b8] sm:$0xff] }
  0x5a   : > { %2452 = vmatpush.bf16.msra.mxu0 %v3925_v23  ;;  %v4016_v23 = vld [vmem:[%s4992_s1 + $0x4f8] sm:$0xff] }
  0x5b   : > { %2465 = vmatpush.bf16.msra.mxu1 %v3933_v24  ;;  %v3991_v24 = vld [vmem:[%s4992_s1 + $0x430] sm:$0xff] }
  0x5c   : > { %2478 = vmatpush.bf16.msra.mxu2 %v3941_v25  ;;  %v3999_v25 = vld [vmem:[%s4992_s1 + $0x470] sm:$0xff] }
  0x5d   : > { %2491 = vmatpush.bf16.msra.mxu3 %v3949_v26  ;;  %v4007_v26 = vld [vmem:[%s4992_s1 + $0x4b0] sm:$0xff] }
  0x5e   : > { %2453 = vmatpush.bf16.msra.mxu0 %v3924_v27  ;;  %v4015_v27 = vld [vmem:[%s4992_s1 + $0x4f0] sm:$0xff] }
  0x5f   : > { %2466 = vmatpush.bf16.msra.mxu1 %v3932_v28  ;;  %v3990_v28 = vld [vmem:[%s4992_s1 + $0x428] sm:$0xff] }
  0x60   : > { %2479 = vmatpush.bf16.msra.mxu2 %v3940_v29  ;;  %v3998_v29 = vld [vmem:[%s4992_s1 + $0x468] sm:$0xff] }
  0x61   : > { %2492 = vmatpush.bf16.msra.mxu3 %v3948_v30  ;;  %v4006_v30 = vld [vmem:[%s4992_s1 + $0x4a8] sm:$0xff] }
  0x62   : > { %2454 = vmatpush.bf16.msra.mxu0 %v3923_v31  ;;  %v4014_v31 = vld [vmem:[%s4992_s1 + $0x4e8] sm:$0xff] }
  0x63   : > { %2467 = vmatpush.bf16.msra.mxu1 %v3931_v32  ;;  %v3989_v32 = vld [vmem:[%s4992_s1 + $0x420] sm:$0xff] }
  0x64   : > { %2480 = vmatpush.bf16.msra.mxu2 %v3939_v33  ;;  %v3997_v33 = vld [vmem:[%s4992_s1 + $0x460] sm:$0xff] }
  0x65   : > { %2493 = vmatpush.bf16.msra.mxu3 %v3947_v34  ;;  %v4005_v34 = vld [vmem:[%s4992_s1 + $0x4a0] sm:$0xff] }
  0x66   : > { %2455 = vmatpush.bf16.msra.mxu0 %v3922_v35  ;;  %v4013_v35 = vld [vmem:[%s4992_s1 + $0x4e0] sm:$0xff] }
  0x67   : > { %2468 = vmatpush.bf16.msra.mxu1 %v3930_v36  ;;  %v3988_v36 = vld [vmem:[%s4992_s1 + $0x418] sm:$0xff] }
  0x68   : > { %2481 = vmatpush.bf16.msra.mxu2 %v3938_v37  ;;  %v3996_v37 = vld [vmem:[%s4992_s1 + $0x458] sm:$0xff] }
  0x69   : > { %2494 = vmatpush.bf16.msra.mxu3 %v3946_v38  ;;  %v4004_v38 = vld [vmem:[%s4992_s1 + $0x498] sm:$0xff] }
  0x6a   : > { %2456 = vmatpush.bf16.msra.mxu0 %v3921_v39  ;;  %v4012_v39 = vld [vmem:[%s4992_s1 + $0x4d8] sm:$0xff] }
  0x6b   : > { %2469 = vmatpush.bf16.msra.mxu1 %v3929_v40  ;;  %v3987_v40 = vld [vmem:[%s4992_s1 + $0x410] sm:$0xff] }
  0x6c   : > { %2482 = vmatpush.bf16.msra.mxu2 %v3937_v41  ;;  %v3995_v41 = vld [vmem:[%s4992_s1 + $0x450] sm:$0xff] }
  0x6d   : > { %2495 = vmatpush.bf16.msra.mxu3 %v3945_v42  ;;  %2457 = vmatmul.bf16.vlgmr.msra.gmra.mxu0 %v749_v48  ;;  %v4003_v42 = vld [vmem:[%s4992_s1 + $0x490] sm:$0xff]  ;;  %v3985_v48 = vld [vmem:[%s4992_s1 + $0x400] sm:$0xff] }
  0x6e   : > { %2501 = vmatpush.bf16.msrb.mxu0 %v3960_v43  ;;  %2470 = vmatmul.bf16.vlgmr.msra.gmra.mxu1 %v750_v50  ;;  %v4011_v43 = vld [vmem:[%s4992_s1 + $0x4d0] sm:$0xff]  ;;  %v4001_v50 = vld [vmem:[%s4992_s1 + $0x480] sm:$0xff] }
  0x6f   : > { %2514 = vmatpush.bf16.msrb.mxu1 %v3968_v44  ;;  %2483 = vmatmul.bf16.vlgmr.msra.gmra.mxu2 %v751_v49  ;;  %v3986_v44 = vld [vmem:[%s4992_s1 + $0x408] sm:$0xff]  ;;  %v3993_v49 = vld [vmem:[%s4992_s1 + $0x440] sm:$0xff] }
  0x70   : > { %2527 = vmatpush.bf16.msrb.mxu2 %v3976_v46  ;;  %2496 = vmatmul.bf16.vlgmr.msra.gmra.mxu3 %v752_v51  ;;  %v4002_v46 = vld [vmem:[%s4992_s1 + $0x488] sm:$0xff]  ;;  %v4009_v51 = vld [vmem:[%s4992_s1 + $0x4c0] sm:$0xff] }
  0x71   : > { %2540 = vmatpush.bf16.msrb.mxu3 %v3984_v47  ;;  %v4010_v47 = vld [vmem:[%s4992_s1 + $0x4c8] sm:$0xff] }
  0x72   : > { %2502 = vmatpush.bf16.msrb.mxu0 %v3959_v52  ;;  %v4024_v52 = vld [vmem:[%s4992_s1 + $0x538] sm:$0xff] }
  0x73   : > { %2515 = vmatpush.bf16.msrb.mxu1 %v3967_v53  ;;  %v4032_v53 = vld [vmem:[%s4992_s1 + $0x578] sm:$0xff] }
  0x74   : > { %2528 = vmatpush.bf16.msrb.mxu2 %v3975_v54  ;;  %v223_v54 = vld [vmem:[%s4234_s11 + $0x18] sm:$0xff] }
  0x75   : > { %2541 = vmatpush.bf16.msrb.mxu3 %v3983_v55  ;;  %v4040_v55 = vld [vmem:[%s4992_s1 + $0x5b8] sm:$0xff] }
  0x76   : > { %2503 = vmatpush.bf16.msrb.mxu0 %v3958_v60  ;;  %v762_v60 = vld [vmem:[#allocation1 + $0x1b] sm:$0xff] }
  0x77   : > { %2516 = vmatpush.bf16.msrb.mxu1 %v3966_v61  ;;  %v4023_v61 = vld [vmem:[%s4992_s1 + $0x530] sm:$0xff] }
  0x78   : > { %2529 = vmatpush.bf16.msrb.mxu2 %v3974_v62  ;;  %v4031_v62 = vld [vmem:[%s4992_s1 + $0x570] sm:$0xff] }
  0x79   : > { %2542 = vmatpush.bf16.msrb.mxu3 %v3982_v63  ;;  %v4039_v63 = vld [vmem:[%s4992_s1 + $0x5b0] sm:$0xff] }
  0x7a   : > { %2504 = vmatpush.bf16.msrb.mxu0 %v3957_v0  ;;  %v4047_v0 = vld [vmem:[%s4992_s1 + $0x5f0] sm:$0xff] }
  0x7b   : > { %2517 = vmatpush.bf16.msrb.mxu1 %v3965_v1  ;;  %v4702_v1 = vld [vmem:[#allocation1 + $0x24] sm:$0xff] }
  0x7c   : > { %2530 = vmatpush.bf16.msrb.mxu2 %v3973_v2  ;;  %v4704_v2 = vld [vmem:[#allocation1 + $0x36] sm:$0xff] }
  0x7d   : > { %2543 = vmatpush.bf16.msrb.mxu3 %v3981_v3  ;;  %v4706_v3 = vld [vmem:[#allocation1 + $0x2d] sm:$0xff] }
  0x7e   : > { %2505 = vmatpush.bf16.msrb.mxu0 %v3956_v4  ;;  %v4708_v4 = vld [vmem:[#allocation1 + $0x3f] sm:$0xff] }
  0x7f   : > { %2518 = vmatpush.bf16.msrb.mxu1 %v3964_v5  ;;  %v4022_v5 = vld [vmem:[%s4992_s1 + $0x528] sm:$0xff] }
  0x80   : > { %2531 = vmatpush.bf16.msrb.mxu2 %v3972_v6  ;;  %v4030_v6 = vld [vmem:[%s4992_s1 + $0x568] sm:$0xff] }
  0x81   : > { %2544 = vmatpush.bf16.msrb.mxu3 %v3980_v7  ;;  %v4038_v7 = vld [vmem:[%s4992_s1 + $0x5a8] sm:$0xff] }
  0x82   : > { %2506 = vmatpush.bf16.msrb.mxu0 %v3955_v8  ;;  %v4046_v8 = vld [vmem:[%s4992_s1 + $0x5e8] sm:$0xff] }
  0x83   : > { %2519 = vmatpush.bf16.msrb.mxu1 %v3963_v9  ;;  %v736_v9 = vld [vmem:[%s4993_s2] sm:$0x1] }
  0x84   : > { %2532 = vmatpush.bf16.msrb.mxu2 %v3971_v10 }
  0x85   : > { %2545 = vmatpush.bf16.msrb.mxu3 %v3979_v11  ;;  %v4021_v11 = vld [vmem:[%s4992_s1 + $0x520] sm:$0xff] }
  0x86   : > { %2507 = vmatpush.bf16.msrb.mxu0 %v3954_v12  ;;  %v4029_v12 = vld [vmem:[%s4992_s1 + $0x560] sm:$0xff] }
  0x87   : > { %2520 = vmatpush.bf16.msrb.mxu1 %v3962_v13 }
  0x88   : > { %2533 = vmatpush.bf16.msrb.mxu2 %v3970_v14 }
  0x89   : > { %2546 = vmatpush.bf16.msrb.mxu3 %v3978_v15  ;;  %v4037_v15 = vld [vmem:[%s4992_s1 + $0x5a0] sm:$0xff] }
  0x8a   : > { %2508 = vmatpush.bf16.msrb.mxu0 %v3953_v16  ;;  %v4045_v16 = vld [vmem:[%s4992_s1 + $0x5e0] sm:$0xff] }
  0x8b   : > { %2521 = vmatpush.bf16.msrb.mxu1 %v3961_v17 }
  0x8c   : > { %2534 = vmatpush.bf16.msrb.mxu2 %v3969_v18  ;;  %v4020_v18 = vld [vmem:[%s4992_s1 + $0x518] sm:$0xff] }
  0x8d   : > { %2547 = vmatpush.bf16.msrb.mxu3 %v3977_v19  ;;  %2509 = vmatmul.bf16.vlgmr.msrb.gmra.mxu0 %v4497_v56  ;;  %v4048_v56 = vld [vmem:[%s4992_s1 + $0x5f8] sm:$0xff] }
  0x8e   : > { %2553 = vmatpush.bf16.msra.mxu0 %v3992_v20  ;;  %2522 = vmatmul.bf16.vlgmr.msrb.gmra.mxu1 %v4501_v58  ;;  %v761_v58 = vld [vmem:[#allocation1 + $0x12] sm:$0xff] }
  0x8f   : > { %2566 = vmatpush.bf16.msra.mxu1 %v4000_v21  ;;  %2535 = vmatmul.bf16.vlgmr.msrb.gmra.mxu2 %v4499_v57  ;;  %v759_v57 = vld [vmem:[#allocation1] sm:$0xff]  ;;  %v4028_v19 = vld [vmem:[%s4992_s1 + $0x558] sm:$0xff] }
  0x90   : > { %2579 = vmatpush.bf16.msra.mxu2 %v4008_v22  ;;  %2548 = vmatmul.bf16.vlgmr.msrb.gmra.mxu3 %v4503_v59  ;;  %v760_v59 = vld [vmem:[#allocation1 + $0x9] sm:$0xff]  ;;  %v4036_v20 = vld [vmem:[%s4992_s1 + $0x598] sm:$0xff] }
  0x91   : > { %2592 = vmatpush.bf16.msra.mxu3 %v4016_v23  ;;  %768 = vst [vmem:[#allocation1] ss:$9 sm:$0xff] %v223_v54  ;;  %v4044_v21 = vld [vmem:[%s4992_s1 + $0x5d8] sm:$0xff] }
  0x92   : > { %2554 = vmatpush.bf16.msra.mxu0 %v3991_v24 }
  0x93   : > { %2567 = vmatpush.bf16.msra.mxu1 %v3999_v25 }
  0x94   : > { %2580 = vmatpush.bf16.msra.mxu2 %v4007_v26  ;;  %v4019_v26 = vld [vmem:[%s4992_s1 + $0x510] sm:$0xff] }
  0x95   : > { %2593 = vmatpush.bf16.msra.mxu3 %v4015_v27  ;;  %v4027_v27 = vld [vmem:[%s4992_s1 + $0x550] sm:$0xff] }
  0x96   : > { %2555 = vmatpush.bf16.msra.mxu0 %v3990_v28 }
  0x97   : > { %2568 = vmatpush.bf16.msra.mxu1 %v3998_v29 }
  0x98   : > { %2581 = vmatpush.bf16.msra.mxu2 %v4006_v30  ;;  %v4035_v30 = vld [vmem:[%s4992_s1 + $0x590] sm:$0xff] }
  0x99   : > { %2594 = vmatpush.bf16.msra.mxu3 %v4014_v31  ;;  %v4043_v31 = vld [vmem:[%s4992_s1 + $0x5d0] sm:$0xff] }
  0x9a   : > { %2556 = vmatpush.bf16.msra.mxu0 %v3989_v32  ;;  %v4018_v32 = vld [vmem:[%s4992_s1 + $0x508] sm:$0xff] }
  0x9b   : > { %2569 = vmatpush.bf16.msra.mxu1 %v3997_v33  ;;  %v4026_v33 = vld [vmem:[%s4992_s1 + $0x548] sm:$0xff] }
  0x9c   : > { %2582 = vmatpush.bf16.msra.mxu2 %v4005_v34  ;;  %v4034_v34 = vld [vmem:[%s4992_s1 + $0x588] sm:$0xff] }
  0x9d   : > { %2595 = vmatpush.bf16.msra.mxu3 %v4013_v35  ;;  %v4042_v35 = vld [vmem:[%s4992_s1 + $0x5c8] sm:$0xff] }
  0x9e   : > { %2557 = vmatpush.bf16.msra.mxu0 %v3988_v36 }
  0x9f   : > { %2570 = vmatpush.bf16.msra.mxu1 %v3996_v37 }
  0xa0   : > { %2583 = vmatpush.bf16.msra.mxu2 %v4004_v38  ;;  %v4017_v38 = vld [vmem:[%s4992_s1 + $0x500] sm:$0xff] }
  0xa1   : > { %2596 = vmatpush.bf16.msra.mxu3 %v4012_v39  ;;  %v4025_v39 = vld [vmem:[%s4992_s1 + $0x540] sm:$0xff] }
  0xa2   : > { %2558 = vmatpush.bf16.msra.mxu0 %v3987_v40  ;;  %v4033_v40 = vld [vmem:[%s4992_s1 + $0x580] sm:$0xff] }
  0xa3   : > { %2571 = vmatpush.bf16.msra.mxu1 %v3995_v41  ;;  %v4041_v41 = vld [vmem:[%s4992_s1 + $0x5c0] sm:$0xff] }
  0xa4   : > { %2584 = vmatpush.bf16.msra.mxu2 %v4003_v42  ;;  %v4056_v42 = vld [vmem:[%s4992_s1 + $0x638] sm:$0xff] }
  0xa5   : > { %2597 = vmatpush.bf16.msra.mxu3 %v4011_v43  ;;  %v4064_v43 = vld [vmem:[%s4992_s1 + $0x678] sm:$0xff] }
  0xa6   : > { %2559 = vmatpush.bf16.msra.mxu0 %v3986_v44  ;;  %v4072_v44 = vld [vmem:[%s4992_s1 + $0x6b8] sm:$0xff] }
  0xa7   : > { %2572 = vmatpush.bf16.msra.mxu1 %v3994_v45  ;;  %v4080_v45 = vld [vmem:[%s4992_s1 + $0x6f8] sm:$0xff] }
  0xa8   : > { %2585 = vmatpush.bf16.msra.mxu2 %v4002_v46  ;;  %v4055_v46 = vld [vmem:[%s4992_s1 + $0x630] sm:$0xff] }
  0xa9   : > { %2598 = vmatpush.bf16.msra.mxu3 %v4010_v47  ;;  %v4063_v47 = vld [vmem:[%s4992_s1 + $0x670] sm:$0xff] }
  0xaa   : > { %2560 = vmatpush.bf16.msra.mxu0 %v3985_v48  ;;  %v2354_v10 = vpop.f32.mrf.mxu0  ;;  %v4071_v48 = vld [vmem:[%s4992_s1 + $0x6b0] sm:$0xff] }
  0xab   : > { %2573 = vmatpush.bf16.msra.mxu1 %v3993_v49  ;;  %v2355_v13 = vadd.f32 %v2354_v10, %v736_v9  ;;  %v2367_v14 = vpop.f32.mrf.mxu1  ;;  %v4079_v49 = vld [vmem:[%s4992_s1 + $0x6f0] sm:$0xff] }
  0xac   : > { %2586 = vmatpush.bf16.msra.mxu2 %v4001_v50  ;;  %v4054_v50 = vld [vmem:[%s4992_s1 + $0x628] sm:$0xff]  ;;  %v4067_v10 = vld [vmem:[%s4992_s1 + $0x690] sm:$0xff] }
  0xad   : > { %2599 = vmatpush.bf16.msra.mxu3 %v4009_v51  ;;  %2561 = vmatmul.bf16.vlgmr.msra.gmra.mxu0 %v759_v57  ;;  %v2368_v17 = vadd.f32 %v2367_v14, %v2355_v13  ;;  %v4062_v51 = vld [vmem:[%s4992_s1 + $0x668] sm:$0xff] }
  0xae   : > { %2605 = vmatpush.bf16.msrb.mxu0 %v4024_v52  ;;  %2574 = vmatmul.bf16.vlgmr.msra.gmra.mxu1 %v760_v59  ;;  %v4070_v52 = vld [vmem:[%s4992_s1 + $0x6a8] sm:$0xff]  ;;  %v4069_v59 = vld [vmem:[%s4992_s1 + $0x6a0] sm:$0xff] }
  0xaf   : > { %2618 = vmatpush.bf16.msrb.mxu1 %v4032_v53  ;;  %2587 = vmatmul.bf16.vlgmr.msra.gmra.mxu2 %v761_v58  ;;  %v4078_v53 = vld [vmem:[%s4992_s1 + $0x6e8] sm:$0xff] }
  0xb0   : > { %2631 = vmatpush.bf16.msrb.mxu2 %v4040_v55  ;;  %2600 = vmatmul.bf16.vlgmr.msra.gmra.mxu3 %v762_v60  ;;  %v4053_v55 = vld [vmem:[%s4992_s1 + $0x620] sm:$0xff]  ;;  %v4058_v13 = vld [vmem:[%s4992_s1 + $0x648] sm:$0xff] }
  0xb1   : > { %2644 = vmatpush.bf16.msrb.mxu3 %v4048_v56  ;;  %v4061_v56 = vld [vmem:[%s4992_s1 + $0x660] sm:$0xff]  ;;  %v4066_v14 = vld [vmem:[%s4992_s1 + $0x688] sm:$0xff] }
  0xb2   : > { %2606 = vmatpush.bf16.msrb.mxu0 %v4023_v61  ;;  %v2380_v22 = vpop.f32.mrf.mxu2  ;;  %v2356_v25 = vpop.f32.mrf.mxu0  ;;  %v4077_v60 = vld [vmem:[%s4992_s1 + $0x6e0] sm:$0xff] }
  0xb3   : > { %2619 = vmatpush.bf16.msrb.mxu1 %v4031_v62  ;;  %v2381_v23 = vadd.f32 %v2380_v22, %v2368_v17  ;;  %v2393_v24 = vpop.f32.mrf.mxu3  ;;  %v2369_v29 = vpop.f32.mrf.mxu1  ;;  %v4052_v62 = vld [vmem:[%s4992_s1 + $0x618] sm:$0xff] }
  0xb4   : > { %2632 = vmatpush.bf16.msrb.mxu2 %v4039_v63  ;;  %v4060_v63 = vld [vmem:[%s4992_s1 + $0x658] sm:$0xff] }
  0xb5   : > { %2645 = vmatpush.bf16.msrb.mxu3 %v4047_v0  ;;  %v2394_v28 = vadd.f32 %v2393_v24, %v2381_v23  ;;  %v4068_v0 = vld [vmem:[%s4992_s1 + $0x698] sm:$0xff] }
  0xb6   : > { %2607 = vmatpush.bf16.msrb.mxu0 %v4022_v5  ;;  %v4088_v22 = vld [vmem:[%s4992_s1 + $0x738] sm:$0xff] }
  0xb7   : > { %2620 = vmatpush.bf16.msrb.mxu1 %v4030_v6  ;;  %v4051_v6 = vld [vmem:[%s4992_s1 + $0x610] sm:$0xff]  ;;  %v4096_v23 = vld [vmem:[%s4992_s1 + $0x778] sm:$0xff] }
  0xb8   : > { %2633 = vmatpush.bf16.msrb.mxu2 %v4038_v7  ;;  %v4059_v7 = vld [vmem:[%s4992_s1 + $0x650] sm:$0xff]  ;;  %v4104_v24 = vld [vmem:[%s4992_s1 + $0x7b8] sm:$0xff] }
  0xb9   : > { %2646 = vmatpush.bf16.msrb.mxu3 %v4046_v8  ;;  %v4112_v25 = vld [vmem:[%s4992_s1 + $0x7f8] sm:$0xff] }
  0xba   : > { %2608 = vmatpush.bf16.msrb.mxu0 %v4021_v11  ;;  %v2382_v36 = vpop.f32.mrf.mxu2  ;;  %v4075_v11 = vld [vmem:[%s4992_s1 + $0x6d0] sm:$0xff]  ;;  %v772_v29 = vld [vmem:[#allocation1 + $0x1b] sm:$0xff] }
  0xbb   : > { %2621 = vmatpush.bf16.msrb.mxu1 %v4029_v12  ;;  %v2395_v37 = vpop.f32.mrf.mxu3  ;;  %v4050_v12 = vld [vmem:[%s4992_s1 + $0x608] sm:$0xff] }
  0xbc   : > { %2634 = vmatpush.bf16.msrb.mxu2 %v4037_v15  ;;  %v4074_v15 = vld [vmem:[%s4992_s1 + $0x6c8] sm:$0xff] }
  0xbd   : > { %2647 = vmatpush.bf16.msrb.mxu3 %v4045_v16  ;;  %v4102_v36 = vld [vmem:[%s4992_s1 + $0x7a8] sm:$0xff] }
  0xbe   : > { %2609 = vmatpush.bf16.msrb.mxu0 %v4020_v18  ;;  %v4049_v18 = vld [vmem:[%s4992_s1 + $0x600] sm:$0xff]  ;;  %v4110_v37 = vld [vmem:[%s4992_s1 + $0x7e8] sm:$0xff] }
  0xbf   : > { %2622 = vmatpush.bf16.msrb.mxu1 %v4028_v19  ;;  %v4057_v19 = vld [vmem:[%s4992_s1 + $0x640] sm:$0xff] }
  0xc0   : > { %2635 = vmatpush.bf16.msrb.mxu2 %v4036_v20  ;;  %v4065_v20 = vld [vmem:[%s4992_s1 + $0x680] sm:$0xff] }
  0xc1   : > { %2648 = vmatpush.bf16.msrb.mxu3 %v4044_v21  ;;  %v4073_v21 = vld [vmem:[%s4992_s1 + $0x6c0] sm:$0xff] }
  0xc2   : > { %2610 = vmatpush.bf16.msrb.mxu0 %v4019_v26  ;;  %v769_v26 = vld [vmem:[#allocation1] sm:$0xff] }
  0xc3   : > { %2623 = vmatpush.bf16.msrb.mxu1 %v4027_v27  ;;  %v771_v27 = vld [vmem:[#allocation1 + $0x12] sm:$0xff] }
  0xc4   : > { %2636 = vmatpush.bf16.msrb.mxu2 %v4035_v30  ;;  %v4087_v30 = vld [vmem:[%s4992_s1 + $0x730] sm:$0xff] }
  0xc5   : > { %2649 = vmatpush.bf16.msrb.mxu3 %v4043_v31  ;;  %v4095_v31 = vld [vmem:[%s4992_s1 + $0x770] sm:$0xff] }
  0xc6   : > { %2611 = vmatpush.bf16.msrb.mxu0 %v4018_v32  ;;  %v4103_v32 = vld [vmem:[%s4992_s1 + $0x7b0] sm:$0xff] }
  0xc7   : > { %2624 = vmatpush.bf16.msrb.mxu1 %v4026_v33  ;;  %v4111_v33 = vld [vmem:[%s4992_s1 + $0x7f0] sm:$0xff] }
  0xc8   : > { %2637 = vmatpush.bf16.msrb.mxu2 %v4034_v34  ;;  %v4086_v34 = vld [vmem:[%s4992_s1 + $0x728] sm:$0xff] }
  0xc9   : > { %2650 = vmatpush.bf16.msrb.mxu3 %v4042_v35  ;;  %v4094_v35 = vld [vmem:[%s4992_s1 + $0x768] sm:$0xff] }
  0xca   : > { %2612 = vmatpush.bf16.msrb.mxu0 %v4017_v38  ;;  %v2406_v54 = vpop.f32.mrf.mxu0 }
  0xcb   : > { %2625 = vmatpush.bf16.msrb.mxu1 %v4025_v39  ;;  %v2407_v57 = vadd.f32 %v2406_v54, %v2394_v28  ;;  %v2419_v58 = vpop.f32.mrf.mxu1  ;;  %v770_v28 = vld [vmem:[#allocation1 + $0x9] sm:$0xff] }
  0xcc   : > { %2638 = vmatpush.bf16.msrb.mxu2 %v4033_v40  ;;  %v4085_v40 = vld [vmem:[%s4992_s1 + $0x720] sm:$0xff] }
  0xcd   : > { %2651 = vmatpush.bf16.msrb.mxu3 %v4041_v41  ;;  %2613 = vmatmul.bf16.vlgmr.msrb.gmra.mxu0 %v4702_v1  ;;  %v2420_v61 = vadd.f32 %v2419_v58, %v2407_v57  ;;  %v4076_v1 = vld [vmem:[%s4992_s1 + $0x6d8] sm:$0xff]  ;;  %v4093_v41 = vld [vmem:[%s4992_s1 + $0x760] sm:$0xff]  ;;  %v4099_v58 = vld [vmem:[%s4992_s1 + $0x790] sm:$0xff] }
  0xce   : > { %2657 = vmatpush.bf16.msra.mxu0 %v4056_v42  ;;  %2626 = vmatmul.bf16.vlgmr.msrb.gmra.mxu1 %v4706_v3 }
  0xcf   : > { %2670 = vmatpush.bf16.msra.mxu1 %v4064_v43  ;;  %2639 = vmatmul.bf16.vlgmr.msrb.gmra.mxu2 %v4704_v2  ;;  %v4101_v43 = vld [vmem:[%s4992_s1 + $0x7a0] sm:$0xff] }
  0xd0   : > { %2683 = vmatpush.bf16.msra.mxu2 %v4072_v44  ;;  %2652 = vmatmul.bf16.vlgmr.msrb.gmra.mxu3 %v4708_v4  ;;  %v4109_v44 = vld [vmem:[%s4992_s1 + $0x7e0] sm:$0xff] }
  0xd1   : > { %2696 = vmatpush.bf16.msra.mxu3 %v4080_v45 }
  0xd2   : > { %2658 = vmatpush.bf16.msra.mxu0 %v4055_v46  ;;  %v2432_v2 = vpop.f32.mrf.mxu2  ;;  %v2408_v5 = vpop.f32.mrf.mxu0  ;;  %v4084_v46 = vld [vmem:[%s4992_s1 + $0x718] sm:$0xff] }
  0xd3   : > { %2671 = vmatpush.bf16.msra.mxu1 %v4063_v47  ;;  %v2433_v3 = vadd.f32 %v2432_v2, %v2420_v61  ;;  %v2445_v4 = vpop.f32.mrf.mxu3  ;;  %v2421_v9 = vpop.f32.mrf.mxu1  ;;  %v4092_v47 = vld [vmem:[%s4992_s1 + $0x758] sm:$0xff]  ;;  %v4090_v61 = vld [vmem:[%s4992_s1 + $0x748] sm:$0xff]  ;;  %v4081_v2 = vld [vmem:[%s4992_s1 + $0x700] sm:$0xff] }
  0xd4   : > { %2684 = vmatpush.bf16.msra.mxu2 %v4071_v48  ;;  %v4100_v48 = vld [vmem:[%s4992_s1 + $0x798] sm:$0xff]  ;;  %v4105_v5 = vld [vmem:[%s4992_s1 + $0x7c0] sm:$0xff] }
  0xd5   : > { %2697 = vmatpush.bf16.msra.mxu3 %v4079_v49  ;;  %v2446_v8 = vadd.f32 %v2445_v4, %v2433_v3  ;;  %v4108_v49 = vld [vmem:[%s4992_s1 + $0x7d8] sm:$0xff]  ;;  %v4089_v3 = vld [vmem:[%s4992_s1 + $0x740] sm:$0xff] }
  0xd6   : > { %2659 = vmatpush.bf16.msra.mxu0 %v4054_v50  ;;  %v4097_v4 = vld [vmem:[%s4992_s1 + $0x780] sm:$0xff] }
  0xd7   : > { %2672 = vmatpush.bf16.msra.mxu1 %v4062_v51  ;;  %v776_v9 = vld [vmem:[#allocation1 + $0x3f] sm:$0xff] }
  0xd8   : > { %2685 = vmatpush.bf16.msra.mxu2 %v4070_v52 }
  0xd9   : > { %2698 = vmatpush.bf16.msra.mxu3 %v4078_v53 }
  0xda   : > { %2660 = vmatpush.bf16.msra.mxu0 %v4053_v55  ;;  %v2434_v16 = vpop.f32.mrf.mxu2  ;;  %v4083_v55 = vld [vmem:[%s4992_s1 + $0x710] sm:$0xff] }
  0xdb   : > { %2673 = vmatpush.bf16.msra.mxu1 %v4061_v56  ;;  %v2447_v17 = vpop.f32.mrf.mxu3  ;;  %v4091_v56 = vld [vmem:[%s4992_s1 + $0x750] sm:$0xff] }
  0xdc   : > { %2686 = vmatpush.bf16.msra.mxu2 %v4069_v59  ;;  %v4107_v59 = vld [vmem:[%s4992_s1 + $0x7d0] sm:$0xff] }
  0xdd   : > { %2699 = vmatpush.bf16.msra.mxu3 %v4077_v60  ;;  %v4082_v60 = vld [vmem:[%s4992_s1 + $0x708] sm:$0xff] }
  0xde   : > { %2661 = vmatpush.bf16.msra.mxu0 %v4052_v62  ;;  %v4098_v62 = vld [vmem:[%s4992_s1 + $0x788] sm:$0xff] }
  0xdf   : > { %2674 = vmatpush.bf16.msra.mxu1 %v4060_v63  ;;  %v4106_v63 = vld [vmem:[%s4992_s1 + $0x7c8] sm:$0xff] }
  0xe0   : > { %2687 = vmatpush.bf16.msra.mxu2 %v4068_v0 }
  0xe1   : > { %2700 = vmatpush.bf16.msra.mxu3 %v4076_v1 }
  0xe2   : > { %2662 = vmatpush.bf16.msra.mxu0 %v4051_v6  ;;  %v773_v6 = vld [vmem:[#allocation1 + $0x24] sm:$0xff] }
  0xe3   : > { %2675 = vmatpush.bf16.msra.mxu1 %v4059_v7  ;;  %v774_v7 = vld [vmem:[#allocation1 + $0x2d] sm:$0xff] }
  0xe4   : > { %2688 = vmatpush.bf16.msra.mxu2 %v4067_v10 }
  0xe5   : > { %2701 = vmatpush.bf16.msra.mxu3 %v4075_v11 }
  0xe6   : > { %2663 = vmatpush.bf16.msra.mxu0 %v4050_v12 }
  0xe7   : > { %2676 = vmatpush.bf16.msra.mxu1 %v4058_v13 }
  0xe8   : > { %2689 = vmatpush.bf16.msra.mxu2 %v4066_v14 }
  0xe9   : > { %2702 = vmatpush.bf16.msra.mxu3 %v4074_v15 }
  0xea   : > { %2664 = vmatpush.bf16.msra.mxu0 %v4049_v18  ;;  %v2458_v38 = vpop.f32.mrf.mxu0 }
  0xeb   : > { %2677 = vmatpush.bf16.msra.mxu1 %v4057_v19  ;;  %v2459_v39 = vadd.f32 %v2458_v38, %v2446_v8  ;;  %v2471_v42 = vpop.f32.mrf.mxu1  ;;  %v775_v8 = vld [vmem:[#allocation1 + $0x36] sm:$0xff] }
  0xec   : > { %2690 = vmatpush.bf16.msra.mxu2 %v4065_v20 }
  0xed   : > { %2703 = vmatpush.bf16.msra.mxu3 %v4073_v21  ;;  %2665 = vmatmul.bf16.vlgmr.msra.gmra.mxu0 %v769_v26  ;;  %v2472_v45 = vadd.f32 %v2471_v42, %v2459_v39 }
  0xee   : > { %2709 = vmatpush.bf16.msrb.mxu0 %v4088_v22  ;;  %2678 = vmatmul.bf16.vlgmr.msra.gmra.mxu1 %v770_v28 }
  0xef   : > { %2722 = vmatpush.bf16.msrb.mxu1 %v4096_v23  ;;  %2691 = vmatmul.bf16.vlgmr.msra.gmra.mxu2 %v771_v27 }
  0xf0   : > { %2735 = vmatpush.bf16.msrb.mxu2 %v4104_v24  ;;  %2704 = vmatmul.bf16.vlgmr.msra.gmra.mxu3 %v772_v29 }
  0xf1   : > { %2748 = vmatpush.bf16.msrb.mxu3 %v4112_v25 }
  0xf2   : > { %2710 = vmatpush.bf16.msrb.mxu0 %v4087_v30  ;;  %v2484_v50 = vpop.f32.mrf.mxu2  ;;  %v2460_v53 = vpop.f32.mrf.mxu0 }
  0xf3   : > { %2723 = vmatpush.bf16.msrb.mxu1 %v4095_v31  ;;  %v2485_v51 = vadd.f32 %v2484_v50, %v2472_v45  ;;  %v2497_v52 = vpop.f32.mrf.mxu3  ;;  %v2473_v57 = vpop.f32.mrf.mxu1 }
  0xf4   : > { %2736 = vmatpush.bf16.msrb.mxu2 %v4103_v32 }
  0xf5   : > { %2749 = vmatpush.bf16.msrb.mxu3 %v4111_v33  ;;  %v2498_v54 = vadd.f32 %v2497_v52, %v2485_v51 }
  0xf6   : > { %2711 = vmatpush.bf16.msrb.mxu0 %v4086_v34 }
  0xf7   : > { %2724 = vmatpush.bf16.msrb.mxu1 %v4094_v35 }
  0xf8   : > { %2737 = vmatpush.bf16.msrb.mxu2 %v4102_v36 }
  0xf9   : > { %2750 = vmatpush.bf16.msrb.mxu3 %v4110_v37 }
  0xfa   : > { %2712 = vmatpush.bf16.msrb.mxu0 %v4085_v40  ;;  %v2486_v0 = vpop.f32.mrf.mxu2 }
  0xfb   : > { %2725 = vmatpush.bf16.msrb.mxu1 %v4093_v41  ;;  %v2499_v1 = vpop.f32.mrf.mxu3 }
  0xfc   : > { %2738 = vmatpush.bf16.msrb.mxu2 %v4101_v43 }
  0xfd   : > { %2751 = vmatpush.bf16.msrb.mxu3 %v4109_v44 }
  0xfe   : > { %2713 = vmatpush.bf16.msrb.mxu0 %v4084_v46 }
  0xff   : > { %2726 = vmatpush.bf16.msrb.mxu1 %v4092_v47 }
 0x100   : > { %2739 = vmatpush.bf16.msrb.mxu2 %v4100_v48 }
 0x101   : > { %2752 = vmatpush.bf16.msrb.mxu3 %v4108_v49 }
 0x102   : > { %2714 = vmatpush.bf16.msrb.mxu0 %v4083_v55 }
 0x103   : > { %2727 = vmatpush.bf16.msrb.mxu1 %v4091_v56 }
 0x104   : > { %2740 = vmatpush.bf16.msrb.mxu2 %v4099_v58 }
 0x105   : > { %2753 = vmatpush.bf16.msrb.mxu3 %v4107_v59 }
 0x106   : > { %2715 = vmatpush.bf16.msrb.mxu0 %v4082_v60 }
 0x107   : > { %2728 = vmatpush.bf16.msrb.mxu1 %v4090_v61 }
 0x108   : > { %2741 = vmatpush.bf16.msrb.mxu2 %v4098_v62 }
 0x109   : > { %2754 = vmatpush.bf16.msrb.mxu3 %v4106_v63 }
 0x10a   : > { %2716 = vmatpush.bf16.msrb.mxu0 %v4081_v2  ;;  %v2510_v10 = vpop.f32.mrf.mxu0 }
 0x10b   : > { %2729 = vmatpush.bf16.msrb.mxu1 %v4089_v3  ;;  %v2511_v11 = vadd.f32 %v2510_v10, %v2498_v54  ;;  %v2523_v12 = vpop.f32.mrf.mxu1  ;;  %v2768_v10 = vld [vmem:[#allocation2] sm:$0x1] }
 0x10c   : > { %2742 = vmatpush.bf16.msrb.mxu2 %v4097_v4  ;;  %v2762_v4 = vld [vmem:[%s4994_s3] sm:$0x1] }
 0x10d   : > { %2755 = vmatpush.bf16.msrb.mxu3 %v4105_v5  ;;  %2717 = vmatmul.bf16.vlgmr.msrb.gmra.mxu0 %v773_v6  ;;  %v2524_v13 = vadd.f32 %v2523_v12, %v2511_v11 }
 0x10e   : > { %2730 = vmatmul.bf16.vlgmr.msrb.gmra.mxu1 %v774_v7 }
 0x10f   : > { %2743 = vmatmul.bf16.vlgmr.msrb.gmra.mxu2 %v775_v8 }
 0x110   : > { %2756 = vmatmul.bf16.vlgmr.msrb.gmra.mxu3 %v776_v9 }
 0x112   : > { %v2536_v14 = vpop.f32.mrf.mxu2  ;;  %v2512_v17 = vpop.f32.mrf.mxu0 }
 0x113   : > { %v2537_v15 = vadd.f32 %v2536_v14, %v2524_v13  ;;  %v2549_v16 = vpop.f32.mrf.mxu3  ;;  %v2525_v19 = vpop.f32.mrf.mxu1 }
 0x115   : > { %v2550_v18 = vadd.f32 %v2549_v16, %v2537_v15 }
 0x11a   : > { %v2538_v20 = vpop.f32.mrf.mxu2 }
 0x11b   : > { %v2551_v21 = vpop.f32.mrf.mxu3 }
 0x12a   : > { %v2562_v22 = vpop.f32.mrf.mxu0 }
 0x12b   : > { %v2563_v23 = vadd.f32 %v2562_v22, %v2550_v18  ;;  %v2575_v24 = vpop.f32.mrf.mxu1 }
 0x12d   : > { %v2576_v25 = vadd.f32 %v2575_v24, %v2563_v23 }
 0x132   : > { %v2588_v26 = vpop.f32.mrf.mxu2  ;;  %v2564_v29 = vpop.f32.mrf.mxu0 }
 0x133   : > { %v2589_v27 = vadd.f32 %v2588_v26, %v2576_v25  ;;  %v2601_v28 = vpop.f32.mrf.mxu3  ;;  %v2577_v31 = vpop.f32.mrf.mxu1 }
 0x135   : > { %v2602_v30 = vadd.f32 %v2601_v28, %v2589_v27 }
 0x13a   : > { %v2590_v32 = vpop.f32.mrf.mxu2 }
 0x13b   : > { %v2603_v33 = vpop.f32.mrf.mxu3 }
 0x14a   : > { %v2614_v34 = vpop.f32.mrf.mxu0 }
 0x14b   : > { %v2627_v35 = vpop.f32.mrf.mxu1  ;;  %v2615_v45 = vadd.f32 %v2614_v34, %v2602_v30 }
 0x14d   : > { %v2628_v49 = vadd.f32 %v2627_v35, %v2615_v45 }
 0x152   : > { %v2640_v36 = vpop.f32.mrf.mxu2  ;;  %v2616_v38 = vpop.f32.mrf.mxu0 }
 0x153   : > { %v2653_v37 = vpop.f32.mrf.mxu3  ;;  %v2629_v39 = vpop.f32.mrf.mxu1  ;;  %v2641_v50 = vadd.f32 %v2640_v36, %v2628_v49 }
 0x155   : > { %v2654_v53 = vadd.f32 %v2653_v37, %v2641_v50 }
 0x15a   : > { %v2642_v40 = vpop.f32.mrf.mxu2 }
 0x15b   : > { %v2655_v41 = vpop.f32.mrf.mxu3 }
 0x16a   : > { %v2666_v42 = vpop.f32.mrf.mxu0 }
 0x16b   : > { %v2679_v43 = vpop.f32.mrf.mxu1  ;;  %v2667_v54 = vadd.f32 %v2666_v42, %v2654_v53 }
 0x16d   : > { %v2680_v55 = vadd.f32 %v2679_v43, %v2667_v54 }
 0x172   : > { %v2692_v44 = vpop.f32.mrf.mxu2  ;;  %v2668_v47 = vpop.f32.mrf.mxu0 }
 0x173   : > { %v2705_v46 = vpop.f32.mrf.mxu3  ;;  %v2681_v48 = vpop.f32.mrf.mxu1  ;;  %v2693_v56 = vadd.f32 %v2692_v44, %v2680_v55 }
 0x175   : > { %v2706_v57 = vadd.f32 %v2705_v46, %v2693_v56 }
 0x17a   : > { %v2694_v51 = vpop.f32.mrf.mxu2 }
 0x17b   : > { %v2707_v52 = vpop.f32.mrf.mxu3 }
 0x18a   : > { %v2718_v58 = vpop.f32.mrf.mxu0 }
 0x18b   : > { %v2731_v59 = vpop.f32.mrf.mxu1  ;;  %v2719_v60 = vadd.f32 %v2718_v58, %v2706_v57 }
 0x18d   : > { %v2732_v61 = vadd.f32 %v2731_v59, %v2719_v60 }
 0x192   : > { %v2744_v62 = vpop.f32.mrf.mxu2  ;;  %v2720_v1 = vpop.f32.mrf.mxu0 }
 0x193   : > { %v2757_v63 = vpop.f32.mrf.mxu3  ;;  %v2745_v0 = vadd.f32 %v2744_v62, %v2732_v61  ;;  %v2733_v2 = vpop.f32.mrf.mxu1 }
 0x195   : > { %v2758_v3 = vadd.f32 %v2757_v63, %v2745_v0 }
 0x197   : > { %v2761_v5 = vmax.f32 %v2758_v3, 0.0 }
 0x199   : > { %v2763_v6 = vmul.f32 %v2762_v4, %v2761_v5 }
 0x19a   : > { %v2746_v7 = vpop.f32.mrf.mxu2 }
 0x19b   : > { %v2759_v8 = vpop.f32.mrf.mxu3  ;;  %v2765_v9 = vsel %vm2764_vm0, %v2763_v6, 0.0 }
 0x19c   : > { %2766 = vadd.xlane.f32.xlu0 %v2765_v9 }
 0x20f   : > { %v2767_v11 = vpop.xlane.xlu0 %2766 }
 0x210   : > { %v2769_v12 = vadd.f32 %v2768_v10, %v2767_v11 }
 0x212   : > { %v2770_v13 = vsub.f32 0.0, %v2769_v12 }
 0x214   : > { %v2771_v14 = vmul.f32 1.442695, %v2770_v13 }
 0x216   : > { %4121 = vpow2.f32 %v2771_v14 }
 0x21c   : > { %v4122_v15 = vpop.eup %4121 }
 0x21d   : > { %v2773_v16 = vadd.f32 1.0, %v4122_v15 }
 0x21f   : > { %4123 = vrcp.f32 %v2773_v16 }
 0x225   : > { %v4124_v17 = vpop.eup %4123 }
 0x226   : > { %v2775_v18 = vmin.f32 %v4124_v17, 1.0 }
 0x228   : > { %2777 = vst.msk [vmem:[%s219_s27] sm:$0x1] %vm2776_vm1, %v2775_v18 }
 0x229 PF: > { %s17_s20 = sadd.s32 1, %s4131_s20  }
 0x22a   : > { %p14_p4 = scmp.ge.s32.totalorder %s17_s20, 4  }
 0x22c   :  { %16 = sbr.rel (!%p14_p4) target bundleno = 3 (0x3), region = 70 }

</bundles_post_ra>
